<compile_context>
chip_gen: v7x
topology: tpu7x:2x2x1
jax: 0.10.0
libtpu: 0.0.40
codegen_flags: <defaults>
</compile_context>

<pallas_src>
import functools

import jax
import jax.numpy as jnp
import numpy as np
from jax.experimental import pallas as pl
from jax.experimental.pallas import tpu as pltpu


# --------------------------- fused GRU + Linear kernel ---------------------------
def fused_gru_kernel(x_ref, *refs, num_layers, hp):
    """Arg layout after x_ref:
         per layer l: w_ih_T (in_dim, 3Hp) bf16, w_hh_T (Hp, 3Hp) bf16,
                      b_comb (1, 3Hp) f32, b_hn (1, Hp) f32
         then: w_lin_T (Hp, Vp) bf16, b_lin (1, Vp) f32
         then: out_ref (T*B, Vp) f32          (output)
         then: h_scr (T, B, Hp) f32           (VMEM scratch)
    """
    n_lw = 4 * num_layers
    layer_refs = refs[:n_lw]
    w_lin_ref, b_lin_ref, out_ref, h_scr = refs[n_lw:]

    Hp = hp
    T, B, _ = h_scr.shape

    lhs = x_ref[...]                                        # (T*B, E) bf16

    for l in range(num_layers):
        w_ih_T = layer_refs[4 * l + 0][...]                 # (in_dim, 3Hp) bf16
        w_hh_T = layer_refs[4 * l + 1][...]                 # (Hp, 3Hp)    bf16
        b_comb = layer_refs[4 * l + 2][...]                 # (1, 3Hp)     f32
        b_hn = layer_refs[4 * l + 3][...]                   # (1, Hp)      f32

        # Hoisted (time-independent) input projection for the whole sequence,
        # laid out time-major so the per-step slice is a leading-axis select.
        gx = (
            jnp.dot(lhs, w_ih_T, preferred_element_type=jnp.float32) + b_comb
        ).reshape(T, B, 3 * Hp)                             # (T, B, 3Hp) f32

        b_hn_b = jnp.broadcast_to(b_hn, (B, Hp))            # hoisted broadcast

        h = jnp.zeros((B, Hp), jnp.float32)
        for t in range(T):                                  # static unroll (T small)
            gx_t = gx[t]                                    # (B, 3Hp) leading-axis select
            gh = jnp.dot(h.astype(jnp.bfloat16), w_hh_T,
                         preferred_element_type=jnp.float32)  # (B, 3Hp) f32
            # Lane-aligned (multiple-of-128) gate slices: r, z, n.
            r = jax.nn.sigmoid(gx_t[:, 0 * Hp:1 * Hp] + gh[:, 0 * Hp:1 * Hp])
            z = jax.nn.sigmoid(gx_t[:, 1 * Hp:2 * Hp] + gh[:, 1 * Hp:2 * Hp])
            n = jnp.tanh(gx_t[:, 2 * Hp:3 * Hp] + r * (gh[:, 2 * Hp:3 * Hp] + b_hn_b))
            h = (1.0 - z) * n + z * h
            h_scr[t, :, :] = h                              # full-tile f32 store

        # Next layer (or the final Linear) reads the full hidden-state sequence.
        lhs = h_scr[...].reshape(T * B, Hp).astype(jnp.bfloat16)

    # Final affine on the whole slab -> one lane-dense (T*B, Vp) unmasked store.
    out_ref[...] = (
        jnp.dot(lhs, w_lin_ref[...], preferred_element_type=jnp.float32)
        + b_lin_ref[...]
    )


# ------------------------- one-time parameter preparation -------------------------
def prepare_params(params, num_layers, hidden_size, words_num,
                   hidden_padded, vocab_padded, weight_dtype=jnp.bfloat16):
    """Transpose, lane-pad and bf16-cast all weights once (PyTorch gate order r,z,n).

    Padding rule (correctness): both rows and columns beyond H are zero, biases are
    zero in padded lanes, so padded h lanes stay exactly 0 for all timesteps.
    """
    H, Hp = hidden_size, hidden_padded
    V, Vp = words_num, vocab_padded
    prep = {"emb": params["emb"].astype(weight_dtype)}

    for l in range(num_layers):
        w_ih = params[f"w_ih_{l}"]            # (3H, in_dim)
        w_hh = params[f"w_hh_{l}"]            # (3H, H)
        b_ih = params[f"b_ih_{l}"]            # (3H,)
        b_hh = params[f"b_hh_{l}"]            # (3H,)
        in_dim = w_ih.shape[1]
        in_dim_k = in_dim if l == 0 else Hp   # layers > 0 see the lane-padded h input

        w_ih_T = jnp.zeros((in_dim_k, 3 * Hp), jnp.float32)
        w_hh_T = jnp.zeros((Hp, 3 * Hp), jnp.float32)
        b_comb = jnp.zeros((1, 3 * Hp), jnp.float32)
        b_hn = jnp.zeros((1, Hp), jnp.float32)
        for g in range(3):                    # gate order: r, z, n
            w_ih_T = w_ih_T.at[:in_dim, g * Hp:g * Hp + H].set(
                w_ih[g * H:(g + 1) * H, :].T)
            w_hh_T = w_hh_T.at[:H, g * Hp:g * Hp + H].set(
                w_hh[g * H:(g + 1) * H, :].T)
            bias_g = b_ih[g * H:(g + 1) * H]
            if g < 2:                         # fold b_hh[r], b_hh[z] into hoisted bias
                bias_g = bias_g + b_hh[g * H:(g + 1) * H]
            b_comb = b_comb.at[0, g * Hp:g * Hp + H].set(bias_g)
        b_hn = b_hn.at[0, :H].set(b_hh[2 * H:3 * H])        # stays inside r*(...)

        prep[f"w_ih_{l}"] = w_ih_T.astype(weight_dtype)
        prep[f"w_hh_{l}"] = w_hh_T.astype(weight_dtype)
        prep[f"b_{l}"] = b_comb
        prep[f"b_hn_{l}"] = b_hn

    w_lin_T = jnp.zeros((Hp, Vp), jnp.float32).at[:H, :V].set(params["w_lin"].T)
    b_lin = jnp.zeros((1, Vp), jnp.float32).at[0, :V].set(params["b_lin"])
    prep["w_lin"] = w_lin_T.astype(weight_dtype)
    prep["b_lin"] = b_lin
    return prep


# --------------------------------- jitted wrapper ---------------------------------
def make_gru_forward(num_layers, hidden_size, words_num, hidden_padded=128):
    Hp = hidden_padded
    Vp = ((words_num + 127) // 128) * 128

    @jax.jit
    def forward(tokens, prep):
        B, T = tokens.shape
        # Embedding gather inside the jit, in (T, B) order so time is the leading axis.
        x = prep["emb"][tokens.T].reshape(T * B, -1)        # (T*B, E) bf16

        in_arrays = [x]
        for l in range(num_layers):
            in_arrays += [prep[f"w_ih_{l}"], prep[f"w_hh_{l}"],
                          prep[f"b_{l}"], prep[f"b_hn_{l}"]]
        in_arrays += [prep["w_lin"], prep["b_lin"]]

        vmem = pl.BlockSpec(memory_space=pltpu.MemorySpace.VMEM)
        logits_padded = pl.pallas_call(
            functools.partial(fused_gru_kernel, num_layers=num_layers, hp=Hp),
            out_shape=jax.ShapeDtypeStruct((T * B, Vp), jnp.float32),
            in_specs=[vmem] * len(in_arrays),
            out_specs=vmem,
            scratch_shapes=[pltpu.VMEM((T, B, Hp), jnp.float32)],
            compiler_params=pltpu.CompilerParams(
                vmem_limit_bytes=32 * 1024 * 1024),
        )(*in_arrays)

        # Un-pad vocab lanes and restore batch-first (B, T, V) outside the kernel.
        out = logits_padded.reshape(T, B, Vp)[:, :, :words_num]
        return jnp.transpose(out, (1, 0, 2))

    return forward


# --------------------------------- parameters -------------------------------------
def init_params(key, words_num, embedding_dim, hidden_size, num_layers):
    params = {}
    k_std = 1.0 / np.sqrt(hidden_size)
    keys = jax.random.split(key, 3 + 4 * num_layers)
    params["emb"] = jax.random.normal(keys[0], (words_num, embedding_dim), jnp.float32)
    for l in range(num_layers):
        in_dim = embedding_dim if l == 0 else hidden_size
        kk = keys[3 + 4 * l: 3 + 4 * (l + 1)]
        params[f"w_ih_{l}"] = jax.random.uniform(
            kk[0], (3 * hidden_size, in_dim), jnp.float32, -k_std, k_std)
        params[f"w_hh_{l}"] = jax.random.uniform(
            kk[1], (3 * hidden_size, hidden_size), jnp.float32, -k_std, k_std)
        params[f"b_ih_{l}"] = jax.random.uniform(
            kk[2], (3 * hidden_size,), jnp.float32, -k_std, k_std)
        params[f"b_hh_{l}"] = jax.random.uniform(
            kk[3], (3 * hidden_size,), jnp.float32, -k_std, k_std)
    params["w_lin"] = jax.random.uniform(
        keys[1], (words_num, hidden_size), jnp.float32, -k_std, k_std)
    params["b_lin"] = jax.random.uniform(
        keys[2], (words_num,), jnp.float32, -k_std, k_std)
    return params


# ------------------------------ pure-JAX f32 reference -----------------------------
def reference_forward(tokens, params, num_layers, hidden_size):
    """PyTorch nn.GRU (eval mode) semantics, gate order r, z, n, all f32."""
    x = params["emb"][tokens]                               # (B, T, E)
    B, T, _ = x.shape
    H = hidden_size
    for l in range(num_layers):
        w_ih = params[f"w_ih_{l}"]
        w_hh = params[f"w_hh_{l}"]
        b_ih = params[f"b_ih_{l}"]
        b_hh = params[f"b_hh_{l}"]
        h0 = jnp.zeros((B, H), jnp.float32)

        def step(h, x_t):
            gx = x_t @ w_ih.T + b_ih
            gh = h @ w_hh.T + b_hh
            r = jax.nn.sigmoid(gx[:, 0 * H:1 * H] + gh[:, 0 * H:1 * H])
            z = jax.nn.sigmoid(gx[:, 1 * H:2 * H] + gh[:, 1 * H:2 * H])
            n = jnp.tanh(gx[:, 2 * H:3 * H] + r * gh[:, 2 * H:3 * H])
            h_new = (1.0 - z) * n + z * h
            return h_new, h_new

        _, hs = jax.lax.scan(step, h0, jnp.transpose(x, (1, 0, 2)))
        x = jnp.transpose(hs, (1, 0, 2))
    return x @ params["w_lin"].T + params["b_lin"]


# ------------------------------------- main ---------------------------------------
if __name__ == "__main__":
    words_num = 64
    embedding_dim = 32
    hidden_size = 32
    num_layers = 2
    B, T = 8, 8        # B=8 fills the 8-sublane tile of the per-step recurrent matmul

    key = jax.random.PRNGKey(0)
    k_params, k_tokens = jax.random.split(key)
    params = init_params(k_params, words_num, embedding_dim, hidden_size, num_layers)
    tokens = jax.random.randint(k_tokens, (B, T), 0, words_num, dtype=jnp.int32)

    Vp = ((words_num + 127) // 128) * 128
    prep = prepare_params(params, num_layers, hidden_size, words_num,
                          hidden_padded=128, vocab_padded=Vp)
    forward = make_gru_forward(num_layers, hidden_size, words_num, hidden_padded=128)

    out = jax.block_until_ready(forward(tokens, prep))
    ref = jax.block_until_ready(
        reference_forward(tokens, params, num_layers, hidden_size))

    assert out.shape == (B, T, words_num)
    # Kernel uses bf16 weights/activations on the MXU (f32 accumulate & gate math);
    # reference is pure f32, hence the relaxed tolerance.
    assert np.allclose(np.asarray(out), np.asarray(ref), atol=2e-2, rtol=2e-2)
    print("KERNEL_OK")
</pallas_src>

<mosaic_0001>
module attributes {stable_mosaic.version = 11 : i64} {
  func.func @fused_gru_kernel(%arg0: memref<64x32xbf16, #tpu.memory_space<vmem>>, %arg1: memref<32x384xbf16, #tpu.memory_space<vmem>>, %arg2: memref<128x384xbf16, #tpu.memory_space<vmem>>, %arg3: memref<1x384xf32, #tpu.memory_space<vmem>>, %arg4: memref<1x128xf32, #tpu.memory_space<vmem>>, %arg5: memref<128x384xbf16, #tpu.memory_space<vmem>>, %arg6: memref<128x384xbf16, #tpu.memory_space<vmem>>, %arg7: memref<1x384xf32, #tpu.memory_space<vmem>>, %arg8: memref<1x128xf32, #tpu.memory_space<vmem>>, %arg9: memref<128x128xbf16, #tpu.memory_space<vmem>>, %arg10: memref<1x128xf32, #tpu.memory_space<vmem>>, %arg11: memref<64x128xf32, #tpu.memory_space<vmem>>, %arg12: memref<8x8x128xf32, #tpu.memory_space<vmem>>) attributes {dimension_semantics = [], scalar_prefetch = 0 : i64, scratch_operands = 1 : i64, tpu.core_type = #tpu.core_type<tc>} {
    %c0 = arith.constant 0 : index
    %c0_0 = arith.constant 0 : index
    %0 = vector.load %arg0[%c0, %c0_0] : memref<64x32xbf16, #tpu.memory_space<vmem>>, vector<64x32xbf16>
    %c0_1 = arith.constant 0 : index
    %c0_2 = arith.constant 0 : index
    %1 = vector.load %arg1[%c0_1, %c0_2] : memref<32x384xbf16, #tpu.memory_space<vmem>>, vector<32x384xbf16>
    %c0_3 = arith.constant 0 : index
    %c0_4 = arith.constant 0 : index
    %2 = vector.load %arg2[%c0_3, %c0_4] : memref<128x384xbf16, #tpu.memory_space<vmem>>, vector<128x384xbf16>
    %c0_5 = arith.constant 0 : index
    %c0_6 = arith.constant 0 : index
    %3 = vector.load %arg3[%c0_5, %c0_6] : memref<1x384xf32, #tpu.memory_space<vmem>>, vector<1x384xf32>
    %c0_7 = arith.constant 0 : index
    %c0_8 = arith.constant 0 : index
    %4 = vector.load %arg4[%c0_7, %c0_8] : memref<1x128xf32, #tpu.memory_space<vmem>>, vector<1x128xf32>
    %cst = arith.constant dense<0.000000e+00> : vector<64x384xf32>
    %5 = tpu.matmul %0, %1, %cst {dimension_numbers = #tpu.dot_dimension_numbers<[1], [0], [0], [1], [0, 0, 1, 1], [], []>} : vector<64x32xbf16>, vector<32x384xbf16>, vector<64x384xf32> -> vector<64x384xf32>
    %6 = vector.broadcast %3 : vector<1x384xf32> to vector<64x384xf32>
    %7 = arith.addf %5, %6 : vector<64x384xf32>
    %8 = vector.shape_cast %7 : vector<64x384xf32> to vector<8x8x384xf32>
    %9 = vector.shape_cast %4 : vector<1x128xf32> to vector<1x128xf32>
    %10 = vector.broadcast %9 : vector<1x128xf32> to vector<8x128xf32>
    %cst_9 = arith.constant 0.000000e+00 : f32
    %11 = vector.broadcast %cst_9 : f32 to vector<8x128xf32>
    %12 = vector.extract_strided_slice %8 {offsets = [0, 0, 0], sizes = [1, 8, 384], strides = [1, 1, 1]} : vector<8x8x384xf32> to vector<1x8x384xf32>
    %13 = vector.shape_cast %12 : vector<1x8x384xf32> to vector<8x384xf32>
    %14 = arith.truncf %11 : vector<8x128xf32> to vector<8x128xbf16>
    %cst_10 = arith.constant dense<0.000000e+00> : vector<8x384xf32>
    %15 = tpu.matmul %14, %2, %cst_10 {dimension_numbers = #tpu.dot_dimension_numbers<[1], [0], [0], [1], [0, 0, 1, 1], [], []>} : vector<8x128xbf16>, vector<128x384xbf16>, vector<8x384xf32> -> vector<8x384xf32>
    %16 = vector.extract_strided_slice %13 {offsets = [0, 0], sizes = [8, 128], strides = [1, 1]} : vector<8x384xf32> to vector<8x128xf32>
    %17 = vector.extract_strided_slice %15 {offsets = [0, 0], sizes = [8, 128], strides = [1, 1]} : vector<8x384xf32> to vector<8x128xf32>
    %18 = arith.addf %16, %17 : vector<8x128xf32>
    %19 = arith.negf %18 : vector<8x128xf32>
    %20 = math.exp %19 : vector<8x128xf32>
    %cst_11 = arith.constant 1.000000e+00 : f32
    %21 = vector.broadcast %cst_11 : f32 to vector<8x128xf32>
    %22 = arith.addf %21, %20 : vector<8x128xf32>
    %23 = arith.divf %21, %22 : vector<8x128xf32>
    %24 = vector.extract_strided_slice %13 {offsets = [0, 128], sizes = [8, 128], strides = [1, 1]} : vector<8x384xf32> to vector<8x128xf32>
    %25 = vector.extract_strided_slice %15 {offsets = [0, 128], sizes = [8, 128], strides = [1, 1]} : vector<8x384xf32> to vector<8x128xf32>
    %26 = arith.addf %24, %25 : vector<8x128xf32>
    %27 = arith.negf %26 : vector<8x128xf32>
    %28 = math.exp %27 : vector<8x128xf32>
    %cst_12 = arith.constant 1.000000e+00 : f32
    %29 = vector.broadcast %cst_12 : f32 to vector<8x128xf32>
    %30 = arith.addf %29, %28 : vector<8x128xf32>
    %31 = arith.divf %29, %30 : vector<8x128xf32>
    %32 = vector.extract_strided_slice %13 {offsets = [0, 256], sizes = [8, 128], strides = [1, 1]} : vector<8x384xf32> to vector<8x128xf32>
    %33 = vector.extract_strided_slice %15 {offsets = [0, 256], sizes = [8, 128], strides = [1, 1]} : vector<8x384xf32> to vector<8x128xf32>
    %34 = arith.addf %33, %10 : vector<8x128xf32>
    %35 = arith.mulf %23, %34 : vector<8x128xf32>
    %36 = arith.addf %32, %35 : vector<8x128xf32>
    %37 = math.tanh %36 : vector<8x128xf32>
    %cst_13 = arith.constant 1.000000e+00 : f32
    %38 = vector.broadcast %cst_13 : f32 to vector<8x128xf32>
    %39 = arith.subf %38, %31 : vector<8x128xf32>
    %40 = arith.mulf %39, %37 : vector<8x128xf32>
    %41 = arith.mulf %31, %11 : vector<8x128xf32>
    %42 = arith.addf %40, %41 : vector<8x128xf32>
    %c0_14 = arith.constant 0 : index
    %c0_15 = arith.constant 0 : index
    %c0_16 = arith.constant 0 : index
    %43 = vector.load %arg12[%c0_14, %c0_15, %c0_16] : memref<8x8x128xf32, #tpu.memory_space<vmem>>, vector<1x8x128xf32>
    %44 = vector.shape_cast %43 : vector<1x8x128xf32> to vector<8x128xf32>
    %45 = vector.shape_cast %42 : vector<8x128xf32> to vector<1x8x128xf32>
    tpu.vector_store %arg12[%c0_14, %c0_15, %c0_16], %45 {strides = array<i32>} : memref<8x8x128xf32, #tpu.memory_space<vmem>>, vector<1x8x128xf32>,
    %46 = vector.extract_strided_slice %8 {offsets = [1, 0, 0], sizes = [1, 8, 384], strides = [1, 1, 1]} : vector<8x8x384xf32> to vector<1x8x384xf32>
    %47 = vector.shape_cast %46 : vector<1x8x384xf32> to vector<8x384xf32>
    %48 = arith.truncf %42 : vector<8x128xf32> to vector<8x128xbf16>
    %cst_17 = arith.constant dense<0.000000e+00> : vector<8x384xf32>
    %49 = tpu.matmul %48, %2, %cst_17 {dimension_numbers = #tpu.dot_dimension_numbers<[1], [0], [0], [1], [0, 0, 1, 1], [], []>} : vector<8x128xbf16>, vector<128x384xbf16>, vector<8x384xf32> -> vector<8x384xf32>
    %50 = vector.extract_strided_slice %47 {offsets = [0, 0], sizes = [8, 128], strides = [1, 1]} : vector<8x384xf32> to vector<8x128xf32>
    %51 = vector.extract_strided_slice %49 {offsets = [0, 0], sizes = [8, 128], strides = [1, 1]} : vector<8x384xf32> to vector<8x128xf32>
    %52 = arith.addf %50, %51 : vector<8x128xf32>
    %53 = arith.negf %52 : vector<8x128xf32>
    %54 = math.exp %53 : vector<8x128xf32>
    %cst_18 = arith.constant 1.000000e+00 : f32
    %55 = vector.broadcast %cst_18 : f32 to vector<8x128xf32>
    %56 = arith.addf %55, %54 : vector<8x128xf32>
    %57 = arith.divf %55, %56 : vector<8x128xf32>
    %58 = vector.extract_strided_slice %47 {offsets = [0, 128], sizes = [8, 128], strides = [1, 1]} : vector<8x384xf32> to vector<8x128xf32>
    %59 = vector.extract_strided_slice %49 {offsets = [0, 128], sizes = [8, 128], strides = [1, 1]} : vector<8x384xf32> to vector<8x128xf32>
    %60 = arith.addf %58, %59 : vector<8x128xf32>
    %61 = arith.negf %60 : vector<8x128xf32>
    %62 = math.exp %61 : vector<8x128xf32>
    %cst_19 = arith.constant 1.000000e+00 : f32
    %63 = vector.broadcast %cst_19 : f32 to vector<8x128xf32>
    %64 = arith.addf %63, %62 : vector<8x128xf32>
    %65 = arith.divf %63, %64 : vector<8x128xf32>
    %66 = vector.extract_strided_slice %47 {offsets = [0, 256], sizes = [8, 128], strides = [1, 1]} : vector<8x384xf32> to vector<8x128xf32>
    %67 = vector.extract_strided_slice %49 {offsets = [0, 256], sizes = [8, 128], strides = [1, 1]} : vector<8x384xf32> to vector<8x128xf32>
    %68 = arith.addf %67, %10 : vector<8x128xf32>
    %69 = arith.mulf %57, %68 : vector<8x128xf32>
    %70 = arith.addf %66, %69 : vector<8x128xf32>
    %71 = math.tanh %70 : vector<8x128xf32>
    %cst_20 = arith.constant 1.000000e+00 : f32
    %72 = vector.broadcast %cst_20 : f32 to vector<8x128xf32>
    %73 = arith.subf %72, %65 : vector<8x128xf32>
    %74 = arith.mulf %73, %71 : vector<8x128xf32>
    %75 = arith.mulf %65, %42 : vector<8x128xf32>
    %76 = arith.addf %74, %75 : vector<8x128xf32>
    %c1 = arith.constant 1 : index
    %c0_21 = arith.constant 0 : index
    %c0_22 = arith.constant 0 : index
    %77 = vector.load %arg12[%c1, %c0_21, %c0_22] : memref<8x8x128xf32, #tpu.memory_space<vmem>>, vector<1x8x128xf32>
    %78 = vector.shape_cast %77 : vector<1x8x128xf32> to vector<8x128xf32>
    %79 = vector.shape_cast %76 : vector<8x128xf32> to vector<1x8x128xf32>
    tpu.vector_store %arg12[%c1, %c0_21, %c0_22], %79 {strides = array<i32>} : memref<8x8x128xf32, #tpu.memory_space<vmem>>, vector<1x8x128xf32>,
    %80 = vector.extract_strided_slice %8 {offsets = [2, 0, 0], sizes = [1, 8, 384], strides = [1, 1, 1]} : vector<8x8x384xf32> to vector<1x8x384xf32>
    %81 = vector.shape_cast %80 : vector<1x8x384xf32> to vector<8x384xf32>
    %82 = arith.truncf %76 : vector<8x128xf32> to vector<8x128xbf16>
    %cst_23 = arith.constant dense<0.000000e+00> : vector<8x384xf32>
    %83 = tpu.matmul %82, %2, %cst_23 {dimension_numbers = #tpu.dot_dimension_numbers<[1], [0], [0], [1], [0, 0, 1, 1], [], []>} : vector<8x128xbf16>, vector<128x384xbf16>, vector<8x384xf32> -> vector<8x384xf32>
    %84 = vector.extract_strided_slice %81 {offsets = [0, 0], sizes = [8, 128], strides = [1, 1]} : vector<8x384xf32> to vector<8x128xf32>
    %85 = vector.extract_strided_slice %83 {offsets = [0, 0], sizes = [8, 128], strides = [1, 1]} : vector<8x384xf32> to vector<8x128xf32>
    %86 = arith.addf %84, %85 : vector<8x128xf32>
    %87 = arith.negf %86 : vector<8x128xf32>
    %88 = math.exp %87 : vector<8x128xf32>
    %cst_24 = arith.constant 1.000000e+00 : f32
    %89 = vector.broadcast %cst_24 : f32 to vector<8x128xf32>
    %90 = arith.addf %89, %88 : vector<8x128xf32>
    %91 = arith.divf %89, %90 : vector<8x128xf32>
    %92 = vector.extract_strided_slice %81 {offsets = [0, 128], sizes = [8, 128], strides = [1, 1]} : vector<8x384xf32> to vector<8x128xf32>
    %93 = vector.extract_strided_slice %83 {offsets = [0, 128], sizes = [8, 128], strides = [1, 1]} : vector<8x384xf32> to vector<8x128xf32>
    %94 = arith.addf %92, %93 : vector<8x128xf32>
    %95 = arith.negf %94 : vector<8x128xf32>
    %96 = math.exp %95 : vector<8x128xf32>
    %cst_25 = arith.constant 1.000000e+00 : f32
    %97 = vector.broadcast %cst_25 : f32 to vector<8x128xf32>
    %98 = arith.addf %97, %96 : vector<8x128xf32>
    %99 = arith.divf %97, %98 : vector<8x128xf32>
    %100 = vector.extract_strided_slice %81 {offsets = [0, 256], sizes = [8, 128], strides = [1, 1]} : vector<8x384xf32> to vector<8x128xf32>
    %101 = vector.extract_strided_slice %83 {offsets = [0, 256], sizes = [8, 128], strides = [1, 1]} : vector<8x384xf32> to vector<8x128xf32>
    %102 = arith.addf %101, %10 : vector<8x128xf32>
    %103 = arith.mulf %91, %102 : vector<8x128xf32>
    %104 = arith.addf %100, %103 : vector<8x128xf32>
    %105 = math.tanh %104 : vector<8x128xf32>
    %cst_26 = arith.constant 1.000000e+00 : f32
    %106 = vector.broadcast %cst_26 : f32 to vector<8x128xf32>
    %107 = arith.subf %106, %99 : vector<8x128xf32>
    %108 = arith.mulf %107, %105 : vector<8x128xf32>
    %109 = arith.mulf %99, %76 : vector<8x128xf32>
    %110 = arith.addf %108, %109 : vector<8x128xf32>
    %c2 = arith.constant 2 : index
    %c0_27 = arith.constant 0 : index
    %c0_28 = arith.constant 0 : index
    %111 = vector.load %arg12[%c2, %c0_27, %c0_28] : memref<8x8x128xf32, #tpu.memory_space<vmem>>, vector<1x8x128xf32>
    %112 = vector.shape_cast %111 : vector<1x8x128xf32> to vector<8x128xf32>
    %113 = vector.shape_cast %110 : vector<8x128xf32> to vector<1x8x128xf32>
    tpu.vector_store %arg12[%c2, %c0_27, %c0_28], %113 {strides = array<i32>} : memref<8x8x128xf32, #tpu.memory_space<vmem>>, vector<1x8x128xf32>,
    %114 = vector.extract_strided_slice %8 {offsets = [3, 0, 0], sizes = [1, 8, 384], strides = [1, 1, 1]} : vector<8x8x384xf32> to vector<1x8x384xf32>
    %115 = vector.shape_cast %114 : vector<1x8x384xf32> to vector<8x384xf32>
    %116 = arith.truncf %110 : vector<8x128xf32> to vector<8x128xbf16>
    %cst_29 = arith.constant dense<0.000000e+00> : vector<8x384xf32>
    %117 = tpu.matmul %116, %2, %cst_29 {dimension_numbers = #tpu.dot_dimension_numbers<[1], [0], [0], [1], [0, 0, 1, 1], [], []>} : vector<8x128xbf16>, vector<128x384xbf16>, vector<8x384xf32> -> vector<8x384xf32>
    %118 = vector.extract_strided_slice %115 {offsets = [0, 0], sizes = [8, 128], strides = [1, 1]} : vector<8x384xf32> to vector<8x128xf32>
    %119 = vector.extract_strided_slice %117 {offsets = [0, 0], sizes = [8, 128], strides = [1, 1]} : vector<8x384xf32> to vector<8x128xf32>
    %120 = arith.addf %118, %119 : vector<8x128xf32>
    %121 = arith.negf %120 : vector<8x128xf32>
    %122 = math.exp %121 : vector<8x128xf32>
    %cst_30 = arith.constant 1.000000e+00 : f32
    %123 = vector.broadcast %cst_30 : f32 to vector<8x128xf32>
    %124 = arith.addf %123, %122 : vector<8x128xf32>
    %125 = arith.divf %123, %124 : vector<8x128xf32>
    %126 = vector.extract_strided_slice %115 {offsets = [0, 128], sizes = [8, 128], strides = [1, 1]} : vector<8x384xf32> to vector<8x128xf32>
    %127 = vector.extract_strided_slice %117 {offsets = [0, 128], sizes = [8, 128], strides = [1, 1]} : vector<8x384xf32> to vector<8x128xf32>
    %128 = arith.addf %126, %127 : vector<8x128xf32>
    %129 = arith.negf %128 : vector<8x128xf32>
    %130 = math.exp %129 : vector<8x128xf32>
    %cst_31 = arith.constant 1.000000e+00 : f32
    %131 = vector.broadcast %cst_31 : f32 to vector<8x128xf32>
    %132 = arith.addf %131, %130 : vector<8x128xf32>
    %133 = arith.divf %131, %132 : vector<8x128xf32>
    %134 = vector.extract_strided_slice %115 {offsets = [0, 256], sizes = [8, 128], strides = [1, 1]} : vector<8x384xf32> to vector<8x128xf32>
    %135 = vector.extract_strided_slice %117 {offsets = [0, 256], sizes = [8, 128], strides = [1, 1]} : vector<8x384xf32> to vector<8x128xf32>
    %136 = arith.addf %135, %10 : vector<8x128xf32>
    %137 = arith.mulf %125, %136 : vector<8x128xf32>
    %138 = arith.addf %134, %137 : vector<8x128xf32>
    %139 = math.tanh %138 : vector<8x128xf32>
    %cst_32 = arith.constant 1.000000e+00 : f32
    %140 = vector.broadcast %cst_32 : f32 to vector<8x128xf32>
    %141 = arith.subf %140, %133 : vector<8x128xf32>
    %142 = arith.mulf %141, %139 : vector<8x128xf32>
    %143 = arith.mulf %133, %110 : vector<8x128xf32>
    %144 = arith.addf %142, %143 : vector<8x128xf32>
    %c3 = arith.constant 3 : index
    %c0_33 = arith.constant 0 : index
    %c0_34 = arith.constant 0 : index
    %145 = vector.load %arg12[%c3, %c0_33, %c0_34] : memref<8x8x128xf32, #tpu.memory_space<vmem>>, vector<1x8x128xf32>
    %146 = vector.shape_cast %145 : vector<1x8x128xf32> to vector<8x128xf32>
    %147 = vector.shape_cast %144 : vector<8x128xf32> to vector<1x8x128xf32>
    tpu.vector_store %arg12[%c3, %c0_33, %c0_34], %147 {strides = array<i32>} : memref<8x8x128xf32, #tpu.memory_space<vmem>>, vector<1x8x128xf32>,
    %148 = vector.extract_strided_slice %8 {offsets = [4, 0, 0], sizes = [1, 8, 384], strides = [1, 1, 1]} : vector<8x8x384xf32> to vector<1x8x384xf32>
    %149 = vector.shape_cast %148 : vector<1x8x384xf32> to vector<8x384xf32>
    %150 = arith.truncf %144 : vector<8x128xf32> to vector<8x128xbf16>
    %cst_35 = arith.constant dense<0.000000e+00> : vector<8x384xf32>
    %151 = tpu.matmul %150, %2, %cst_35 {dimension_numbers = #tpu.dot_dimension_numbers<[1], [0], [0], [1], [0, 0, 1, 1], [], []>} : vector<8x128xbf16>, vector<128x384xbf16>, vector<8x384xf32> -> vector<8x384xf32>
    %152 = vector.extract_strided_slice %149 {offsets = [0, 0], sizes = [8, 128], strides = [1, 1]} : vector<8x384xf32> to vector<8x128xf32>
    %153 = vector.extract_strided_slice %151 {offsets = [0, 0], sizes = [8, 128], strides = [1, 1]} : vector<8x384xf32> to vector<8x128xf32>
    %154 = arith.addf %152, %153 : vector<8x128xf32>
    %155 = arith.negf %154 : vector<8x128xf32>
    %156 = math.exp %155 : vector<8x128xf32>
    %cst_36 = arith.constant 1.000000e+00 : f32
    %157 = vector.broadcast %cst_36 : f32 to vector<8x128xf32>
    %158 = arith.addf %157, %156 : vector<8x128xf32>
    %159 = arith.divf %157, %158 : vector<8x128xf32>
    %160 = vector.extract_strided_slice %149 {offsets = [0, 128], sizes = [8, 128], strides = [1, 1]} : vector<8x384xf32> to vector<8x128xf32>
    %161 = vector.extract_strided_slice %151 {offsets = [0, 128], sizes = [8, 128], strides = [1, 1]} : vector<8x384xf32> to vector<8x128xf32>
    %162 = arith.addf %160, %161 : vector<8x128xf32>
    %163 = arith.negf %162 : vector<8x128xf32>
    %164 = math.exp %163 : vector<8x128xf32>
    %cst_37 = arith.constant 1.000000e+00 : f32
    %165 = vector.broadcast %cst_37 : f32 to vector<8x128xf32>
    %166 = arith.addf %165, %164 : vector<8x128xf32>
    %167 = arith.divf %165, %166 : vector<8x128xf32>
    %168 = vector.extract_strided_slice %149 {offsets = [0, 256], sizes = [8, 128], strides = [1, 1]} : vector<8x384xf32> to vector<8x128xf32>
    %169 = vector.extract_strided_slice %151 {offsets = [0, 256], sizes = [8, 128], strides = [1, 1]} : vector<8x384xf32> to vector<8x128xf32>
    %170 = arith.addf %169, %10 : vector<8x128xf32>
    %171 = arith.mulf %159, %170 : vector<8x128xf32>
    %172 = arith.addf %168, %171 : vector<8x128xf32>
    %173 = math.tanh %172 : vector<8x128xf32>
    %cst_38 = arith.constant 1.000000e+00 : f32
    %174 = vector.broadcast %cst_38 : f32 to vector<8x128xf32>
    %175 = arith.subf %174, %167 : vector<8x128xf32>
    %176 = arith.mulf %175, %173 : vector<8x128xf32>
    %177 = arith.mulf %167, %144 : vector<8x128xf32>
    %178 = arith.addf %176, %177 : vector<8x128xf32>
    %c4 = arith.constant 4 : index
    %c0_39 = arith.constant 0 : index
    %c0_40 = arith.constant 0 : index
    %179 = vector.load %arg12[%c4, %c0_39, %c0_40] : memref<8x8x128xf32, #tpu.memory_space<vmem>>, vector<1x8x128xf32>
    %180 = vector.shape_cast %179 : vector<1x8x128xf32> to vector<8x128xf32>
    %181 = vector.shape_cast %178 : vector<8x128xf32> to vector<1x8x128xf32>
    tpu.vector_store %arg12[%c4, %c0_39, %c0_40], %181 {strides = array<i32>} : memref<8x8x128xf32, #tpu.memory_space<vmem>>, vector<1x8x128xf32>,
    %182 = vector.extract_strided_slice %8 {offsets = [5, 0, 0], sizes = [1, 8, 384], strides = [1, 1, 1]} : vector<8x8x384xf32> to vector<1x8x384xf32>
    %183 = vector.shape_cast %182 : vector<1x8x384xf32> to vector<8x384xf32>
    %184 = arith.truncf %178 : vector<8x128xf32> to vector<8x128xbf16>
    %cst_41 = arith.constant dense<0.000000e+00> : vector<8x384xf32>
    %185 = tpu.matmul %184, %2, %cst_41 {dimension_numbers = #tpu.dot_dimension_numbers<[1], [0], [0], [1], [0, 0, 1, 1], [], []>} : vector<8x128xbf16>, vector<128x384xbf16>, vector<8x384xf32> -> vector<8x384xf32>
    %186 = vector.extract_strided_slice %183 {offsets = [0, 0], sizes = [8, 128], strides = [1, 1]} : vector<8x384xf32> to vector<8x128xf32>
    %187 = vector.extract_strided_slice %185 {offsets = [0, 0], sizes = [8, 128], strides = [1, 1]} : vector<8x384xf32> to vector<8x128xf32>
    %188 = arith.addf %186, %187 : vector<8x128xf32>
    %189 = arith.negf %188 : vector<8x128xf32>
    %190 = math.exp %189 : vector<8x128xf32>
    %cst_42 = arith.constant 1.000000e+00 : f32
    %191 = vector.broadcast %cst_42 : f32 to vector<8x128xf32>
    %192 = arith.addf %191, %190 : vector<8x128xf32>
    %193 = arith.divf %191, %192 : vector<8x128xf32>
    %194 = vector.extract_strided_slice %183 {offsets = [0, 128], sizes = [8, 128], strides = [1, 1]} : vector<8x384xf32> to vector<8x128xf32>
    %195 = vector.extract_strided_slice %185 {offsets = [0, 128], sizes = [8, 128], strides = [1, 1]} : vector<8x384xf32> to vector<8x128xf32>
    %196 = arith.addf %194, %195 : vector<8x128xf32>
    %197 = arith.negf %196 : vector<8x128xf32>
    %198 = math.exp %197 : vector<8x128xf32>
    %cst_43 = arith.constant 1.000000e+00 : f32
    %199 = vector.broadcast %cst_43 : f32 to vector<8x128xf32>
    %200 = arith.addf %199, %198 : vector<8x128xf32>
    %201 = arith.divf %199, %200 : vector<8x128xf32>
    %202 = vector.extract_strided_slice %183 {offsets = [0, 256], sizes = [8, 128], strides = [1, 1]} : vector<8x384xf32> to vector<8x128xf32>
    %203 = vector.extract_strided_slice %185 {offsets = [0, 256], sizes = [8, 128], strides = [1, 1]} : vector<8x384xf32> to vector<8x128xf32>
    %204 = arith.addf %203, %10 : vector<8x128xf32>
    %205 = arith.mulf %193, %204 : vector<8x128xf32>
    %206 = arith.addf %202, %205 : vector<8x128xf32>
    %207 = math.tanh %206 : vector<8x128xf32>
    %cst_44 = arith.constant 1.000000e+00 : f32
    %208 = vector.broadcast %cst_44 : f32 to vector<8x128xf32>
    %209 = arith.subf %208, %201 : vector<8x128xf32>
    %210 = arith.mulf %209, %207 : vector<8x128xf32>
    %211 = arith.mulf %201, %178 : vector<8x128xf32>
    %212 = arith.addf %210, %211 : vector<8x128xf32>
    %c5 = arith.constant 5 : index
    %c0_45 = arith.constant 0 : index
    %c0_46 = arith.constant 0 : index
    %213 = vector.load %arg12[%c5, %c0_45, %c0_46] : memref<8x8x128xf32, #tpu.memory_space<vmem>>, vector<1x8x128xf32>
    %214 = vector.shape_cast %213 : vector<1x8x128xf32> to vector<8x128xf32>
    %215 = vector.shape_cast %212 : vector<8x128xf32> to vector<1x8x128xf32>
    tpu.vector_store %arg12[%c5, %c0_45, %c0_46], %215 {strides = array<i32>} : memref<8x8x128xf32, #tpu.memory_space<vmem>>, vector<1x8x128xf32>,
    %216 = vector.extract_strided_slice %8 {offsets = [6, 0, 0], sizes = [1, 8, 384], strides = [1, 1, 1]} : vector<8x8x384xf32> to vector<1x8x384xf32>
    %217 = vector.shape_cast %216 : vector<1x8x384xf32> to vector<8x384xf32>
    %218 = arith.truncf %212 : vector<8x128xf32> to vector<8x128xbf16>
    %cst_47 = arith.constant dense<0.000000e+00> : vector<8x384xf32>
    %219 = tpu.matmul %218, %2, %cst_47 {dimension_numbers = #tpu.dot_dimension_numbers<[1], [0], [0], [1], [0, 0, 1, 1], [], []>} : vector<8x128xbf16>, vector<128x384xbf16>, vector<8x384xf32> -> vector<8x384xf32>
    %220 = vector.extract_strided_slice %217 {offsets = [0, 0], sizes = [8, 128], strides = [1, 1]} : vector<8x384xf32> to vector<8x128xf32>
    %221 = vector.extract_strided_slice %219 {offsets = [0, 0], sizes = [8, 128], strides = [1, 1]} : vector<8x384xf32> to vector<8x128xf32>
    %222 = arith.addf %220, %221 : vector<8x128xf32>
    %223 = arith.negf %222 : vector<8x128xf32>
    %224 = math.exp %223 : vector<8x128xf32>
    %cst_48 = arith.constant 1.000000e+00 : f32
    %225 = vector.broadcast %cst_48 : f32 to vector<8x128xf32>
    %226 = arith.addf %225, %224 : vector<8x128xf32>
    %227 = arith.divf %225, %226 : vector<8x128xf32>
    %228 = vector.extract_strided_slice %217 {offsets = [0, 128], sizes = [8, 128], strides = [1, 1]} : vector<8x384xf32> to vector<8x128xf32>
    %229 = vector.extract_strided_slice %219 {offsets = [0, 128], sizes = [8, 128], strides = [1, 1]} : vector<8x384xf32> to vector<8x128xf32>
    %230 = arith.addf %228, %229 : vector<8x128xf32>
    %231 = arith.negf %230 : vector<8x128xf32>
    %232 = math.exp %231 : vector<8x128xf32>
    %cst_49 = arith.constant 1.000000e+00 : f32
    %233 = vector.broadcast %cst_49 : f32 to vector<8x128xf32>
    %234 = arith.addf %233, %232 : vector<8x128xf32>
    %235 = arith.divf %233, %234 : vector<8x128xf32>
    %236 = vector.extract_strided_slice %217 {offsets = [0, 256], sizes = [8, 128], strides = [1, 1]} : vector<8x384xf32> to vector<8x128xf32>
    %237 = vector.extract_strided_slice %219 {offsets = [0, 256], sizes = [8, 128], strides = [1, 1]} : vector<8x384xf32> to vector<8x128xf32>
    %238 = arith.addf %237, %10 : vector<8x128xf32>
    %239 = arith.mulf %227, %238 : vector<8x128xf32>
    %240 = arith.addf %236, %239 : vector<8x128xf32>
    %241 = math.tanh %240 : vector<8x128xf32>
    %cst_50 = arith.constant 1.000000e+00 : f32
    %242 = vector.broadcast %cst_50 : f32 to vector<8x128xf32>
    %243 = arith.subf %242, %235 : vector<8x128xf32>
    %244 = arith.mulf %243, %241 : vector<8x128xf32>
    %245 = arith.mulf %235, %212 : vector<8x128xf32>
    %246 = arith.addf %244, %245 : vector<8x128xf32>
    %c6 = arith.constant 6 : index
    %c0_51 = arith.constant 0 : index
    %c0_52 = arith.constant 0 : index
    %247 = vector.load %arg12[%c6, %c0_51, %c0_52] : memref<8x8x128xf32, #tpu.memory_space<vmem>>, vector<1x8x128xf32>
    %248 = vector.shape_cast %247 : vector<1x8x128xf32> to vector<8x128xf32>
    %249 = vector.shape_cast %246 : vector<8x128xf32> to vector<1x8x128xf32>
    tpu.vector_store %arg12[%c6, %c0_51, %c0_52], %249 {strides = array<i32>} : memref<8x8x128xf32, #tpu.memory_space<vmem>>, vector<1x8x128xf32>,
    %250 = vector.extract_strided_slice %8 {offsets = [7, 0, 0], sizes = [1, 8, 384], strides = [1, 1, 1]} : vector<8x8x384xf32> to vector<1x8x384xf32>
    %251 = vector.shape_cast %250 : vector<1x8x384xf32> to vector<8x384xf32>
    %252 = arith.truncf %246 : vector<8x128xf32> to vector<8x128xbf16>
    %cst_53 = arith.constant dense<0.000000e+00> : vector<8x384xf32>
    %253 = tpu.matmul %252, %2, %cst_53 {dimension_numbers = #tpu.dot_dimension_numbers<[1], [0], [0], [1], [0, 0, 1, 1], [], []>} : vector<8x128xbf16>, vector<128x384xbf16>, vector<8x384xf32> -> vector<8x384xf32>
    %254 = vector.extract_strided_slice %251 {offsets = [0, 0], sizes = [8, 128], strides = [1, 1]} : vector<8x384xf32> to vector<8x128xf32>
    %255 = vector.extract_strided_slice %253 {offsets = [0, 0], sizes = [8, 128], strides = [1, 1]} : vector<8x384xf32> to vector<8x128xf32>
    %256 = arith.addf %254, %255 : vector<8x128xf32>
    %257 = arith.negf %256 : vector<8x128xf32>
    %258 = math.exp %257 : vector<8x128xf32>
    %cst_54 = arith.constant 1.000000e+00 : f32
    %259 = vector.broadcast %cst_54 : f32 to vector<8x128xf32>
    %260 = arith.addf %259, %258 : vector<8x128xf32>
    %261 = arith.divf %259, %260 : vector<8x128xf32>
    %262 = vector.extract_strided_slice %251 {offsets = [0, 128], sizes = [8, 128], strides = [1, 1]} : vector<8x384xf32> to vector<8x128xf32>
    %263 = vector.extract_strided_slice %253 {offsets = [0, 128], sizes = [8, 128], strides = [1, 1]} : vector<8x384xf32> to vector<8x128xf32>
    %264 = arith.addf %262, %263 : vector<8x128xf32>
    %265 = arith.negf %264 : vector<8x128xf32>
    %266 = math.exp %265 : vector<8x128xf32>
    %cst_55 = arith.constant 1.000000e+00 : f32
    %267 = vector.broadcast %cst_55 : f32 to vector<8x128xf32>
    %268 = arith.addf %267, %266 : vector<8x128xf32>
    %269 = arith.divf %267, %268 : vector<8x128xf32>
    %270 = vector.extract_strided_slice %251 {offsets = [0, 256], sizes = [8, 128], strides = [1, 1]} : vector<8x384xf32> to vector<8x128xf32>
    %271 = vector.extract_strided_slice %253 {offsets = [0, 256], sizes = [8, 128], strides = [1, 1]} : vector<8x384xf32> to vector<8x128xf32>
    %272 = arith.addf %271, %10 : vector<8x128xf32>
    %273 = arith.mulf %261, %272 : vector<8x128xf32>
    %274 = arith.addf %270, %273 : vector<8x128xf32>
    %275 = math.tanh %274 : vector<8x128xf32>
    %cst_56 = arith.constant 1.000000e+00 : f32
    %276 = vector.broadcast %cst_56 : f32 to vector<8x128xf32>
    %277 = arith.subf %276, %269 : vector<8x128xf32>
    %278 = arith.mulf %277, %275 : vector<8x128xf32>
    %279 = arith.mulf %269, %246 : vector<8x128xf32>
    %280 = arith.addf %278, %279 : vector<8x128xf32>
    %c7 = arith.constant 7 : index
    %c0_57 = arith.constant 0 : index
    %c0_58 = arith.constant 0 : index
    %281 = vector.load %arg12[%c7, %c0_57, %c0_58] : memref<8x8x128xf32, #tpu.memory_space<vmem>>, vector<1x8x128xf32>
    %282 = vector.shape_cast %281 : vector<1x8x128xf32> to vector<8x128xf32>
    %283 = vector.shape_cast %280 : vector<8x128xf32> to vector<1x8x128xf32>
    tpu.vector_store %arg12[%c7, %c0_57, %c0_58], %283 {strides = array<i32>} : memref<8x8x128xf32, #tpu.memory_space<vmem>>, vector<1x8x128xf32>,
    %c0_59 = arith.constant 0 : index
    %c0_60 = arith.constant 0 : index
    %c0_61 = arith.constant 0 : index
    %284 = vector.load %arg12[%c0_59, %c0_60, %c0_61] : memref<8x8x128xf32, #tpu.memory_space<vmem>>, vector<8x8x128xf32>
    %285 = vector.shape_cast %284 : vector<8x8x128xf32> to vector<64x128xf32>
    %286 = arith.truncf %285 : vector<64x128xf32> to vector<64x128xbf16>
    %c0_62 = arith.constant 0 : index
    %c0_63 = arith.constant 0 : index
    %287 = vector.load %arg5[%c0_62, %c0_63] : memref<128x384xbf16, #tpu.memory_space<vmem>>, vector<128x384xbf16>
    %c0_64 = arith.constant 0 : index
    %c0_65 = arith.constant 0 : index
    %288 = vector.load %arg6[%c0_64, %c0_65] : memref<128x384xbf16, #tpu.memory_space<vmem>>, vector<128x384xbf16>
    %c0_66 = arith.constant 0 : index
    %c0_67 = arith.constant 0 : index
    %289 = vector.load %arg7[%c0_66, %c0_67] : memref<1x384xf32, #tpu.memory_space<vmem>>, vector<1x384xf32>
    %c0_68 = arith.constant 0 : index
    %c0_69 = arith.constant 0 : index
    %290 = vector.load %arg8[%c0_68, %c0_69] : memref<1x128xf32, #tpu.memory_space<vmem>>, vector<1x128xf32>
    %cst_70 = arith.constant dense<0.000000e+00> : vector<64x384xf32>
    %291 = tpu.matmul %286, %287, %cst_70 {dimension_numbers = #tpu.dot_dimension_numbers<[1], [0], [0], [1], [0, 0, 1, 1], [], []>} : vector<64x128xbf16>, vector<128x384xbf16>, vector<64x384xf32> -> vector<64x384xf32>
    %292 = vector.broadcast %289 : vector<1x384xf32> to vector<64x384xf32>
    %293 = arith.addf %291, %292 : vector<64x384xf32>
    %294 = vector.shape_cast %293 : vector<64x384xf32> to vector<8x8x384xf32>
    %295 = vector.shape_cast %290 : vector<1x128xf32> to vector<1x128xf32>
    %296 = vector.broadcast %295 : vector<1x128xf32> to vector<8x128xf32>
    %cst_71 = arith.constant 0.000000e+00 : f32
    %297 = vector.broadcast %cst_71 : f32 to vector<8x128xf32>
    %298 = vector.extract_strided_slice %294 {offsets = [0, 0, 0], sizes = [1, 8, 384], strides = [1, 1, 1]} : vector<8x8x384xf32> to vector<1x8x384xf32>
    %299 = vector.shape_cast %298 : vector<1x8x384xf32> to vector<8x384xf32>
    %300 = arith.truncf %297 : vector<8x128xf32> to vector<8x128xbf16>
    %cst_72 = arith.constant dense<0.000000e+00> : vector<8x384xf32>
    %301 = tpu.matmul %300, %288, %cst_72 {dimension_numbers = #tpu.dot_dimension_numbers<[1], [0], [0], [1], [0, 0, 1, 1], [], []>} : vector<8x128xbf16>, vector<128x384xbf16>, vector<8x384xf32> -> vector<8x384xf32>
    %302 = vector.extract_strided_slice %299 {offsets = [0, 0], sizes = [8, 128], strides = [1, 1]} : vector<8x384xf32> to vector<8x128xf32>
    %303 = vector.extract_strided_slice %301 {offsets = [0, 0], sizes = [8, 128], strides = [1, 1]} : vector<8x384xf32> to vector<8x128xf32>
    %304 = arith.addf %302, %303 : vector<8x128xf32>
    %305 = arith.negf %304 : vector<8x128xf32>
    %306 = math.exp %305 : vector<8x128xf32>
    %cst_73 = arith.constant 1.000000e+00 : f32
    %307 = vector.broadcast %cst_73 : f32 to vector<8x128xf32>
    %308 = arith.addf %307, %306 : vector<8x128xf32>
    %309 = arith.divf %307, %308 : vector<8x128xf32>
    %310 = vector.extract_strided_slice %299 {offsets = [0, 128], sizes = [8, 128], strides = [1, 1]} : vector<8x384xf32> to vector<8x128xf32>
    %311 = vector.extract_strided_slice %301 {offsets = [0, 128], sizes = [8, 128], strides = [1, 1]} : vector<8x384xf32> to vector<8x128xf32>
    %312 = arith.addf %310, %311 : vector<8x128xf32>
    %313 = arith.negf %312 : vector<8x128xf32>
    %314 = math.exp %313 : vector<8x128xf32>
    %cst_74 = arith.constant 1.000000e+00 : f32
    %315 = vector.broadcast %cst_74 : f32 to vector<8x128xf32>
    %316 = arith.addf %315, %314 : vector<8x128xf32>
    %317 = arith.divf %315, %316 : vector<8x128xf32>
    %318 = vector.extract_strided_slice %299 {offsets = [0, 256], sizes = [8, 128], strides = [1, 1]} : vector<8x384xf32> to vector<8x128xf32>
    %319 = vector.extract_strided_slice %301 {offsets = [0, 256], sizes = [8, 128], strides = [1, 1]} : vector<8x384xf32> to vector<8x128xf32>
    %320 = arith.addf %319, %296 : vector<8x128xf32>
    %321 = arith.mulf %309, %320 : vector<8x128xf32>
    %322 = arith.addf %318, %321 : vector<8x128xf32>
    %323 = math.tanh %322 : vector<8x128xf32>
    %cst_75 = arith.constant 1.000000e+00 : f32
    %324 = vector.broadcast %cst_75 : f32 to vector<8x128xf32>
    %325 = arith.subf %324, %317 : vector<8x128xf32>
    %326 = arith.mulf %325, %323 : vector<8x128xf32>
    %327 = arith.mulf %317, %297 : vector<8x128xf32>
    %328 = arith.addf %326, %327 : vector<8x128xf32>
    %c0_76 = arith.constant 0 : index
    %c0_77 = arith.constant 0 : index
    %c0_78 = arith.constant 0 : index
    %329 = vector.load %arg12[%c0_76, %c0_77, %c0_78] : memref<8x8x128xf32, #tpu.memory_space<vmem>>, vector<1x8x128xf32>
    %330 = vector.shape_cast %329 : vector<1x8x128xf32> to vector<8x128xf32>
    %331 = vector.shape_cast %328 : vector<8x128xf32> to vector<1x8x128xf32>
    tpu.vector_store %arg12[%c0_76, %c0_77, %c0_78], %331 {strides = array<i32>} : memref<8x8x128xf32, #tpu.memory_space<vmem>>, vector<1x8x128xf32>,
    %332 = vector.extract_strided_slice %294 {offsets = [1, 0, 0], sizes = [1, 8, 384], strides = [1, 1, 1]} : vector<8x8x384xf32> to vector<1x8x384xf32>
    %333 = vector.shape_cast %332 : vector<1x8x384xf32> to vector<8x384xf32>
    %334 = arith.truncf %328 : vector<8x128xf32> to vector<8x128xbf16>
    %cst_79 = arith.constant dense<0.000000e+00> : vector<8x384xf32>
    %335 = tpu.matmul %334, %288, %cst_79 {dimension_numbers = #tpu.dot_dimension_numbers<[1], [0], [0], [1], [0, 0, 1, 1], [], []>} : vector<8x128xbf16>, vector<128x384xbf16>, vector<8x384xf32> -> vector<8x384xf32>
    %336 = vector.extract_strided_slice %333 {offsets = [0, 0], sizes = [8, 128], strides = [1, 1]} : vector<8x384xf32> to vector<8x128xf32>
    %337 = vector.extract_strided_slice %335 {offsets = [0, 0], sizes = [8, 128], strides = [1, 1]} : vector<8x384xf32> to vector<8x128xf32>
    %338 = arith.addf %336, %337 : vector<8x128xf32>
    %339 = arith.negf %338 : vector<8x128xf32>
    %340 = math.exp %339 : vector<8x128xf32>
    %cst_80 = arith.constant 1.000000e+00 : f32
    %341 = vector.broadcast %cst_80 : f32 to vector<8x128xf32>
    %342 = arith.addf %341, %340 : vector<8x128xf32>
    %343 = arith.divf %341, %342 : vector<8x128xf32>
    %344 = vector.extract_strided_slice %333 {offsets = [0, 128], sizes = [8, 128], strides = [1, 1]} : vector<8x384xf32> to vector<8x128xf32>
    %345 = vector.extract_strided_slice %335 {offsets = [0, 128], sizes = [8, 128], strides = [1, 1]} : vector<8x384xf32> to vector<8x128xf32>
    %346 = arith.addf %344, %345 : vector<8x128xf32>
    %347 = arith.negf %346 : vector<8x128xf32>
    %348 = math.exp %347 : vector<8x128xf32>
    %cst_81 = arith.constant 1.000000e+00 : f32
    %349 = vector.broadcast %cst_81 : f32 to vector<8x128xf32>
    %350 = arith.addf %349, %348 : vector<8x128xf32>
    %351 = arith.divf %349, %350 : vector<8x128xf32>
    %352 = vector.extract_strided_slice %333 {offsets = [0, 256], sizes = [8, 128], strides = [1, 1]} : vector<8x384xf32> to vector<8x128xf32>
    %353 = vector.extract_strided_slice %335 {offsets = [0, 256], sizes = [8, 128], strides = [1, 1]} : vector<8x384xf32> to vector<8x128xf32>
    %354 = arith.addf %353, %296 : vector<8x128xf32>
    %355 = arith.mulf %343, %354 : vector<8x128xf32>
    %356 = arith.addf %352, %355 : vector<8x128xf32>
    %357 = math.tanh %356 : vector<8x128xf32>
    %cst_82 = arith.constant 1.000000e+00 : f32
    %358 = vector.broadcast %cst_82 : f32 to vector<8x128xf32>
    %359 = arith.subf %358, %351 : vector<8x128xf32>
    %360 = arith.mulf %359, %357 : vector<8x128xf32>
    %361 = arith.mulf %351, %328 : vector<8x128xf32>
    %362 = arith.addf %360, %361 : vector<8x128xf32>
    %c1_83 = arith.constant 1 : index
    %c0_84 = arith.constant 0 : index
    %c0_85 = arith.constant 0 : index
    %363 = vector.load %arg12[%c1_83, %c0_84, %c0_85] : memref<8x8x128xf32, #tpu.memory_space<vmem>>, vector<1x8x128xf32>
    %364 = vector.shape_cast %363 : vector<1x8x128xf32> to vector<8x128xf32>
    %365 = vector.shape_cast %362 : vector<8x128xf32> to vector<1x8x128xf32>
    tpu.vector_store %arg12[%c1_83, %c0_84, %c0_85], %365 {strides = array<i32>} : memref<8x8x128xf32, #tpu.memory_space<vmem>>, vector<1x8x128xf32>,
    %366 = vector.extract_strided_slice %294 {offsets = [2, 0, 0], sizes = [1, 8, 384], strides = [1, 1, 1]} : vector<8x8x384xf32> to vector<1x8x384xf32>
    %367 = vector.shape_cast %366 : vector<1x8x384xf32> to vector<8x384xf32>
    %368 = arith.truncf %362 : vector<8x128xf32> to vector<8x128xbf16>
    %cst_86 = arith.constant dense<0.000000e+00> : vector<8x384xf32>
    %369 = tpu.matmul %368, %288, %cst_86 {dimension_numbers = #tpu.dot_dimension_numbers<[1], [0], [0], [1], [0, 0, 1, 1], [], []>} : vector<8x128xbf16>, vector<128x384xbf16>, vector<8x384xf32> -> vector<8x384xf32>
    %370 = vector.extract_strided_slice %367 {offsets = [0, 0], sizes = [8, 128], strides = [1, 1]} : vector<8x384xf32> to vector<8x128xf32>
    %371 = vector.extract_strided_slice %369 {offsets = [0, 0], sizes = [8, 128], strides = [1, 1]} : vector<8x384xf32> to vector<8x128xf32>
    %372 = arith.addf %370, %371 : vector<8x128xf32>
    %373 = arith.negf %372 : vector<8x128xf32>
    %374 = math.exp %373 : vector<8x128xf32>
    %cst_87 = arith.constant 1.000000e+00 : f32
    %375 = vector.broadcast %cst_87 : f32 to vector<8x128xf32>
    %376 = arith.addf %375, %374 : vector<8x128xf32>
    %377 = arith.divf %375, %376 : vector<8x128xf32>
    %378 = vector.extract_strided_slice %367 {offsets = [0, 128], sizes = [8, 128], strides = [1, 1]} : vector<8x384xf32> to vector<8x128xf32>
    %379 = vector.extract_strided_slice %369 {offsets = [0, 128], sizes = [8, 128], strides = [1, 1]} : vector<8x384xf32> to vector<8x128xf32>
    %380 = arith.addf %378, %379 : vector<8x128xf32>
    %381 = arith.negf %380 : vector<8x128xf32>
    %382 = math.exp %381 : vector<8x128xf32>
    %cst_88 = arith.constant 1.000000e+00 : f32
    %383 = vector.broadcast %cst_88 : f32 to vector<8x128xf32>
    %384 = arith.addf %383, %382 : vector<8x128xf32>
    %385 = arith.divf %383, %384 : vector<8x128xf32>
    %386 = vector.extract_strided_slice %367 {offsets = [0, 256], sizes = [8, 128], strides = [1, 1]} : vector<8x384xf32> to vector<8x128xf32>
    %387 = vector.extract_strided_slice %369 {offsets = [0, 256], sizes = [8, 128], strides = [1, 1]} : vector<8x384xf32> to vector<8x128xf32>
    %388 = arith.addf %387, %296 : vector<8x128xf32>
    %389 = arith.mulf %377, %388 : vector<8x128xf32>
    %390 = arith.addf %386, %389 : vector<8x128xf32>
    %391 = math.tanh %390 : vector<8x128xf32>
    %cst_89 = arith.constant 1.000000e+00 : f32
    %392 = vector.broadcast %cst_89 : f32 to vector<8x128xf32>
    %393 = arith.subf %392, %385 : vector<8x128xf32>
    %394 = arith.mulf %393, %391 : vector<8x128xf32>
    %395 = arith.mulf %385, %362 : vector<8x128xf32>
    %396 = arith.addf %394, %395 : vector<8x128xf32>
    %c2_90 = arith.constant 2 : index
    %c0_91 = arith.constant 0 : index
    %c0_92 = arith.constant 0 : index
    %397 = vector.load %arg12[%c2_90, %c0_91, %c0_92] : memref<8x8x128xf32, #tpu.memory_space<vmem>>, vector<1x8x128xf32>
    %398 = vector.shape_cast %397 : vector<1x8x128xf32> to vector<8x128xf32>
    %399 = vector.shape_cast %396 : vector<8x128xf32> to vector<1x8x128xf32>
    tpu.vector_store %arg12[%c2_90, %c0_91, %c0_92], %399 {strides = array<i32>} : memref<8x8x128xf32, #tpu.memory_space<vmem>>, vector<1x8x128xf32>,
    %400 = vector.extract_strided_slice %294 {offsets = [3, 0, 0], sizes = [1, 8, 384], strides = [1, 1, 1]} : vector<8x8x384xf32> to vector<1x8x384xf32>
    %401 = vector.shape_cast %400 : vector<1x8x384xf32> to vector<8x384xf32>
    %402 = arith.truncf %396 : vector<8x128xf32> to vector<8x128xbf16>
    %cst_93 = arith.constant dense<0.000000e+00> : vector<8x384xf32>
    %403 = tpu.matmul %402, %288, %cst_93 {dimension_numbers = #tpu.dot_dimension_numbers<[1], [0], [0], [1], [0, 0, 1, 1], [], []>} : vector<8x128xbf16>, vector<128x384xbf16>, vector<8x384xf32> -> vector<8x384xf32>
    %404 = vector.extract_strided_slice %401 {offsets = [0, 0], sizes = [8, 128], strides = [1, 1]} : vector<8x384xf32> to vector<8x128xf32>
    %405 = vector.extract_strided_slice %403 {offsets = [0, 0], sizes = [8, 128], strides = [1, 1]} : vector<8x384xf32> to vector<8x128xf32>
    %406 = arith.addf %404, %405 : vector<8x128xf32>
    %407 = arith.negf %406 : vector<8x128xf32>
    %408 = math.exp %407 : vector<8x128xf32>
    %cst_94 = arith.constant 1.000000e+00 : f32
    %409 = vector.broadcast %cst_94 : f32 to vector<8x128xf32>
    %410 = arith.addf %409, %408 : vector<8x128xf32>
    %411 = arith.divf %409, %410 : vector<8x128xf32>
    %412 = vector.extract_strided_slice %401 {offsets = [0, 128], sizes = [8, 128], strides = [1, 1]} : vector<8x384xf32> to vector<8x128xf32>
    %413 = vector.extract_strided_slice %403 {offsets = [0, 128], sizes = [8, 128], strides = [1, 1]} : vector<8x384xf32> to vector<8x128xf32>
    %414 = arith.addf %412, %413 : vector<8x128xf32>
    %415 = arith.negf %414 : vector<8x128xf32>
    %416 = math.exp %415 : vector<8x128xf32>
    %cst_95 = arith.constant 1.000000e+00 : f32
    %417 = vector.broadcast %cst_95 : f32 to vector<8x128xf32>
    %418 = arith.addf %417, %416 : vector<8x128xf32>
    %419 = arith.divf %417, %418 : vector<8x128xf32>
    %420 = vector.extract_strided_slice %401 {offsets = [0, 256], sizes = [8, 128], strides = [1, 1]} : vector<8x384xf32> to vector<8x128xf32>
    %421 = vector.extract_strided_slice %403 {offsets = [0, 256], sizes = [8, 128], strides = [1, 1]} : vector<8x384xf32> to vector<8x128xf32>
    %422 = arith.addf %421, %296 : vector<8x128xf32>
    %423 = arith.mulf %411, %422 : vector<8x128xf32>
    %424 = arith.addf %420, %423 : vector<8x128xf32>
    %425 = math.tanh %424 : vector<8x128xf32>
    %cst_96 = arith.constant 1.000000e+00 : f32
    %426 = vector.broadcast %cst_96 : f32 to vector<8x128xf32>
    %427 = arith.subf %426, %419 : vector<8x128xf32>
    %428 = arith.mulf %427, %425 : vector<8x128xf32>
    %429 = arith.mulf %419, %396 : vector<8x128xf32>
    %430 = arith.addf %428, %429 : vector<8x128xf32>
    %c3_97 = arith.constant 3 : index
    %c0_98 = arith.constant 0 : index
    %c0_99 = arith.constant 0 : index
    %431 = vector.load %arg12[%c3_97, %c0_98, %c0_99] : memref<8x8x128xf32, #tpu.memory_space<vmem>>, vector<1x8x128xf32>
    %432 = vector.shape_cast %431 : vector<1x8x128xf32> to vector<8x128xf32>
    %433 = vector.shape_cast %430 : vector<8x128xf32> to vector<1x8x128xf32>
    tpu.vector_store %arg12[%c3_97, %c0_98, %c0_99], %433 {strides = array<i32>} : memref<8x8x128xf32, #tpu.memory_space<vmem>>, vector<1x8x128xf32>,
    %434 = vector.extract_strided_slice %294 {offsets = [4, 0, 0], sizes = [1, 8, 384], strides = [1, 1, 1]} : vector<8x8x384xf32> to vector<1x8x384xf32>
    %435 = vector.shape_cast %434 : vector<1x8x384xf32> to vector<8x384xf32>
    %436 = arith.truncf %430 : vector<8x128xf32> to vector<8x128xbf16>
    %cst_100 = arith.constant dense<0.000000e+00> : vector<8x384xf32>
    %437 = tpu.matmul %436, %288, %cst_100 {dimension_numbers = #tpu.dot_dimension_numbers<[1], [0], [0], [1], [0, 0, 1, 1], [], []>} : vector<8x128xbf16>, vector<128x384xbf16>, vector<8x384xf32> -> vector<8x384xf32>
    %438 = vector.extract_strided_slice %435 {offsets = [0, 0], sizes = [8, 128], strides = [1, 1]} : vector<8x384xf32> to vector<8x128xf32>
    %439 = vector.extract_strided_slice %437 {offsets = [0, 0], sizes = [8, 128], strides = [1, 1]} : vector<8x384xf32> to vector<8x128xf32>
    %440 = arith.addf %438, %439 : vector<8x128xf32>
    %441 = arith.negf %440 : vector<8x128xf32>
    %442 = math.exp %441 : vector<8x128xf32>
    %cst_101 = arith.constant 1.000000e+00 : f32
    %443 = vector.broadcast %cst_101 : f32 to vector<8x128xf32>
    %444 = arith.addf %443, %442 : vector<8x128xf32>
    %445 = arith.divf %443, %444 : vector<8x128xf32>
    %446 = vector.extract_strided_slice %435 {offsets = [0, 128], sizes = [8, 128], strides = [1, 1]} : vector<8x384xf32> to vector<8x128xf32>
    %447 = vector.extract_strided_slice %437 {offsets = [0, 128], sizes = [8, 128], strides = [1, 1]} : vector<8x384xf32> to vector<8x128xf32>
    %448 = arith.addf %446, %447 : vector<8x128xf32>
    %449 = arith.negf %448 : vector<8x128xf32>
    %450 = math.exp %449 : vector<8x128xf32>
    %cst_102 = arith.constant 1.000000e+00 : f32
    %451 = vector.broadcast %cst_102 : f32 to vector<8x128xf32>
    %452 = arith.addf %451, %450 : vector<8x128xf32>
    %453 = arith.divf %451, %452 : vector<8x128xf32>
    %454 = vector.extract_strided_slice %435 {offsets = [0, 256], sizes = [8, 128], strides = [1, 1]} : vector<8x384xf32> to vector<8x128xf32>
    %455 = vector.extract_strided_slice %437 {offsets = [0, 256], sizes = [8, 128], strides = [1, 1]} : vector<8x384xf32> to vector<8x128xf32>
    %456 = arith.addf %455, %296 : vector<8x128xf32>
    %457 = arith.mulf %445, %456 : vector<8x128xf32>
    %458 = arith.addf %454, %457 : vector<8x128xf32>
    %459 = math.tanh %458 : vector<8x128xf32>
    %cst_103 = arith.constant 1.000000e+00 : f32
    %460 = vector.broadcast %cst_103 : f32 to vector<8x128xf32>
    %461 = arith.subf %460, %453 : vector<8x128xf32>
    %462 = arith.mulf %461, %459 : vector<8x128xf32>
    %463 = arith.mulf %453, %430 : vector<8x128xf32>
    %464 = arith.addf %462, %463 : vector<8x128xf32>
    %c4_104 = arith.constant 4 : index
    %c0_105 = arith.constant 0 : index
    %c0_106 = arith.constant 0 : index
    %465 = vector.load %arg12[%c4_104, %c0_105, %c0_106] : memref<8x8x128xf32, #tpu.memory_space<vmem>>, vector<1x8x128xf32>
    %466 = vector.shape_cast %465 : vector<1x8x128xf32> to vector<8x128xf32>
    %467 = vector.shape_cast %464 : vector<8x128xf32> to vector<1x8x128xf32>
    tpu.vector_store %arg12[%c4_104, %c0_105, %c0_106], %467 {strides = array<i32>} : memref<8x8x128xf32, #tpu.memory_space<vmem>>, vector<1x8x128xf32>,
    %468 = vector.extract_strided_slice %294 {offsets = [5, 0, 0], sizes = [1, 8, 384], strides = [1, 1, 1]} : vector<8x8x384xf32> to vector<1x8x384xf32>
    %469 = vector.shape_cast %468 : vector<1x8x384xf32> to vector<8x384xf32>
    %470 = arith.truncf %464 : vector<8x128xf32> to vector<8x128xbf16>
    %cst_107 = arith.constant dense<0.000000e+00> : vector<8x384xf32>
    %471 = tpu.matmul %470, %288, %cst_107 {dimension_numbers = #tpu.dot_dimension_numbers<[1], [0], [0], [1], [0, 0, 1, 1], [], []>} : vector<8x128xbf16>, vector<128x384xbf16>, vector<8x384xf32> -> vector<8x384xf32>
    %472 = vector.extract_strided_slice %469 {offsets = [0, 0], sizes = [8, 128], strides = [1, 1]} : vector<8x384xf32> to vector<8x128xf32>
    %473 = vector.extract_strided_slice %471 {offsets = [0, 0], sizes = [8, 128], strides = [1, 1]} : vector<8x384xf32> to vector<8x128xf32>
    %474 = arith.addf %472, %473 : vector<8x128xf32>
    %475 = arith.negf %474 : vector<8x128xf32>
    %476 = math.exp %475 : vector<8x128xf32>
    %cst_108 = arith.constant 1.000000e+00 : f32
    %477 = vector.broadcast %cst_108 : f32 to vector<8x128xf32>
    %478 = arith.addf %477, %476 : vector<8x128xf32>
    %479 = arith.divf %477, %478 : vector<8x128xf32>
    %480 = vector.extract_strided_slice %469 {offsets = [0, 128], sizes = [8, 128], strides = [1, 1]} : vector<8x384xf32> to vector<8x128xf32>
    %481 = vector.extract_strided_slice %471 {offsets = [0, 128], sizes = [8, 128], strides = [1, 1]} : vector<8x384xf32> to vector<8x128xf32>
    %482 = arith.addf %480, %481 : vector<8x128xf32>
    %483 = arith.negf %482 : vector<8x128xf32>
    %484 = math.exp %483 : vector<8x128xf32>
    %cst_109 = arith.constant 1.000000e+00 : f32
    %485 = vector.broadcast %cst_109 : f32 to vector<8x128xf32>
    %486 = arith.addf %485, %484 : vector<8x128xf32>
    %487 = arith.divf %485, %486 : vector<8x128xf32>
    %488 = vector.extract_strided_slice %469 {offsets = [0, 256], sizes = [8, 128], strides = [1, 1]} : vector<8x384xf32> to vector<8x128xf32>
    %489 = vector.extract_strided_slice %471 {offsets = [0, 256], sizes = [8, 128], strides = [1, 1]} : vector<8x384xf32> to vector<8x128xf32>
    %490 = arith.addf %489, %296 : vector<8x128xf32>
    %491 = arith.mulf %479, %490 : vector<8x128xf32>
    %492 = arith.addf %488, %491 : vector<8x128xf32>
    %493 = math.tanh %492 : vector<8x128xf32>
    %cst_110 = arith.constant 1.000000e+00 : f32
    %494 = vector.broadcast %cst_110 : f32 to vector<8x128xf32>
    %495 = arith.subf %494, %487 : vector<8x128xf32>
    %496 = arith.mulf %495, %493 : vector<8x128xf32>
    %497 = arith.mulf %487, %464 : vector<8x128xf32>
    %498 = arith.addf %496, %497 : vector<8x128xf32>
    %c5_111 = arith.constant 5 : index
    %c0_112 = arith.constant 0 : index
    %c0_113 = arith.constant 0 : index
    %499 = vector.load %arg12[%c5_111, %c0_112, %c0_113] : memref<8x8x128xf32, #tpu.memory_space<vmem>>, vector<1x8x128xf32>
    %500 = vector.shape_cast %499 : vector<1x8x128xf32> to vector<8x128xf32>
    %501 = vector.shape_cast %498 : vector<8x128xf32> to vector<1x8x128xf32>
    tpu.vector_store %arg12[%c5_111, %c0_112, %c0_113], %501 {strides = array<i32>} : memref<8x8x128xf32, #tpu.memory_space<vmem>>, vector<1x8x128xf32>,
    %502 = vector.extract_strided_slice %294 {offsets = [6, 0, 0], sizes = [1, 8, 384], strides = [1, 1, 1]} : vector<8x8x384xf32> to vector<1x8x384xf32>
    %503 = vector.shape_cast %502 : vector<1x8x384xf32> to vector<8x384xf32>
    %504 = arith.truncf %498 : vector<8x128xf32> to vector<8x128xbf16>
    %cst_114 = arith.constant dense<0.000000e+00> : vector<8x384xf32>
    %505 = tpu.matmul %504, %288, %cst_114 {dimension_numbers = #tpu.dot_dimension_numbers<[1], [0], [0], [1], [0, 0, 1, 1], [], []>} : vector<8x128xbf16>, vector<128x384xbf16>, vector<8x384xf32> -> vector<8x384xf32>
    %506 = vector.extract_strided_slice %503 {offsets = [0, 0], sizes = [8, 128], strides = [1, 1]} : vector<8x384xf32> to vector<8x128xf32>
    %507 = vector.extract_strided_slice %505 {offsets = [0, 0], sizes = [8, 128], strides = [1, 1]} : vector<8x384xf32> to vector<8x128xf32>
    %508 = arith.addf %506, %507 : vector<8x128xf32>
    %509 = arith.negf %508 : vector<8x128xf32>
    %510 = math.exp %509 : vector<8x128xf32>
    %cst_115 = arith.constant 1.000000e+00 : f32
    %511 = vector.broadcast %cst_115 : f32 to vector<8x128xf32>
    %512 = arith.addf %511, %510 : vector<8x128xf32>
    %513 = arith.divf %511, %512 : vector<8x128xf32>
    %514 = vector.extract_strided_slice %503 {offsets = [0, 128], sizes = [8, 128], strides = [1, 1]} : vector<8x384xf32> to vector<8x128xf32>
    %515 = vector.extract_strided_slice %505 {offsets = [0, 128], sizes = [8, 128], strides = [1, 1]} : vector<8x384xf32> to vector<8x128xf32>
    %516 = arith.addf %514, %515 : vector<8x128xf32>
    %517 = arith.negf %516 : vector<8x128xf32>
    %518 = math.exp %517 : vector<8x128xf32>
    %cst_116 = arith.constant 1.000000e+00 : f32
    %519 = vector.broadcast %cst_116 : f32 to vector<8x128xf32>
    %520 = arith.addf %519, %518 : vector<8x128xf32>
    %521 = arith.divf %519, %520 : vector<8x128xf32>
    %522 = vector.extract_strided_slice %503 {offsets = [0, 256], sizes = [8, 128], strides = [1, 1]} : vector<8x384xf32> to vector<8x128xf32>
    %523 = vector.extract_strided_slice %505 {offsets = [0, 256], sizes = [8, 128], strides = [1, 1]} : vector<8x384xf32> to vector<8x128xf32>
    %524 = arith.addf %523, %296 : vector<8x128xf32>
    %525 = arith.mulf %513, %524 : vector<8x128xf32>
    %526 = arith.addf %522, %525 : vector<8x128xf32>
    %527 = math.tanh %526 : vector<8x128xf32>
    %cst_117 = arith.constant 1.000000e+00 : f32
    %528 = vector.broadcast %cst_117 : f32 to vector<8x128xf32>
    %529 = arith.subf %528, %521 : vector<8x128xf32>
    %530 = arith.mulf %529, %527 : vector<8x128xf32>
    %531 = arith.mulf %521, %498 : vector<8x128xf32>
    %532 = arith.addf %530, %531 : vector<8x128xf32>
    %c6_118 = arith.constant 6 : index
    %c0_119 = arith.constant 0 : index
    %c0_120 = arith.constant 0 : index
    %533 = vector.load %arg12[%c6_118, %c0_119, %c0_120] : memref<8x8x128xf32, #tpu.memory_space<vmem>>, vector<1x8x128xf32>
    %534 = vector.shape_cast %533 : vector<1x8x128xf32> to vector<8x128xf32>
    %535 = vector.shape_cast %532 : vector<8x128xf32> to vector<1x8x128xf32>
    tpu.vector_store %arg12[%c6_118, %c0_119, %c0_120], %535 {strides = array<i32>} : memref<8x8x128xf32, #tpu.memory_space<vmem>>, vector<1x8x128xf32>,
    %536 = vector.extract_strided_slice %294 {offsets = [7, 0, 0], sizes = [1, 8, 384], strides = [1, 1, 1]} : vector<8x8x384xf32> to vector<1x8x384xf32>
    %537 = vector.shape_cast %536 : vector<1x8x384xf32> to vector<8x384xf32>
    %538 = arith.truncf %532 : vector<8x128xf32> to vector<8x128xbf16>
    %cst_121 = arith.constant dense<0.000000e+00> : vector<8x384xf32>
    %539 = tpu.matmul %538, %288, %cst_121 {dimension_numbers = #tpu.dot_dimension_numbers<[1], [0], [0], [1], [0, 0, 1, 1], [], []>} : vector<8x128xbf16>, vector<128x384xbf16>, vector<8x384xf32> -> vector<8x384xf32>
    %540 = vector.extract_strided_slice %537 {offsets = [0, 0], sizes = [8, 128], strides = [1, 1]} : vector<8x384xf32> to vector<8x128xf32>
    %541 = vector.extract_strided_slice %539 {offsets = [0, 0], sizes = [8, 128], strides = [1, 1]} : vector<8x384xf32> to vector<8x128xf32>
    %542 = arith.addf %540, %541 : vector<8x128xf32>
    %543 = arith.negf %542 : vector<8x128xf32>
    %544 = math.exp %543 : vector<8x128xf32>
    %cst_122 = arith.constant 1.000000e+00 : f32
    %545 = vector.broadcast %cst_122 : f32 to vector<8x128xf32>
    %546 = arith.addf %545, %544 : vector<8x128xf32>
    %547 = arith.divf %545, %546 : vector<8x128xf32>
    %548 = vector.extract_strided_slice %537 {offsets = [0, 128], sizes = [8, 128], strides = [1, 1]} : vector<8x384xf32> to vector<8x128xf32>
    %549 = vector.extract_strided_slice %539 {offsets = [0, 128], sizes = [8, 128], strides = [1, 1]} : vector<8x384xf32> to vector<8x128xf32>
    %550 = arith.addf %548, %549 : vector<8x128xf32>
    %551 = arith.negf %550 : vector<8x128xf32>
    %552 = math.exp %551 : vector<8x128xf32>
    %cst_123 = arith.constant 1.000000e+00 : f32
    %553 = vector.broadcast %cst_123 : f32 to vector<8x128xf32>
    %554 = arith.addf %553, %552 : vector<8x128xf32>
    %555 = arith.divf %553, %554 : vector<8x128xf32>
    %556 = vector.extract_strided_slice %537 {offsets = [0, 256], sizes = [8, 128], strides = [1, 1]} : vector<8x384xf32> to vector<8x128xf32>
    %557 = vector.extract_strided_slice %539 {offsets = [0, 256], sizes = [8, 128], strides = [1, 1]} : vector<8x384xf32> to vector<8x128xf32>
    %558 = arith.addf %557, %296 : vector<8x128xf32>
    %559 = arith.mulf %547, %558 : vector<8x128xf32>
    %560 = arith.addf %556, %559 : vector<8x128xf32>
    %561 = math.tanh %560 : vector<8x128xf32>
    %cst_124 = arith.constant 1.000000e+00 : f32
    %562 = vector.broadcast %cst_124 : f32 to vector<8x128xf32>
    %563 = arith.subf %562, %555 : vector<8x128xf32>
    %564 = arith.mulf %563, %561 : vector<8x128xf32>
    %565 = arith.mulf %555, %532 : vector<8x128xf32>
    %566 = arith.addf %564, %565 : vector<8x128xf32>
    %c7_125 = arith.constant 7 : index
    %c0_126 = arith.constant 0 : index
    %c0_127 = arith.constant 0 : index
    %567 = vector.load %arg12[%c7_125, %c0_126, %c0_127] : memref<8x8x128xf32, #tpu.memory_space<vmem>>, vector<1x8x128xf32>
    %568 = vector.shape_cast %567 : vector<1x8x128xf32> to vector<8x128xf32>
    %569 = vector.shape_cast %566 : vector<8x128xf32> to vector<1x8x128xf32>
    tpu.vector_store %arg12[%c7_125, %c0_126, %c0_127], %569 {strides = array<i32>} : memref<8x8x128xf32, #tpu.memory_space<vmem>>, vector<1x8x128xf32>,
    %c0_128 = arith.constant 0 : index
    %c0_129 = arith.constant 0 : index
    %c0_130 = arith.constant 0 : index
    %570 = vector.load %arg12[%c0_128, %c0_129, %c0_130] : memref<8x8x128xf32, #tpu.memory_space<vmem>>, vector<8x8x128xf32>
    %571 = vector.shape_cast %570 : vector<8x8x128xf32> to vector<64x128xf32>
    %572 = arith.truncf %571 : vector<64x128xf32> to vector<64x128xbf16>
    %c0_131 = arith.constant 0 : index
    %c0_132 = arith.constant 0 : index
    %573 = vector.load %arg9[%c0_131, %c0_132] : memref<128x128xbf16, #tpu.memory_space<vmem>>, vector<128x128xbf16>
    %cst_133 = arith.constant dense<0.000000e+00> : vector<64x128xf32>
    %574 = tpu.matmul %572, %573, %cst_133 {dimension_numbers = #tpu.dot_dimension_numbers<[1], [0], [0], [1], [0, 0, 1, 1], [], []>} : vector<64x128xbf16>, vector<128x128xbf16>, vector<64x128xf32> -> vector<64x128xf32>
    %c0_134 = arith.constant 0 : index
    %c0_135 = arith.constant 0 : index
    %575 = vector.load %arg10[%c0_134, %c0_135] : memref<1x128xf32, #tpu.memory_space<vmem>>, vector<1x128xf32>
    %576 = vector.broadcast %575 : vector<1x128xf32> to vector<64x128xf32>
    %577 = arith.addf %574, %576 : vector<64x128xf32>
    %c0_136 = arith.constant 0 : index
    %c0_137 = arith.constant 0 : index
    %578 = vector.load %arg11[%c0_136, %c0_137] : memref<64x128xf32, #tpu.memory_space<vmem>>, vector<64x128xf32>
    tpu.vector_store %arg11[%c0_136, %c0_137], %577 {strides = array<i32>} : memref<64x128xf32, #tpu.memory_space<vmem>>, vector<64x128xf32>,
    return
  }
}

</mosaic_0001>

<bundles_post_ra>
// kernel: forward.1
= control target key start
LH: loop header
LB: loop body
LE: loop exit
PB: predicated region body
PF: predicated region fallthrough
CT: control target
= control target key end

     0   :  { %16 = vsyncpa [#allocation4], 0  ;;  %s5330_s0 = inlined_call_operand.vmem [shape: bf16[64,32], index: 0, kind: input, shape index: {}]   ;;  %s5331_s1 = inlined_call_operand.hbm [shape: bf16[32,384], index: 1, kind: input, shape index: {}]   ;;  %s5332_s2 = inlined_call_operand.vmem [shape: bf16[128,384], index: 2, kind: input, shape index: {}]   ;;  %s5333_s3 = inlined_call_operand.hbm [shape: f32[1,384], index: 3, kind: input, shape index: {}]   ;;  %s5334_s4 = inlined_call_operand.vmem [shape: f32[1,128], index: 4, kind: input, shape index: {}]   ;;  %s5335_s5 = inlined_call_operand.vmem [shape: bf16[128,384], index: 5, kind: input, shape index: {}]   ;;  %s5336_s6 = inlined_call_operand.hbm [shape: bf16[128,384], index: 6, kind: input, shape index: {}]   ;;  %s5337_s7 = inlined_call_operand.hbm [shape: f32[1,384], index: 7, kind: input, shape index: {}]   ;;  %s5338_s8 = inlined_call_operand.vmem [shape: f32[1,128], index: 8, kind: input, shape index: {}]   ;;  %s5339_s9 = inlined_call_operand.hbm [shape: bf16[128,128], index: 9, kind: input, shape index: {}]   ;;  %s5340_s10 = inlined_call_operand.vmem [shape: f32[1,128], index: 10, kind: input, shape index: {}]   ;;  %s5341_s11 = inlined_call_operand.vmem [shape: f32[64,128], index: 11, kind: output, shape index: {}]  }
   0x1   :  { %17 = vsyncpa [#allocation6], 0 }
   0x2   :  { %18 = vsyncpa [#allocation9], 0  ;;  %s3982_s17 = smov [#allocation5]   ;;  %s3983_s19 = smov [#allocation8]  }
   0x3   :  { %s41_s18 = sshll.u32 %s3982_s17, 4  ;;  %s67_s20 = sshll.u32 %s3983_s19, 4  ;;  %s42_s18 = int_to_ptr.vmem [resolvable:$true] %s41_s18  ;;  %s68_s20 = int_to_ptr.vmem [resolvable:$true] %s67_s20 }
   0x4   :  { %s3866_s23 = scalar_lea.hbm %s5333_s3, 48 }
   0x5   :  { %p3867_p0 = scmp.ne.s32.totalorder %s5333_s3, %s3866_s23  ;;  %p3870_p1 = scmp.lt.u32.totalorder %s3866_s23, %s5333_s3 }
   0x7   :  { %p3872_p2 = pnand %p3870_p1, %p3867_p0 }
   0x9   :  { %3875 = shalt.err (!%p3872_p2)
}
   0xa   :  { %s3876_s28 = scalar_lea.vmem %s42_s18, 48  ;;  %s3880_s29 = scalar_lea.vmem %s42_s18, 64 }
   0xb   :  { %p3877_p3 = scmp.ne.s32.totalorder %s42_s18, %s3876_s28  ;;  %p3881_p4 = scmp.lt.s32.totalorder %s42_s18, %s42_s18 }
   0xc   :  { %p3882_p5 = scmp.lt.s32.totalorder %s3880_s29, %s3876_s28 }
   0xe   :  { %p3883_p6 = por %p3882_p5, %p3881_p4 }
  0x10   :  { %p3884_p7 = pnand %p3883_p6, %p3877_p3 }
  0x12   :  { %3887 = shalt.err (!%p3884_p7)
}
  0x13   :  { %44 = dma.hbm_to_vmem [thread:$0]  %s5333_s3, 48, %s42_s18, [#allocation6]  }
  0x14   :  { %s3888_s15 = scalar_lea.hbm %s5337_s7, 48 }
  0x15   :  { %p3889_p8 = scmp.ne.s32.totalorder %s5337_s7, %s3888_s15  ;;  %p3892_p9 = scmp.lt.u32.totalorder %s3888_s15, %s5337_s7 }
  0x17   :  { %p3894_p10 = pnand %p3892_p9, %p3889_p8 }
  0x19   :  { %3897 = shalt.err (!%p3894_p10)
}
  0x1a   :  { %s3898_s22 = scalar_lea.vmem %s68_s20, 48  ;;  %s3902_s23 = scalar_lea.vmem %s68_s20, 64 }
  0x1b   :  { %p3899_p11 = scmp.ne.s32.totalorder %s68_s20, %s3898_s22  ;;  %p3903_p12 = scmp.lt.s32.totalorder %s68_s20, %s68_s20 }
  0x1c   :  { %p3904_p13 = scmp.lt.s32.totalorder %s3902_s23, %s3898_s22 }
  0x1e   :  { %p3905_p0 = por %p3904_p13, %p3903_p12 }
  0x20   :  { %p3906_p1 = pnand %p3905_p0, %p3899_p11 }
  0x22   :  { %3909 = shalt.err (!%p3906_p1)
}
  0x23   :  { %70 = dma.hbm_to_vmem [thread:$0]  %s5337_s7, 48, %s68_s20, [#allocation9]  }
  0x24   :  { %s3984_s24 = smov [#allocation3]   ;;  %s3910_s28 = scalar_lea.hbm %s5331_s1, 768 }
  0x25   :  { %s26_s25 = sshll.u32 %s3984_s24, 4  ;;  %p3911_p2 = scmp.ne.s32.totalorder %s5331_s1, %s3910_s28  ;;  %s27_s25 = int_to_ptr.vmem [resolvable:$true] %s26_s25 }
  0x26   :  { %p3914_p3 = scmp.lt.u32.totalorder %s3910_s28, %s5331_s1 }
  0x28   :  { %p3916_p4 = pnand %p3914_p3, %p3911_p2 }
  0x2a   :  { %3919 = shalt.err (!%p3916_p4)
}
  0x2b   :  { %s3920_s14 = scalar_lea.vmem %s27_s25, 768  ;;  %p3925_p6 = scmp.lt.s32.totalorder %s27_s25, %s27_s25 }
  0x2c   :  { %p3921_p5 = scmp.ne.s32.totalorder %s27_s25, %s3920_s14  ;;  %p3926_p7 = scmp.lt.s32.totalorder %s3920_s14, %s3920_s14 }
  0x2e   :  { %p3927_p8 = por %p3926_p7, %p3925_p6 }
  0x30   :  { %p3928_p9 = pnand %p3927_p8, %p3921_p5 }
  0x32   :  { %3931 = shalt.err (!%p3928_p9)
}
  0x33   :  { %s3985_s7 = smov 192   ;;  %s3986_s20 = smov 12  }
  0x34   :  { %32 = dma.hbm_to_vmem [thread:$0]  %s5331_s1, 768, %s27_s25, [#allocation4], %s3985_s7, %s3985_s7, %s3986_s20  }
  0x35   :  { %s3987_s17 = smov [#allocation7]   ;;  %s3988_s21 = smov [#allocation10]  }
  0x36   :  { %s54_s19 = sshll.u32 %s3987_s17, 4  ;;  %s78_s22 = sshll.u32 %s3988_s21, 4  ;;  %s55_s19 = int_to_ptr.vmem [resolvable:$true] %s54_s19  ;;  %s79_s22 = int_to_ptr.vmem [resolvable:$true] %s78_s22 }
  0x37   :  { %s3932_s18 = scalar_lea.hbm %s5336_s6, 3072 }
  0x38   :  { %p3933_p10 = scmp.ne.s32.totalorder %s5336_s6, %s3932_s18  ;;  %p3936_p11 = scmp.lt.u32.totalorder %s3932_s18, %s5336_s6 }
  0x3a   :  { %p3938_p12 = pnand %p3936_p11, %p3933_p10 }
  0x3c   :  { %3941 = shalt.err (!%p3938_p12)
}
  0x3d   :  { %s3942_s1 = scalar_lea.vmem %s55_s19, 3072  ;;  %p3947_p0 = scmp.lt.s32.totalorder %s55_s19, %s55_s19 }
  0x3e   :  { %p3943_p13 = scmp.ne.s32.totalorder %s55_s19, %s3942_s1  ;;  %p3948_p1 = scmp.lt.s32.totalorder %s3942_s1, %s3942_s1 }
  0x40   :  { %p3949_p2 = por %p3948_p1, %p3947_p0 }
  0x42   :  { %p3950_p3 = pnand %p3949_p2, %p3943_p13 }
  0x44   :  { %3953 = shalt.err (!%p3950_p3)
}
  0x45   :  { %60 = dma.hbm_to_vmem [thread:$0]  %s5336_s6, 3072, %s55_s19, [#allocation6], %s3985_s7, %s3985_s7, %s3986_s20  }
  0x46   :  { %s3954_s13 = scalar_lea.hbm %s5339_s9, 1024 }
  0x47   :  { %p3955_p4 = scmp.ne.s32.totalorder %s5339_s9, %s3954_s13  ;;  %p3958_p5 = scmp.lt.u32.totalorder %s3954_s13, %s5339_s9 }
  0x49   :  { %p3960_p6 = pnand %p3958_p5, %p3955_p4 }
  0x4b   :  { %3963 = shalt.err (!%p3960_p6)
}
  0x4c   :  { %s3964_s21 = scalar_lea.vmem %s79_s22, 1024  ;;  %p3969_p8 = scmp.lt.s32.totalorder %s79_s22, %s79_s22 }
  0x4d   :  { %p3965_p7 = scmp.ne.s32.totalorder %s79_s22, %s3964_s21  ;;  %p3970_p9 = scmp.lt.s32.totalorder %s3964_s21, %s3964_s21 }
  0x4f   :  { %p3971_p10 = por %p3970_p9, %p3969_p8 }
  0x51   :  { %p3972_p11 = pnand %p3971_p10, %p3965_p7 }
  0x53   :  { %3975 = shalt.err (!%p3972_p11)
}
  0x54   :  { %s3989_s6 = smov 64   ;;  %s3990_s7 = smov 4  }
  0x55   :  { %84 = dma.hbm_to_vmem [thread:$0]  %s5339_s9, 1024, %s79_s22, [#allocation9], %s3989_s6, %s3989_s6, %s3990_s7  }
  0x56   :  { %3976 = dma.done.wait [#allocation4], 768  }
  0x57   :  { %3977 = vsyncadd [#allocation4], 4294966528 }
  0x58   :  { %3978 = dma.done.wait [#allocation6], 3120  }
  0x59   :  { %3979 = vsyncadd [#allocation6], 4294964176 }
  0x5a   :  { %3980 = dma.done.wait [#allocation9], 1072  }
  0x5b   :  { %3981 = vsyncadd [#allocation9], 4294966224  ;;  %v5345_v0 = vmov 0   ;;  %v3547_v1 = vld [vmem:[#allocation3 + $0x4] ss:$12 sps:$4 sm:$0xff]   ;;  %vm221_vm0 = vcmask 261120   ;;  %v154_v36 = vlaneseq }
  0x5c   :  { %266 = vmatprep.mubr.bf16.mxu1 %v5345_v0  ;;  %538 = vmatprep.mubr.bf16.mxu0 %v5345_v0  ;;  %v4119_v2 = vld [vmem:[%s5332_s2 + $0x4] ss:$12 sps:$4 sm:$0xff]   ;;  %v4124_v4 = vld [vmem:[%s5332_s2] ss:$12 sps:$4 sm:$0xff]   ;;  %v4131_v6 = vld [vmem:[%s5332_s2 + $0x1c] ss:$12 sps:$4 sm:$0xff]  }
  0x5d   :  { %234 = vmatprep.subr.bf16.mxu1 %v3547_v1  ;;  %v3551_v3 = vld [vmem:[#allocation3] ss:$12 sps:$4 sm:$0xff]   ;;  %506 = vmatprep.subr.bf16.mxu0 %v4119_v2  ;;  %v3553_v5 = vld [vmem:[#allocation3 + $0x1c] ss:$12 sps:$4 sm:$0xff]   ;;  %v3557_v7 = vld [vmem:[#allocation3 + $0x18] ss:$12 sps:$4 sm:$0xff]  }
  0x5e   :  { %235 = vmatpush1.bf16.msra.mxu1 %v3551_v3  ;;  %507 = vmatpush1.bf16.msra.mxu0 %v4124_v4  ;;  %v4136_v8 = vld [vmem:[%s5332_s2 + $0x18] ss:$12 sps:$4 sm:$0xff]   ;;  %v4146_v11 = vld [vmem:[%s5332_s2 + $0x34] ss:$12 sps:$4 sm:$0xff]   ;;  %v4151_v12 = vld [vmem:[%s5332_s2 + $0x30] ss:$12 sps:$4 sm:$0xff]  }
  0x5f   :  { %236 = vmatprep.subr.bf16.mxu1 %v3553_v5  ;;  %508 = vmatprep.subr.bf16.mxu0 %v4131_v6  ;;  %v3559_v9 = vld [vmem:[%s5330_s0] sm:$0xff]   ;;  %v4156_v13 = vld [vmem:[%s5332_s2 + $0x4c] ss:$12 sps:$4 sm:$0xff]   ;;  %v4164_v14 = vld [vmem:[%s5332_s2 + $0x48] ss:$12 sps:$4 sm:$0xff]   ;;  %v5347_v20 = vmov 0.0  }
  0x60   :  { %v3560_v10 = vld [vmem:[#allocation3 + $0x8] ss:$12 sps:$4 sm:$0xff]   ;;  %v3567_v16 = vld [vmem:[%s5330_s0 + $0x8] sm:$0xff]   ;;  %v3575_v17 = vld [vmem:[#allocation3 + $0x20] ss:$12 sps:$4 sm:$0xff]   ;;  %vm3993_vm1 = vmmov 0  }
  0x61   :  { %v4171_v15 = vld [vmem:[%s5332_s2 + $0x64] ss:$12 sps:$4 sm:$0xff]   ;;  %v4180_v18 = vld [vmem:[%s5332_s2 + $0x60] ss:$12 sps:$4 sm:$0xff]   ;;  %v4186_v19 = vld [vmem:[%s5332_s2 + $0x7c] ss:$12 sps:$4 sm:$0xff]  }
  0x62   :  { %237 = vmatpush1.bf16.msra.mxu1 %v3557_v7  ;;  %509 = vmatpush1.bf16.msra.mxu0 %v4136_v8  ;;  %v4194_v21 = vld [vmem:[%s5332_s2 + $0x78] ss:$12 sps:$4 sm:$0xff]   ;;  %v4201_v22 = vld [vmem:[%s5332_s2 + $0x94] ss:$12 sps:$4 sm:$0xff]   ;;  %v4210_v24 = vld [vmem:[%s5332_s2 + $0x90] ss:$12 sps:$4 sm:$0xff]  }
  0x63   :  { %3155 = vmatprep.subr.bf16.mxu1 %v3560_v10  ;;  %510 = vmatprep.subr.bf16.mxu0 %v4146_v11  ;;  %v3574_v23 = vld [vmem:[%s5330_s0 + $0x10] sm:$0xff]   ;;  %v4216_v25 = vld [vmem:[%s5332_s2 + $0xac] ss:$12 sps:$4 sm:$0xff]   ;;  %v4332_v37 = vshrl.u32 %v154_v36, 7  ;;  %v151_v39 = vld [vmem:[#allocation5] sm:$0x7] }
  0x64   :  { %v4222_v26 = vld [vmem:[%s5332_s2 + $0xa8] ss:$12 sps:$4 sm:$0xff]   ;;  %v3582_v27 = vld [vmem:[%s5330_s0 + $0x18] sm:$0xff]   ;;  %v4248_v29 = vld [vmem:[%s5332_s2 + $0x20] ss:$12 sps:$4 sm:$0xff]  }
  0x65   :  { %2858 = vmatmul.mubr.msk.bf16.vlgmr.msra.gmra.mrb[0].mxu1 %vm221_vm0, %v3559_v9  ;;  %v4241_v28 = vld [vmem:[%s5332_s2 + $0x8] ss:$12 sps:$4 sm:$0xff]   ;;  %v4258_v30 = vld [vmem:[%s5332_s2 + $0x38] ss:$12 sps:$4 sm:$0xff]   ;;  %v4267_v31 = vld [vmem:[%s5332_s2 + $0x50] ss:$12 sps:$4 sm:$0xff]  }
  0x66   :  { %3156 = vmatpush3.bf16.msra.mxu1 %v3560_v10  ;;  %511 = vmatpush1.bf16.msra.mxu0 %v4151_v12  ;;  %v4281_v32 = vld [vmem:[%s5332_s2 + $0x68] ss:$12 sps:$4 sm:$0xff]   ;;  %v4290_v33 = vld [vmem:[%s5332_s2 + $0x80] ss:$12 sps:$4 sm:$0xff]   ;;  %v4299_v34 = vld [vmem:[%s5332_s2 + $0x98] ss:$12 sps:$4 sm:$0xff]  }
  0x67   :  { %512 = vmatprep.subr.bf16.mxu0 %v4156_v13  ;;  %276 = vmatprep.mubr.bf16.mxu1 %v5345_v0  ;;  %v4308_v35 = vld [vmem:[%s5332_s2 + $0xb0] ss:$12 sps:$4 sm:$0xff]   ;;  %5351 = vst [vmem:[#allocation14_spill] sm:$0xff] %v4332_v37  ;;  %v5344_v38 = vsub.s32 0, %v4332_v37  ;;  %v5343_v40 = vsub.s32 1, %v4332_v37 }
  0x68   :  { %3157 = vmatprep.subr.bf16.mxu1 %v3575_v17 }
  0x69   :  { %v157_v42 = vrot.slane %v151_v39, %v5344_v38  ;;  %v161_v44 = vrot.slane %v151_v39, %v5343_v40 }
  0x6a   :  { %513 = vmatpush1.bf16.msra.mxu0 %v4164_v14  ;;  %3158 = vmatpush3.bf16.msra.mxu1 %v3575_v17 }
  0x6b   :  { %514 = vmatprep.subr.bf16.mxu0 %v4171_v15  ;;  %3167 = vmatprep.subr.bf16.mxu1 %v5347_v20 }
  0x6d   :  { %2859 = vmatmul.mubr.msk.bf16.gmra.mrb[4].mxu1 %vm221_vm0, %v3567_v16 }
  0x6e   :  { %515 = vmatpush1.bf16.msra.mxu0 %v4180_v18  ;;  %286 = vmatprep.mubr.bf16.mxu1 %v5345_v0 }
  0x6f   :  { %516 = vmatprep.subr.bf16.mxu0 %v4186_v19 }
  0x72   :  { %517 = vmatpush1.bf16.msra.mxu0 %v4194_v21 }
  0x73   :  { %518 = vmatprep.subr.bf16.mxu0 %v4201_v22 }
  0x75   :  { %2860 = vmatmul.mubr.msk.bf16.gmra.mrb[8].mxu1 %vm221_vm0, %v3574_v23 }
  0x76   :  { %519 = vmatpush1.bf16.msra.mxu0 %v4210_v24  ;;  %296 = vmatprep.mubr.bf16.mxu1 %v5345_v0 }
  0x77   :  { %520 = vmatprep.subr.bf16.mxu0 %v4216_v25 }
  0x7a   :  { %521 = vmatpush1.bf16.msra.mxu0 %v4222_v26 }
  0x7b   :  { %611 = vmatprep.subr.bf16.mxu0 %v4119_v2 }
  0x7d   :  { %2861 = vmatmul.mubr.msk.bf16.gmra.mrb[12].mxu1 %vm221_vm0, %v3582_v27  ;;  %539 = vmatmul.mubr.bf16.vlgmr.msra.gmra.mrb[0].mxu0 %v5345_v0 }
  0x7e   :  { %3159 = vmatprep.mubr.msk.bf16.mxu1 %vm221_vm0, %v3559_v9  ;;  %612 = vmatpush1.bf16.msra.mxu0 %v4124_v4 }
  0x7f   :  { %613 = vmatprep.subr.bf16.mxu0 %v4131_v6  ;;  %643 = vmatprep.mubr.bf16.mxu0 %v5345_v0 }
  0x82   :  { %614 = vmatpush1.bf16.msra.mxu0 %v4136_v8 }
  0x83   :  { %615 = vmatprep.subr.bf16.mxu0 %v4146_v11 }
  0x85   :  { %3160 = vmatmul.mubr.msk.bf16.vlgmr.msra.gmra.mrb[16].mxu1 %vm221_vm0, %v3567_v16 }
  0x86   :  { %3168 = vmatpush3.bf16.msra.mxu1 %v4241_v28  ;;  %3163 = vmatprep.mubr.msk.bf16.mxu1 %vm221_vm0, %v3574_v23 }
  0x87   :  { %3169 = vmatprep.subr.bf16.mxu1 %v5347_v20  ;;  %616 = vmatpush1.bf16.msra.mxu0 %v4151_v12 }
  0x88   :  { %617 = vmatprep.subr.bf16.mxu0 %v4156_v13 }
  0x8a   :  { %3170 = vmatpush3.bf16.msra.mxu1 %v4248_v29 }
  0x8b   :  { %3171 = vmatprep.subr.bf16.mxu1 %v5347_v20  ;;  %618 = vmatpush1.bf16.msra.mxu0 %v4164_v14 }
  0x8c   :  { %619 = vmatprep.subr.bf16.mxu0 %v4171_v15 }
  0x8d   :  { %3164 = vmatmul.mubr.msk.bf16.gmra.mrb[20].mxu1 %vm221_vm0, %v3582_v27  ;;  %v5342_v27 = vsub.s32 2, %v4332_v37 }
  0x8e   :  { %3172 = vmatpush3.bf16.msra.mxu1 %v4258_v30  ;;  %3183 = vmatprep.mubr.msk.bf16.mxu1 %vm3993_vm1, %v5347_v20 }
  0x8f   :  { %3173 = vmatprep.subr.bf16.mxu1 %v5347_v20  ;;  %620 = vmatpush1.bf16.msra.mxu0 %v4180_v18 }
  0x90   :  { %621 = vmatprep.subr.bf16.mxu0 %v4186_v19 }
  0x92   :  { %3174 = vmatpush3.bf16.msra.mxu1 %v4267_v31 }
  0x93   :  { %3175 = vmatprep.subr.bf16.mxu1 %v5347_v20  ;;  %622 = vmatpush1.bf16.msra.mxu0 %v4194_v21 }
  0x94   :  { %623 = vmatprep.subr.bf16.mxu0 %v4201_v22 }
  0x96   :  { %3176 = vmatpush3.bf16.msra.mxu1 %v4281_v32 }
  0x97   :  { %3177 = vmatprep.subr.bf16.mxu1 %v5347_v20  ;;  %624 = vmatpush1.bf16.msra.mxu0 %v4210_v24 }
  0x98   :  { %625 = vmatprep.subr.bf16.mxu0 %v4216_v25 }
  0x9a   :  { %3178 = vmatpush3.bf16.msra.mxu1 %v4290_v33 }
  0x9b   :  { %3179 = vmatprep.subr.bf16.mxu1 %v5347_v20  ;;  %626 = vmatpush1.bf16.msra.mxu0 %v4222_v26 }
  0x9c   :  { %717 = vmatprep.subr.bf16.mxu0 %v4119_v2 }
  0x9e   :  { %3180 = vmatpush3.bf16.msra.mxu1 %v4299_v34 }
  0x9f   :  { %3181 = vmatprep.subr.bf16.mxu1 %v5347_v20 }
  0xa2   :  { %3182 = vmatpush3.bf16.msra.mxu1 %v4308_v35 }
  0xa3   :  { %3187 = vmatprep.subr.bf16.mxu1 %v5347_v20 }
  0xa5   :  { %3184 = vmatmul.mubr.bf16.vlgmr.msra.gmra.mrb[24].mxu1 %v5345_v0 }
  0xa6   :  { %3188 = vmatpush3.bf16.msra.mxu1 %v4241_v28  ;;  %3203 = vmatprep.mubr.msk.bf16.mxu1 %vm3993_vm1, %v5347_v20 }
  0xa7   :  { %3189 = vmatprep.subr.bf16.mxu1 %v5347_v20 }
  0xaa   :  { %3190 = vmatpush3.bf16.msra.mxu1 %v4248_v29 }
  0xab   :  { %3191 = vmatprep.subr.bf16.mxu1 %v5347_v20 }
  0xae   :  { %3192 = vmatpush3.bf16.msra.mxu1 %v4258_v30 }
  0xaf   :  { %3193 = vmatprep.subr.bf16.mxu1 %v5347_v20 }
  0xb2   :  { %3194 = vmatpush3.bf16.msra.mxu1 %v4267_v31 }
  0xb3   :  { %3195 = vmatprep.subr.bf16.mxu1 %v5347_v20 }
  0xb6   :  { %3196 = vmatpush3.bf16.msra.mxu1 %v4281_v32 }
  0xb7   :  { %3197 = vmatprep.subr.bf16.mxu1 %v5347_v20 }
  0xba   :  { %3198 = vmatpush3.bf16.msra.mxu1 %v4290_v33 }
  0xbb   :  { %3199 = vmatprep.subr.bf16.mxu1 %v5347_v20 }
  0xbe   :  { %3200 = vmatpush3.bf16.msra.mxu1 %v4299_v34 }
  0xbf   :  { %3201 = vmatprep.subr.bf16.mxu1 %v5347_v20 }
  0xc2   :  { %3202 = vmatpush3.bf16.msra.mxu1 %v4308_v35 }
  0xc3   :  { %3207 = vmatprep.subr.bf16.mxu1 %v5347_v20 }
 0x138   :  { %v268_v41 = vpop.f32.mrb[0].mxu1 }
 0x139   :  { %v270_v43 = vpop.f32.mrb[1].mxu1  ;;  %v269_v3 = vadd.f32 %v268_v41, %v157_v42 }
 0x13a   :  { %v272_v45 = vpop.f32.mrb[2].mxu1  ;;  %v271_v5 = vadd.f32 %v270_v43, %v161_v44  ;;  %v165_v43 = vrot.slane %v151_v39, %v5342_v27 }
 0x13b   :  { %v4340_v46 = vadd.f32 %v272_v45, %v157_v42  ;;  %v274_v47 = vpop.f32.mrb[3].mxu1 }
 0x13c   :  { %v4342_v48 = vadd.f32 %v274_v47, %v161_v44 }
 0x140   :  { %v278_v49 = vpop.f32.mrb[4].mxu1 }
 0x141   :  { %v4344_v50 = vadd.f32 %v278_v49, %v157_v42  ;;  %v280_v51 = vpop.f32.mrb[5].mxu1 }
 0x142   :  { %v4346_v52 = vadd.f32 %v280_v51, %v161_v44  ;;  %v282_v53 = vpop.f32.mrb[6].mxu1 }
 0x143   :  { %v4348_v54 = vadd.f32 %v282_v53, %v157_v42  ;;  %v284_v55 = vpop.f32.mrb[7].mxu1 }
 0x144   :  { %v4350_v56 = vadd.f32 %v284_v55, %v161_v44 }
 0x148   :  { %v288_v57 = vpop.f32.mrb[8].mxu1 }
 0x149   :  { %v4352_v58 = vadd.f32 %v288_v57, %v157_v42  ;;  %v290_v59 = vpop.f32.mrb[9].mxu1 }
 0x14a   :  { %v4354_v60 = vadd.f32 %v290_v59, %v161_v44  ;;  %v292_v61 = vpop.f32.mrb[10].mxu1 }
 0x14b   :  { %v4356_v62 = vadd.f32 %v292_v61, %v157_v42  ;;  %v294_v63 = vpop.f32.mrb[11].mxu1 }
 0x14c   :  { %v4358_v1 = vadd.f32 %v294_v63, %v161_v44 }
 0x150   :  { %v298_v7 = vpop.f32.mrb[12].mxu1  ;;  %v540_v9 = vpop.f32.mrb[0].mxu0 }
 0x151   :  { %v4360_v10 = vadd.f32 %v298_v7, %v157_v42  ;;  %v587_v16 = vadd.f32 %v540_v9, %v269_v3  ;;  %v300_v17 = vpop.f32.mrb[13].mxu1  ;;  %v542_v23 = vpop.f32.mrb[1].mxu0 }
 0x152   :  { %v4363_v36 = vadd.f32 %v300_v17, %v161_v44  ;;  %v594_v45 = vadd.f32 %v542_v23, %v271_v5  ;;  %v302_v47 = vpop.f32.mrb[14].mxu1  ;;  %v544_v49 = vpop.f32.mrb[2].mxu0 }
 0x153   :  { %v4365_v51 = vadd.f32 %v302_v47, %v157_v42  ;;  %v304_v53 = vpop.f32.mrb[15].mxu1  ;;  %v545_v55 = vpop.f32.mrb[3].mxu0  ;;  %v2891_v3 = vmul.f32 -1.442695, %v587_v16 }
 0x154   :  { %v4367_v41 = vadd.f32 %v304_v53, %v161_v44  ;;  %v2892_v55 = vmul.f32 -1.442695, %v594_v45 }
 0x155   :  { %3663 = vpow2.f32 %v2891_v3  ;;  %v4388_v3 = vld [vmem:[%s5334_s4] ss:$0 sm:$0xff] }
 0x156   :  { %5352 = vst [vmem:[#allocation15_spill] sm:$0xff] %v4367_v41  ;;  %3665 = vpow2.f32 %v2892_v55 }
 0x158   :  { %v3161_v57 = vpop.f32.mrb[16].mxu1 }
 0x159   :  { %v4371_v59 = vadd.f32 %v3161_v57, %v165_v43  ;;  %v341_v61 = vpop.f32.mrb[17].mxu1 }
 0x15a   :  { %v3162_v63 = vpop.f32.mrb[18].mxu1 }
 0x15b   :  { %v4373_v7 = vadd.f32 %v3162_v63, %v165_v43  ;;  %v344_v5 = vpop.f32.mrb[19].mxu1 }
 0x15c   :  { %v4375_v9 = vadd.f32 %v344_v5, %v165_v43 }
 0x15f   :  { %v3664_v16 = vpop.eup %3663 }
 0x160   :  { %v3165_v42 = vpop.f32.mrb[20].mxu1  ;;  %v591_v57 = vadd.f32 1.0, %v3664_v16  ;;  %v3666_v63 = vpop.eup %3665 }
 0x161   :  { %v4377_v17 = vadd.f32 %v3165_v42, %v165_v43  ;;  %v357_v44 = vpop.f32.mrb[21].mxu1  ;;  %v598_v5 = vadd.f32 1.0, %v3666_v63 }
 0x162   :  { %v4379_v23 = vadd.f32 %v357_v44, %v165_v43  ;;  %v3166_v47 = vpop.f32.mrb[22].mxu1  ;;  %3667 = vrcp.f32 %v591_v57 }
 0x163   :  { %v4381_v39 = vadd.f32 %v3166_v47, %v165_v43  ;;  %v360_v49 = vpop.f32.mrb[23].mxu1  ;;  %3669 = vrcp.f32 %v598_v5 }
 0x164   :  { %v4383_v53 = vadd.f32 %v360_v49, %v165_v43  ;;  %v342_v49 = vadd.f32 %v341_v61, %v165_v43 }
 0x165   :  { %5353 = vst [vmem:[#allocation16_spill] sm:$0xff] %v4381_v39 }
 0x16c   :  { %v3668_v27 = vpop.eup %3667 }
 0x16d   :  { %v3670_v16 = vpop.eup %3669 }
 0x16e   :  { %v605_v57 = vsub.f32 1.0, %v3670_v16  ;;  %v607_v37 = vmul.f32 0.0, %v3670_v16 }
 0x178   :  { %v581_v42 = vpop.f32.mrb[24].mxu1 }
 0x179   :  { %v601_v44 = vadd.f32 %v4388_v3, %v581_v42  ;;  %v3185_v47 = vpop.f32.mrb[25].mxu1 }
 0x17a   :  { %v584_v40 = vpop.f32.mrb[26].mxu1 }
 0x17b   :  { %v602_v45 = vmul.f32 %v3668_v27, %v601_v44  ;;  %v3186_v38 = vpop.f32.mrb[27].mxu1  ;;  %v5355_v40 = vmov 0  }
 0x17c   :  { %v5354_v38 = vmov 0.0  }
 0x17d   :  { %v603_v55 = vadd.f32 %v602_v45, %v342_v49 }
 0x17f   :  { %3671 = vtanh.f32 %v603_v55 }
 0x189   :  { %v3672_v0 = vpop.eup %3671 }
 0x18a   :  { %v606_v20 = vmul.f32 %v3672_v0, %v605_v57 }
 0x18c   :  { %v4391_v39 = vadd.f32 %v607_v37, %v606_v20 }
 0x18e   :  { %v610_v63 = vpack.c.bf16 %v4391_v39, %v4391_v39 }
 0x190   :  { %644 = vmatmul.mubr.bf16.vlgmr.msra.gmra.mrb[4].mxu0 %v610_v63  ;;  %3204 = vmatmul.mubr.bf16.vlgmr.msra.gmra.mrb[28].mxu1 %v610_v63 }
 0x191   :  { %718 = vmatpush1.bf16.msra.mxu0 %v4124_v4  ;;  %3208 = vmatpush3.bf16.msra.mxu1 %v4241_v28 }
 0x192   :  { %719 = vmatprep.subr.bf16.mxu0 %v4131_v6  ;;  %3209 = vmatprep.subr.bf16.mxu1 %v5354_v38 }
 0x193   :  { %749 = vmatprep.mubr.bf16.mxu0 %v5355_v40  ;;  %3223 = vmatprep.mubr.msk.bf16.mxu1 %vm3993_vm1, %v5354_v38 }
 0x195   :  { %720 = vmatpush1.bf16.msra.mxu0 %v4136_v8  ;;  %3210 = vmatpush3.bf16.msra.mxu1 %v4248_v29 }
 0x196   :  { %721 = vmatprep.subr.bf16.mxu0 %v4146_v11  ;;  %3211 = vmatprep.subr.bf16.mxu1 %v5354_v38 }
 0x199   :  { %722 = vmatpush1.bf16.msra.mxu0 %v4151_v12  ;;  %3212 = vmatpush3.bf16.msra.mxu1 %v4258_v30 }
 0x19a   :  { %723 = vmatprep.subr.bf16.mxu0 %v4156_v13  ;;  %3213 = vmatprep.subr.bf16.mxu1 %v5354_v38 }
 0x19d   :  { %724 = vmatpush1.bf16.msra.mxu0 %v4164_v14  ;;  %3214 = vmatpush3.bf16.msra.mxu1 %v4267_v31 }
 0x19e   :  { %725 = vmatprep.subr.bf16.mxu0 %v4171_v15  ;;  %3215 = vmatprep.subr.bf16.mxu1 %v5354_v38 }
 0x1a1   :  { %726 = vmatpush1.bf16.msra.mxu0 %v4180_v18  ;;  %3216 = vmatpush3.bf16.msra.mxu1 %v4281_v32 }
 0x1a2   :  { %727 = vmatprep.subr.bf16.mxu0 %v4186_v19  ;;  %3217 = vmatprep.subr.bf16.mxu1 %v5354_v38 }
 0x1a5   :  { %728 = vmatpush1.bf16.msra.mxu0 %v4194_v21  ;;  %3218 = vmatpush3.bf16.msra.mxu1 %v4290_v33 }
 0x1a6   :  { %729 = vmatprep.subr.bf16.mxu0 %v4201_v22  ;;  %3219 = vmatprep.subr.bf16.mxu1 %v5354_v38 }
 0x1a9   :  { %730 = vmatpush1.bf16.msra.mxu0 %v4210_v24  ;;  %3220 = vmatpush3.bf16.msra.mxu1 %v4299_v34 }
 0x1aa   :  { %731 = vmatprep.subr.bf16.mxu0 %v4216_v25  ;;  %3221 = vmatprep.subr.bf16.mxu1 %v5354_v38 }
 0x1ad   :  { %732 = vmatpush1.bf16.msra.mxu0 %v4222_v26  ;;  %3222 = vmatpush3.bf16.msra.mxu1 %v4308_v35 }
 0x1ae   :  { %823 = vmatprep.subr.bf16.mxu0 %v4119_v2  ;;  %3227 = vmatprep.subr.bf16.mxu1 %v5354_v38 }
 0x263   :  { %v645_v0 = vpop.f32.mrb[4].mxu0  ;;  %v686_v20 = vpop.f32.mrb[28].mxu1 }
 0x264   :  { %v692_v37 = vadd.f32 %v645_v0, %v4340_v46  ;;  %v647_v27 = vpop.f32.mrb[5].mxu0  ;;  %v3205_v43 = vpop.f32.mrb[29].mxu1  ;;  %v706_v41 = vadd.f32 %v4388_v3, %v686_v20 }
 0x265   :  { %v699_v61 = vadd.f32 %v647_v27, %v4342_v48  ;;  %v649_v5 = vpop.f32.mrb[6].mxu0  ;;  %v689_v42 = vpop.f32.mrb[30].mxu1 }
 0x266   :  { %v2893_v44 = vmul.f32 -1.442695, %v692_v37  ;;  %v650_v47 = vpop.f32.mrb[7].mxu0  ;;  %v3206_v49 = vpop.f32.mrb[31].mxu1 }
 0x267   :  { %v2894_v45 = vmul.f32 -1.442695, %v699_v61 }
 0x268   :  { %3673 = vpow2.f32 %v2893_v44 }
 0x269   :  { %3675 = vpow2.f32 %v2894_v45 }
 0x272   :  { %v3674_v55 = vpop.eup %3673 }
 0x273   :  { %v696_v16 = vadd.f32 1.0, %v3674_v55  ;;  %v3676_v57 = vpop.eup %3675 }
 0x274   :  { %v703_v63 = vadd.f32 1.0, %v3676_v57 }
 0x275   :  { %3677 = vrcp.f32 %v696_v16 }
 0x276   :  { %3679 = vrcp.f32 %v703_v63 }
 0x27f   :  { %v3678_v46 = vpop.eup %3677 }
 0x280   :  { %v707_v0 = vmul.f32 %v3678_v46, %v706_v41  ;;  %v3680_v27 = vpop.eup %3679 }
 0x281   :  { %v710_v37 = vsub.f32 1.0, %v3680_v27  ;;  %v712_v61 = vmul.f32 %v3680_v27, %v4391_v39 }
 0x282   :  { %v708_v48 = vadd.f32 %v707_v0, %v4375_v9 }
 0x284   :  { %3681 = vtanh.f32 %v708_v48 }
 0x28e   :  { %v3682_v43 = vpop.eup %3681 }
 0x28f   :  { %v711_v5 = vmul.f32 %v3682_v43, %v710_v37 }
 0x291   :  { %v4435_v42 = vadd.f32 %v712_v61, %v711_v5 }
 0x293   :  { %v716_v44 = vpack.c.bf16 %v4435_v42, %v4435_v42 }
 0x295   :  { %750 = vmatmul.mubr.bf16.vlgmr.msra.gmra.mrb[8].mxu0 %v716_v44  ;;  %3224 = vmatmul.mubr.bf16.vlgmr.msra.gmra.mrb[32].mxu1 %v716_v44 }
 0x296   :  { %824 = vmatpush1.bf16.msra.mxu0 %v4124_v4  ;;  %3228 = vmatpush3.bf16.msra.mxu1 %v4241_v28 }
 0x297   :  { %825 = vmatprep.subr.bf16.mxu0 %v4131_v6  ;;  %3229 = vmatprep.subr.bf16.mxu1 %v5354_v38 }
 0x298   :  { %855 = vmatprep.mubr.bf16.mxu0 %v5355_v40  ;;  %3243 = vmatprep.mubr.msk.bf16.mxu1 %vm3993_vm1, %v5354_v38 }
 0x29a   :  { %826 = vmatpush1.bf16.msra.mxu0 %v4136_v8  ;;  %3230 = vmatpush3.bf16.msra.mxu1 %v4248_v29 }
 0x29b   :  { %827 = vmatprep.subr.bf16.mxu0 %v4146_v11  ;;  %3231 = vmatprep.subr.bf16.mxu1 %v5354_v38 }
 0x29e   :  { %828 = vmatpush1.bf16.msra.mxu0 %v4151_v12  ;;  %3232 = vmatpush3.bf16.msra.mxu1 %v4258_v30 }
 0x29f   :  { %829 = vmatprep.subr.bf16.mxu0 %v4156_v13  ;;  %3233 = vmatprep.subr.bf16.mxu1 %v5354_v38 }
 0x2a2   :  { %830 = vmatpush1.bf16.msra.mxu0 %v4164_v14  ;;  %3234 = vmatpush3.bf16.msra.mxu1 %v4267_v31 }
 0x2a3   :  { %831 = vmatprep.subr.bf16.mxu0 %v4171_v15  ;;  %3235 = vmatprep.subr.bf16.mxu1 %v5354_v38 }
 0x2a6   :  { %832 = vmatpush1.bf16.msra.mxu0 %v4180_v18  ;;  %3236 = vmatpush3.bf16.msra.mxu1 %v4281_v32 }
 0x2a7   :  { %833 = vmatprep.subr.bf16.mxu0 %v4186_v19  ;;  %3237 = vmatprep.subr.bf16.mxu1 %v5354_v38 }
 0x2aa   :  { %834 = vmatpush1.bf16.msra.mxu0 %v4194_v21  ;;  %3238 = vmatpush3.bf16.msra.mxu1 %v4290_v33 }
 0x2ab   :  { %835 = vmatprep.subr.bf16.mxu0 %v4201_v22  ;;  %3239 = vmatprep.subr.bf16.mxu1 %v5354_v38 }
 0x2ae   :  { %836 = vmatpush1.bf16.msra.mxu0 %v4210_v24  ;;  %3240 = vmatpush3.bf16.msra.mxu1 %v4299_v34 }
 0x2af   :  { %837 = vmatprep.subr.bf16.mxu0 %v4216_v25  ;;  %3241 = vmatprep.subr.bf16.mxu1 %v5354_v38 }
 0x2b2   :  { %838 = vmatpush1.bf16.msra.mxu0 %v4222_v26  ;;  %3242 = vmatpush3.bf16.msra.mxu1 %v4308_v35 }
 0x2b3   :  { %929 = vmatprep.subr.bf16.mxu0 %v4119_v2  ;;  %3247 = vmatprep.subr.bf16.mxu1 %v5354_v38 }
 0x368   :  { %v751_v41 = vpop.f32.mrb[8].mxu0  ;;  %v792_v9 = vpop.f32.mrb[32].mxu1 }
 0x369   :  { %v798_v20 = vadd.f32 %v751_v41, %v4344_v50  ;;  %v753_v47 = vpop.f32.mrb[9].mxu0  ;;  %v3225_v49 = vpop.f32.mrb[33].mxu1  ;;  %v812_v5 = vadd.f32 %v4388_v3, %v792_v9 }
 0x36a   :  { %v805_v45 = vadd.f32 %v753_v47, %v4346_v52  ;;  %v755_v55 = vpop.f32.mrb[10].mxu0  ;;  %v795_v16 = vpop.f32.mrb[34].mxu1 }
 0x36b   :  { %v2895_v57 = vmul.f32 -1.442695, %v798_v20  ;;  %v756_v63 = vpop.f32.mrb[11].mxu0  ;;  %v3226_v46 = vpop.f32.mrb[35].mxu1 }
 0x36c   :  { %v2896_v0 = vmul.f32 -1.442695, %v805_v45 }
 0x36d   :  { %3683 = vpow2.f32 %v2895_v57 }
 0x36e   :  { %3685 = vpow2.f32 %v2896_v0 }
 0x377   :  { %v3684_v48 = vpop.eup %3683 }
 0x378   :  { %v802_v27 = vadd.f32 1.0, %v3684_v48  ;;  %v3686_v37 = vpop.eup %3685 }
 0x379   :  { %v809_v43 = vadd.f32 1.0, %v3686_v37 }
 0x37a   :  { %3687 = vrcp.f32 %v802_v27 }
 0x37b   :  { %3689 = vrcp.f32 %v809_v43 }
 0x384   :  { %v3688_v50 = vpop.eup %3687 }
 0x385   :  { %v813_v61 = vmul.f32 %v3688_v50, %v812_v5  ;;  %v3690_v44 = vpop.eup %3689 }
 0x386   :  { %v816_v41 = vsub.f32 1.0, %v3690_v44  ;;  %v818_v49 = vmul.f32 %v3690_v44, %v4435_v42 }
 0x387   :  { %v814_v52 = vadd.f32 %v813_v61, %v4371_v59 }
 0x389   :  { %3691 = vtanh.f32 %v814_v52 }
 0x393   :  { %v3692_v20 = vpop.eup %3691 }
 0x394   :  { %v817_v47 = vmul.f32 %v3692_v20, %v816_v41  ;;  %v4530_v41 = vld [vmem:[%s5332_s2] ss:$12 sps:$4 sm:$0xff]   ;;  %v4547_v20 = vld [vmem:[%s5332_s2 + $0x18] ss:$12 sps:$4 sm:$0xff]  }
 0x396   :  { %v4479_v45 = vadd.f32 %v818_v49, %v817_v47  ;;  %v4554_v47 = vld [vmem:[%s5332_s2 + $0x34] ss:$12 sps:$4 sm:$0xff]   ;;  %v4561_v49 = vld [vmem:[%s5332_s2 + $0x30] ss:$12 sps:$4 sm:$0xff]  }
 0x398   :  { %v822_v55 = vpack.c.bf16 %v4479_v45, %v4479_v45 }
 0x39a   :  { %856 = vmatmul.mubr.bf16.vlgmr.msra.gmra.mrb[12].mxu0 %v822_v55  ;;  %3244 = vmatmul.mubr.bf16.vlgmr.msra.gmra.mrb[36].mxu1 %v822_v55  ;;  %v4568_v55 = vld [vmem:[%s5332_s2 + $0x4c] ss:$12 sps:$4 sm:$0xff]  }
 0x39b   :  { %930 = vmatpush1.bf16.msra.mxu0 %v4124_v4  ;;  %3248 = vmatpush3.bf16.msra.mxu1 %v4241_v28 }
 0x39c   :  { %931 = vmatprep.subr.bf16.mxu0 %v4131_v6  ;;  %3249 = vmatprep.subr.bf16.mxu1 %v5354_v38 }
 0x39d   :  { %961 = vmatprep.mubr.bf16.mxu0 %v5355_v40  ;;  %3263 = vmatprep.mubr.msk.bf16.mxu1 %vm3993_vm1, %v5354_v38 }
 0x39f   :  { %932 = vmatpush1.bf16.msra.mxu0 %v4136_v8  ;;  %3250 = vmatpush3.bf16.msra.mxu1 %v4248_v29 }
 0x3a0   :  { %933 = vmatprep.subr.bf16.mxu0 %v4146_v11  ;;  %3251 = vmatprep.subr.bf16.mxu1 %v5354_v38 }
 0x3a3   :  { %934 = vmatpush1.bf16.msra.mxu0 %v4151_v12  ;;  %3252 = vmatpush3.bf16.msra.mxu1 %v4258_v30 }
 0x3a4   :  { %935 = vmatprep.subr.bf16.mxu0 %v4156_v13  ;;  %3253 = vmatprep.subr.bf16.mxu1 %v5354_v38 }
 0x3a7   :  { %936 = vmatpush1.bf16.msra.mxu0 %v4164_v14  ;;  %3254 = vmatpush3.bf16.msra.mxu1 %v4267_v31 }
 0x3a8   :  { %937 = vmatprep.subr.bf16.mxu0 %v4171_v15  ;;  %3255 = vmatprep.subr.bf16.mxu1 %v5354_v38 }
 0x3ab   :  { %938 = vmatpush1.bf16.msra.mxu0 %v4180_v18  ;;  %3256 = vmatpush3.bf16.msra.mxu1 %v4281_v32 }
 0x3ac   :  { %939 = vmatprep.subr.bf16.mxu0 %v4186_v19  ;;  %3257 = vmatprep.subr.bf16.mxu1 %v5354_v38 }
 0x3af   :  { %940 = vmatpush1.bf16.msra.mxu0 %v4194_v21  ;;  %3258 = vmatpush3.bf16.msra.mxu1 %v4290_v33 }
 0x3b0   :  { %941 = vmatprep.subr.bf16.mxu0 %v4201_v22  ;;  %3259 = vmatprep.subr.bf16.mxu1 %v5354_v38 }
 0x3b3   :  { %942 = vmatpush1.bf16.msra.mxu0 %v4210_v24  ;;  %3260 = vmatpush3.bf16.msra.mxu1 %v4299_v34 }
 0x3b4   :  { %943 = vmatprep.subr.bf16.mxu0 %v4216_v25  ;;  %3261 = vmatprep.subr.bf16.mxu1 %v5354_v38 }
 0x3b7   :  { %944 = vmatpush1.bf16.msra.mxu0 %v4222_v26  ;;  %3262 = vmatpush3.bf16.msra.mxu1 %v4308_v35 }
 0x3b8   :  { %1035 = vmatprep.subr.bf16.mxu0 %v4119_v2  ;;  %3267 = vmatprep.subr.bf16.mxu1 %v5354_v38 }
 0x46d   :  { %v857_v4 = vpop.f32.mrb[12].mxu0  ;;  %v898_v6 = vpop.f32.mrb[36].mxu1 }
 0x46e   :  { %v904_v8 = vadd.f32 %v857_v4, %v4348_v54  ;;  %v859_v11 = vpop.f32.mrb[13].mxu0  ;;  %v3245_v12 = vpop.f32.mrb[37].mxu1  ;;  %v918_v48 = vadd.f32 %v4388_v3, %v898_v6  ;;  %v4575_v4 = vld [vmem:[%s5332_s2 + $0x48] ss:$12 sps:$4 sm:$0xff]   ;;  %v4582_v6 = vld [vmem:[%s5332_s2 + $0x64] ss:$12 sps:$4 sm:$0xff]  }
 0x46f   :  { %v911_v13 = vadd.f32 %v859_v11, %v4350_v56  ;;  %v861_v14 = vpop.f32.mrb[14].mxu0  ;;  %v901_v15 = vpop.f32.mrb[38].mxu1 }
 0x470   :  { %v2897_v59 = vmul.f32 -1.442695, %v904_v8  ;;  %v862_v9 = vpop.f32.mrb[15].mxu0  ;;  %v3246_v16 = vpop.f32.mrb[39].mxu1 }
 0x471   :  { %v2898_v57 = vmul.f32 -1.442695, %v911_v13 }
 0x472   :  { %3693 = vpow2.f32 %v2897_v59 }
 0x473   :  { %3695 = vpow2.f32 %v2898_v57 }
 0x47c   :  { %v3694_v63 = vpop.eup %3693 }
 0x47d   :  { %v908_v2 = vadd.f32 1.0, %v3694_v63  ;;  %v3696_v46 = vpop.eup %3695 }
 0x47e   :  { %v915_v0 = vadd.f32 1.0, %v3696_v46 }
 0x47f   :  { %3697 = vrcp.f32 %v908_v2 }
 0x480   :  { %3699 = vrcp.f32 %v915_v0 }
 0x489   :  { %v3698_v54 = vpop.eup %3697 }
 0x48a   :  { %v919_v27 = vmul.f32 %v3698_v54, %v918_v48  ;;  %v3700_v37 = vpop.eup %3699 }
 0x48b   :  { %v922_v43 = vsub.f32 1.0, %v3700_v37  ;;  %v924_v61 = vmul.f32 %v3700_v37, %v4479_v45 }
 0x48c   :  { %v920_v56 = vadd.f32 %v919_v27, %v4373_v7  ;;  %v4537_v7 = vld [vmem:[%s5332_s2 + $0x1c] ss:$12 sps:$4 sm:$0xff]  }
 0x48e   :  { %3701 = vtanh.f32 %v920_v56 }
 0x498   :  { %v3702_v5 = vpop.eup %3701 }
 0x499   :  { %v923_v50 = vmul.f32 %v3702_v5, %v922_v43  ;;  %v4666_v43 = vld [vmem:[%s5332_s2 + $0x90] ss:$12 sps:$4 sm:$0xff]   ;;  %v4673_v5 = vld [vmem:[%s5332_s2 + $0xac] ss:$12 sps:$4 sm:$0xff]  }
 0x49b   :  { %v4523_v52 = vadd.f32 %v924_v61, %v923_v50  ;;  %v4680_v50 = vld [vmem:[%s5332_s2 + $0xa8] ss:$12 sps:$4 sm:$0xff]  }
 0x49d   :  { %v928_v44 = vpack.c.bf16 %v4523_v52, %v4523_v52 }
 0x49f   :  { %962 = vmatmul.mubr.bf16.vlgmr.msra.gmra.mrb[16].mxu0 %v928_v44  ;;  %3264 = vmatmul.mubr.bf16.vlgmr.msra.gmra.mrb[40].mxu1 %v928_v44 }
 0x4a0   :  { %1036 = vmatpush1.bf16.msra.mxu0 %v4530_v41  ;;  %3268 = vmatpush3.bf16.msra.mxu1 %v4241_v28 }
 0x4a1   :  { %1037 = vmatprep.subr.bf16.mxu0 %v4537_v7  ;;  %3269 = vmatprep.subr.bf16.mxu1 %v5354_v38 }
 0x4a2   :  { %1067 = vmatprep.mubr.bf16.mxu0 %v5355_v40  ;;  %3283 = vmatprep.mubr.msk.bf16.mxu1 %vm3993_vm1, %v5354_v38 }
 0x4a4   :  { %1038 = vmatpush1.bf16.msra.mxu0 %v4547_v20  ;;  %3270 = vmatpush3.bf16.msra.mxu1 %v4248_v29 }
 0x4a5   :  { %1039 = vmatprep.subr.bf16.mxu0 %v4554_v47  ;;  %3271 = vmatprep.subr.bf16.mxu1 %v5354_v38 }
 0x4a8   :  { %1040 = vmatpush1.bf16.msra.mxu0 %v4561_v49  ;;  %3272 = vmatpush3.bf16.msra.mxu1 %v4258_v30 }
 0x4a9   :  { %1041 = vmatprep.subr.bf16.mxu0 %v4568_v55  ;;  %3273 = vmatprep.subr.bf16.mxu1 %v5354_v38 }
 0x4ac   :  { %1042 = vmatpush1.bf16.msra.mxu0 %v4575_v4  ;;  %3274 = vmatpush3.bf16.msra.mxu1 %v4267_v31 }
 0x4ad   :  { %1043 = vmatprep.subr.bf16.mxu0 %v4582_v6  ;;  %3275 = vmatprep.subr.bf16.mxu1 %v5354_v38 }
 0x4b0   :  { %1044 = vmatpush1.bf16.msra.mxu0 %v4180_v18  ;;  %3276 = vmatpush3.bf16.msra.mxu1 %v4281_v32  ;;  %v4603_v18 = vld [vmem:[%s5332_s2 + $0x4] ss:$12 sps:$4 sm:$0xff]  }
 0x4b1   :  { %1045 = vmatprep.subr.bf16.mxu0 %v4186_v19  ;;  %3277 = vmatprep.subr.bf16.mxu1 %v5354_v38 }
 0x4b4   :  { %1046 = vmatpush1.bf16.msra.mxu0 %v4194_v21  ;;  %3278 = vmatpush3.bf16.msra.mxu1 %v4290_v33 }
 0x4b5   :  { %1047 = vmatprep.subr.bf16.mxu0 %v4201_v22  ;;  %3279 = vmatprep.subr.bf16.mxu1 %v5354_v38 }
 0x4b8   :  { %1048 = vmatpush1.bf16.msra.mxu0 %v4210_v24  ;;  %3280 = vmatpush3.bf16.msra.mxu1 %v4299_v34 }
 0x4b9   :  { %1049 = vmatprep.subr.bf16.mxu0 %v4216_v25  ;;  %3281 = vmatprep.subr.bf16.mxu1 %v5354_v38 }
 0x4bc   :  { %1050 = vmatpush1.bf16.msra.mxu0 %v4222_v26  ;;  %3282 = vmatpush3.bf16.msra.mxu1 %v4308_v35 }
 0x4bd   :  { %1141 = vmatprep.subr.bf16.mxu0 %v4603_v18  ;;  %3287 = vmatprep.subr.bf16.mxu1 %v5354_v38 }
 0x572   :  { %v963_v19 = vpop.f32.mrb[16].mxu0  ;;  %v1004_v21 = vpop.f32.mrb[40].mxu1 }
 0x573   :  { %v1010_v22 = vadd.f32 %v963_v19, %v4352_v58  ;;  %v965_v24 = vpop.f32.mrb[17].mxu0  ;;  %v3265_v25 = vpop.f32.mrb[41].mxu1  ;;  %v1024_v63 = vadd.f32 %v4388_v3, %v1004_v21 }
 0x574   :  { %v1017_v8 = vadd.f32 %v965_v24, %v4354_v60  ;;  %v967_v26 = vpop.f32.mrb[18].mxu0  ;;  %v1007_v11 = vpop.f32.mrb[42].mxu1 }
 0x575   :  { %v2899_v12 = vmul.f32 -1.442695, %v1010_v22  ;;  %v968_v13 = vpop.f32.mrb[19].mxu0  ;;  %v3266_v14 = vpop.f32.mrb[43].mxu1 }
 0x576   :  { %v2900_v15 = vmul.f32 -1.442695, %v1017_v8 }
 0x577   :  { %3703 = vpow2.f32 %v2899_v12 }
 0x578   :  { %3705 = vpow2.f32 %v2900_v15 }
 0x581   :  { %v3704_v59 = vpop.eup %3703 }
 0x582   :  { %v1014_v9 = vadd.f32 1.0, %v3704_v59  ;;  %v3706_v16 = vpop.eup %3705 }
 0x583   :  { %v1021_v57 = vadd.f32 1.0, %v3706_v16 }
 0x584   :  { %3707 = vrcp.f32 %v1014_v9 }
 0x585   :  { %3709 = vrcp.f32 %v1021_v57 }
 0x58e   :  { %v3708_v58 = vpop.eup %3707 }
 0x58f   :  { %v1025_v2 = vmul.f32 %v3708_v58, %v1024_v63  ;;  %v3710_v46 = vpop.eup %3709 }
 0x590   :  { %v1028_v0 = vsub.f32 1.0, %v3710_v46  ;;  %v1030_v27 = vmul.f32 %v3710_v46, %v4523_v52 }
 0x591   :  { %v1026_v60 = vadd.f32 %v1025_v2, %v4379_v23  ;;  %v4659_v23 = vld [vmem:[%s5332_s2 + $0x94] ss:$12 sps:$4 sm:$0xff]  }
 0x593   :  { %3711 = vtanh.f32 %v1026_v60 }
 0x59d   :  { %v3712_v48 = vpop.eup %3711 }
 0x59e   :  { %v1029_v54 = vmul.f32 %v3712_v48, %v1028_v0 }
 0x5a0   :  { %v4612_v56 = vadd.f32 %v1030_v27, %v1029_v54 }
 0x5a2   :  { %v1034_v37 = vpack.c.bf16 %v4612_v56, %v4612_v56 }
 0x5a4   :  { %1068 = vmatmul.mubr.bf16.vlgmr.msra.gmra.mrb[20].mxu0 %v1034_v37  ;;  %3284 = vmatmul.mubr.bf16.vlgmr.msra.gmra.mrb[44].mxu1 %v1034_v37 }
 0x5a5   :  { %1142 = vmatpush1.bf16.msra.mxu0 %v4530_v41  ;;  %3288 = vmatpush3.bf16.msra.mxu1 %v4241_v28  ;;  %v4638_v28 = vld [vmem:[%s5332_s2 + $0x60] ss:$12 sps:$4 sm:$0xff]  }
 0x5a6   :  { %1143 = vmatprep.subr.bf16.mxu0 %v4537_v7  ;;  %3289 = vmatprep.subr.bf16.mxu1 %v5354_v38 }
 0x5a7   :  { %1173 = vmatprep.mubr.bf16.mxu0 %v5355_v40  ;;  %3303 = vmatprep.mubr.msk.bf16.mxu1 %vm3993_vm1, %v5354_v38 }
 0x5a9   :  { %1144 = vmatpush1.bf16.msra.mxu0 %v4547_v20  ;;  %3290 = vmatpush3.bf16.msra.mxu1 %v4248_v29  ;;  %v4645_v29 = vld [vmem:[%s5332_s2 + $0x7c] ss:$12 sps:$4 sm:$0xff]  }
 0x5aa   :  { %1145 = vmatprep.subr.bf16.mxu0 %v4554_v47  ;;  %3291 = vmatprep.subr.bf16.mxu1 %v5354_v38 }
 0x5ad   :  { %1146 = vmatpush1.bf16.msra.mxu0 %v4561_v49  ;;  %3292 = vmatpush3.bf16.msra.mxu1 %v4258_v30  ;;  %v4652_v30 = vld [vmem:[%s5332_s2 + $0x78] ss:$12 sps:$4 sm:$0xff]  }
 0x5ae   :  { %1147 = vmatprep.subr.bf16.mxu0 %v4568_v55  ;;  %3293 = vmatprep.subr.bf16.mxu1 %v5354_v38 }
 0x5b1   :  { %1148 = vmatpush1.bf16.msra.mxu0 %v4575_v4  ;;  %3294 = vmatpush3.bf16.msra.mxu1 %v4267_v31 }
 0x5b2   :  { %1149 = vmatprep.subr.bf16.mxu0 %v4582_v6  ;;  %3295 = vmatprep.subr.bf16.mxu1 %v5354_v38 }
 0x5b5   :  { %1150 = vmatpush1.bf16.msra.mxu0 %v4638_v28  ;;  %3296 = vmatpush3.bf16.msra.mxu1 %v4281_v32 }
 0x5b6   :  { %1151 = vmatprep.subr.bf16.mxu0 %v4645_v29  ;;  %3297 = vmatprep.subr.bf16.mxu1 %v5354_v38 }
 0x5b9   :  { %1152 = vmatpush1.bf16.msra.mxu0 %v4652_v30  ;;  %3298 = vmatpush3.bf16.msra.mxu1 %v4290_v33 }
 0x5ba   :  { %1153 = vmatprep.subr.bf16.mxu0 %v4659_v23  ;;  %3299 = vmatprep.subr.bf16.mxu1 %v5354_v38 }
 0x5bd   :  { %1154 = vmatpush1.bf16.msra.mxu0 %v4666_v43  ;;  %3300 = vmatpush3.bf16.msra.mxu1 %v4299_v34 }
 0x5be   :  { %1155 = vmatprep.subr.bf16.mxu0 %v4673_v5  ;;  %3301 = vmatprep.subr.bf16.mxu1 %v5354_v38 }
 0x5c1   :  { %1156 = vmatpush1.bf16.msra.mxu0 %v4680_v50  ;;  %3302 = vmatpush3.bf16.msra.mxu1 %v4308_v35 }
 0x5c2   :  { %1247 = vmatprep.subr.bf16.mxu0 %v4603_v18  ;;  %3307 = vmatprep.subr.bf16.mxu1 %v5354_v38 }
 0x677   :  { %v1069_v61 = vpop.f32.mrb[20].mxu0  ;;  %v1110_v44 = vpop.f32.mrb[44].mxu1 }
 0x678   :  { %v1116_v19 = vadd.f32 %v1069_v61, %v4356_v62  ;;  %v1071_v21 = vpop.f32.mrb[21].mxu0  ;;  %v3285_v22 = vpop.f32.mrb[45].mxu1  ;;  %v1130_v9 = vadd.f32 %v4388_v3, %v1110_v44 }
 0x679   :  { %v1123_v24 = vadd.f32 %v1071_v21, %v4358_v1  ;;  %v1073_v25 = vpop.f32.mrb[22].mxu0  ;;  %v1113_v8 = vpop.f32.mrb[46].mxu1  ;;  %v3591_v22 = vld [vmem:[%s5335_s5] ss:$12 sps:$4 sm:$0xff]  }
 0x67a   :  { %v2901_v26 = vmul.f32 -1.442695, %v1116_v19  ;;  %v1074_v11 = vpop.f32.mrb[23].mxu0  ;;  %v3286_v12 = vpop.f32.mrb[47].mxu1  ;;  %v1360_v25 = vpack.c.bf16 %v4435_v42, %v4391_v39  ;;  %v3595_v8 = vld [vmem:[%s5335_s5 + $0x18] ss:$12 sps:$4 sm:$0xff]  }
 0x67b   :  { %v2902_v13 = vmul.f32 -1.442695, %v1123_v24  ;;  %v3598_v24 = vld [vmem:[%s5335_s5 + $0x20] ss:$12 sps:$4 sm:$0xff]   ;;  %v3602_v11 = vld [vmem:[%s5335_s5 + $0x38] ss:$12 sps:$4 sm:$0xff]  }
 0x67c   :  { %3713 = vpow2.f32 %v2901_v26  ;;  %v3601_v26 = vld [vmem:[%s5335_s5 + $0x34] ss:$12 sps:$4 sm:$0xff]   ;;  %v3599_v39 = vld [vmem:[%s5335_s5 + $0x30] ss:$12 sps:$4 sm:$0xff]   ;;  %v3605_v42 = vld [vmem:[%s5335_s5 + $0x4c] ss:$12 sps:$4 sm:$0xff]  }
 0x67d   :  { %3715 = vpow2.f32 %v2902_v13  ;;  %v3606_v12 = vld [vmem:[%s5335_s5 + $0x50] ss:$12 sps:$4 sm:$0xff]   ;;  %v3603_v13 = vld [vmem:[%s5335_s5 + $0x48] ss:$12 sps:$4 sm:$0xff]  }
 0x686   :  { %v3714_v14 = vpop.eup %3713 }
 0x687   :  { %v1120_v18 = vadd.f32 1.0, %v3714_v14  ;;  %v3716_v15 = vpop.eup %3715  ;;  %v3609_v14 = vld [vmem:[%s5335_s5 + $0x64] ss:$12 sps:$4 sm:$0xff]  }
 0x688   :  { %v1127_v59 = vadd.f32 1.0, %v3716_v15  ;;  %v3607_v15 = vld [vmem:[%s5335_s5 + $0x60] ss:$12 sps:$4 sm:$0xff]  }
 0x689   :  { %3717 = vrcp.f32 %v1120_v18  ;;  %v3610_v18 = vld [vmem:[%s5335_s5 + $0x68] ss:$12 sps:$4 sm:$0xff]  }
 0x68a   :  { %3719 = vrcp.f32 %v1127_v59  ;;  %v3613_v59 = vld [vmem:[%s5335_s5 + $0x7c] ss:$12 sps:$4 sm:$0xff]  }
 0x693   :  { %v3718_v62 = vpop.eup %3717 }
 0x694   :  { %v1131_v16 = vmul.f32 %v3718_v62, %v1130_v9  ;;  %v3720_v57 = vpop.eup %3719  ;;  %v3614_v9 = vld [vmem:[%s5335_s5 + $0x80] ss:$12 sps:$4 sm:$0xff]   ;;  %v3611_v62 = vld [vmem:[%s5335_s5 + $0x78] ss:$12 sps:$4 sm:$0xff]  }
 0x695   :  { %v1134_v63 = vsub.f32 1.0, %v3720_v57  ;;  %v1136_v60 = vmul.f32 %v3720_v57, %v4612_v56  ;;  %v3615_v57 = vld [vmem:[%s5335_s5 + $0x90] ss:$12 sps:$4 sm:$0xff]  }
 0x696   :  { %v1132_v1 = vadd.f32 %v1131_v16, %v4383_v53  ;;  %v3839_v53 = vld [vmem:[%s5332_s2 + $0x8] ss:$12 sps:$4 sm:$0xff]  }
 0x697   :  { %v3617_v16 = vld [vmem:[%s5335_s5 + $0x94] ss:$12 sps:$4 sm:$0xff]  }
 0x698   :  { %3721 = vtanh.f32 %v1132_v1  ;;  %v3618_v1 = vld [vmem:[%s5335_s5 + $0x98] ss:$12 sps:$4 sm:$0xff]  }
 0x6a2   :  { %v3722_v58 = vpop.eup %3721 }
 0x6a3   :  { %v1135_v2 = vmul.f32 %v3722_v58, %v1134_v63  ;;  %v3621_v63 = vld [vmem:[%s5335_s5 + $0xac] ss:$12 sps:$4 sm:$0xff]   ;;  %v3622_v58 = vld [vmem:[%s5335_s5 + $0xb0] ss:$12 sps:$4 sm:$0xff]  }
 0x6a5   :  { %v4691_v46 = vadd.f32 %v1136_v60, %v1135_v2  ;;  %v3619_v2 = vld [vmem:[%s5335_s5 + $0xa8] ss:$12 sps:$4 sm:$0xff]   ;;  %v1361_v60 = vpack.c.bf16 %v4523_v52, %v4479_v45  ;;  %v4832_v45 = vld [vmem:[#allocation7 + $0x1c] ss:$12 sps:$4 sm:$0xff]  }
 0x6a6   :  { %v4834_v52 = vld [vmem:[#allocation7 + $0x18] ss:$12 sps:$4 sm:$0xff]  }
 0x6a7   :  { %v1140_v0 = vpack.c.bf16 %v4691_v46, %v4691_v46 }
 0x6a9   :  { %1174 = vmatmul.mubr.bf16.vlgmr.msra.gmra.mrb[24].mxu0 %v1140_v0  ;;  %3304 = vmatmul.mubr.bf16.vlgmr.msra.gmra.mrb[48].mxu1 %v1140_v0  ;;  %v1362_v0 = vpack.c.bf16 %v4691_v46, %v4612_v56  ;;  %v4838_v56 = vld [vmem:[#allocation7 + $0x34] ss:$12 sps:$4 sm:$0xff]  }
 0x6aa   :  { %1248 = vmatpush1.bf16.msra.mxu0 %v4530_v41  ;;  %3308 = vmatpush3.bf16.msra.mxu1 %v3839_v53  ;;  %v3840_v41 = vld [vmem:[%s5332_s2 + $0x20] ss:$12 sps:$4 sm:$0xff]   ;;  %v4826_v53 = vld [vmem:[#allocation7 + $0x4] ss:$12 sps:$4 sm:$0xff]  }
 0x6ab   :  { %1249 = vmatprep.subr.bf16.mxu0 %v4537_v7  ;;  %3309 = vmatprep.subr.bf16.mxu1 %v5354_v38  ;;  %v3841_v7 = vld [vmem:[%s5332_s2 + $0x38] ss:$12 sps:$4 sm:$0xff]  }
 0x6ac   :  { %1279 = vmatprep.mubr.bf16.mxu0 %v5355_v40  ;;  %3323 = vmatprep.mubr.msk.bf16.mxu1 %vm3993_vm1, %v5354_v38 }
 0x6ae   :  { %1250 = vmatpush1.bf16.msra.mxu0 %v4547_v20  ;;  %3310 = vmatpush3.bf16.msra.mxu1 %v3840_v41  ;;  %v4828_v41 = vld [vmem:[#allocation7] ss:$12 sps:$4 sm:$0xff]  }
 0x6af   :  { %1251 = vmatprep.subr.bf16.mxu0 %v4554_v47  ;;  %3311 = vmatprep.subr.bf16.mxu1 %v5354_v38 }
 0x6b2   :  { %1252 = vmatpush1.bf16.msra.mxu0 %v4561_v49  ;;  %3312 = vmatpush3.bf16.msra.mxu1 %v3841_v7  ;;  %v4844_v7 = vld [vmem:[#allocation7 + $0x4c] ss:$12 sps:$4 sm:$0xff]  }
 0x6b3   :  { %1253 = vmatprep.subr.bf16.mxu0 %v4568_v55  ;;  %3313 = vmatprep.subr.bf16.mxu1 %v5354_v38 }
 0x6b6   :  { %1254 = vmatpush1.bf16.msra.mxu0 %v4575_v4  ;;  %3314 = vmatpush3.bf16.msra.mxu1 %v4267_v31  ;;  %v3593_v31 = vld [vmem:[%s5335_s5 + $0x4] ss:$12 sps:$4 sm:$0xff]  }
 0x6b7   :  { %1255 = vmatprep.subr.bf16.mxu0 %v4582_v6  ;;  %3315 = vmatprep.subr.bf16.mxu1 %v5354_v38 }
 0x6ba   :  { %1256 = vmatpush1.bf16.msra.mxu0 %v4638_v28  ;;  %3316 = vmatpush3.bf16.msra.mxu1 %v4281_v32  ;;  %v3594_v32 = vld [vmem:[%s5335_s5 + $0x8] ss:$12 sps:$4 sm:$0xff]  }
 0x6bb   :  { %1257 = vmatprep.subr.bf16.mxu0 %v4645_v29  ;;  %3317 = vmatprep.subr.bf16.mxu1 %v5354_v38 }
 0x6be   :  { %1258 = vmatpush1.bf16.msra.mxu0 %v4652_v30  ;;  %3318 = vmatpush3.bf16.msra.mxu1 %v4290_v33 }
 0x6bf   :  { %1259 = vmatprep.subr.bf16.mxu0 %v4659_v23  ;;  %3319 = vmatprep.subr.bf16.mxu1 %v5354_v38 }
 0x6c2   :  { %1260 = vmatpush1.bf16.msra.mxu0 %v4666_v43  ;;  %3320 = vmatpush3.bf16.msra.mxu1 %v4299_v34 }
 0x6c3   :  { %1261 = vmatprep.subr.bf16.mxu0 %v4673_v5  ;;  %3321 = vmatprep.subr.bf16.mxu1 %v5354_v38 }
 0x6c6   :  { %1262 = vmatpush1.bf16.msra.mxu0 %v4680_v50  ;;  %3322 = vmatpush3.bf16.msra.mxu1 %v4308_v35 }
 0x6c7   :  { %1574 = vmatprep.subr.bf16.mxu0 %v3593_v31  ;;  %3327 = vmatprep.subr.bf16.mxu1 %v3594_v32  ;;  %v4847_v31 = vld [vmem:[#allocation7 + $0x48] ss:$12 sps:$4 sm:$0xff]  }
 0x77c   :  { %v1175_v33 = vpop.f32.mrb[24].mxu0  ;;  %v1216_v34 = vpop.f32.mrb[48].mxu1 }
 0x77d   :  { %v1222_v20 = vadd.f32 %v1175_v33, %v4360_v10  ;;  %v1177_v47 = vpop.f32.mrb[25].mxu0  ;;  %v3305_v49 = vpop.f32.mrb[49].mxu1  ;;  %v1236_v23 = vadd.f32 %v4388_v3, %v1216_v34  ;;  %v4852_v33 = vld [vmem:[#allocation7 + $0x60] ss:$12 sps:$4 sm:$0xff]   ;;  %v4856_v34 = vld [vmem:[#allocation7 + $0x7c] ss:$12 sps:$4 sm:$0xff]  }
 0x77e   :  { %v1229_v55 = vadd.f32 %v1177_v47, %v4363_v36  ;;  %v1179_v4 = vpop.f32.mrb[26].mxu0  ;;  %v1219_v35 = vpop.f32.mrb[50].mxu1  ;;  %v4862_v47 = vld [vmem:[#allocation7 + $0x94] ss:$12 sps:$4 sm:$0xff]  }
 0x77f   :  { %v2903_v6 = vmul.f32 -1.442695, %v1222_v20  ;;  %v1180_v48 = vpop.f32.mrb[27].mxu0  ;;  %v3306_v54 = vpop.f32.mrb[51].mxu1  ;;  %v4859_v20 = vld [vmem:[#allocation7 + $0x78] ss:$12 sps:$4 sm:$0xff]  }
 0x780   :  { %v2904_v27 = vmul.f32 -1.442695, %v1229_v55  ;;  %v4864_v49 = vld [vmem:[#allocation7 + $0x8] ss:$12 sps:$4 sm:$0xff]   ;;  %v4866_v55 = vld [vmem:[#allocation7 + $0x90] ss:$12 sps:$4 sm:$0xff]  }
 0x781   :  { %3723 = vpow2.f32 %v2903_v6  ;;  %v4871_v4 = vld [vmem:[#allocation7 + $0xac] ss:$12 sps:$4 sm:$0xff]   ;;  %v4874_v35 = vld [vmem:[#allocation7 + $0xa8] ss:$12 sps:$4 sm:$0xff]   ;;  %v4886_v54 = vld [vmem:[#allocation7 + $0x50] ss:$12 sps:$4 sm:$0xff]  }
 0x782   :  { %3725 = vpow2.f32 %v2904_v27  ;;  %v4876_v6 = vld [vmem:[#allocation7 + $0x20] ss:$12 sps:$4 sm:$0xff]   ;;  %v4882_v48 = vld [vmem:[#allocation7 + $0x38] ss:$12 sps:$4 sm:$0xff]   ;;  %v4890_v27 = vld [vmem:[#allocation7 + $0x68] ss:$12 sps:$4 sm:$0xff]  }
 0x78b   :  { %v3724_v37 = vpop.eup %3723 }
 0x78c   :  { %v1226_v28 = vadd.f32 1.0, %v3724_v37  ;;  %v3726_v29 = vpop.eup %3725  ;;  %v4894_v37 = vld [vmem:[#allocation7 + $0x80] ss:$12 sps:$4 sm:$0xff]  }
 0x78d   :  { %v1233_v30 = vadd.f32 1.0, %v3726_v29  ;;  %v4902_v29 = vld [vmem:[#allocation7 + $0xb0] ss:$12 sps:$4 sm:$0xff]  }
 0x78e   :  { %3727 = vrcp.f32 %v1226_v28  ;;  %v4898_v28 = vld [vmem:[#allocation7 + $0x98] ss:$12 sps:$4 sm:$0xff]  }
 0x78f   :  { %3729 = vrcp.f32 %v1233_v30 }
 0x798   :  { %v3728_v10 = vpop.eup %3727 }
 0x799   :  { %v1237_v43 = vmul.f32 %v3728_v10, %v1236_v23  ;;  %v3730_v5 = vpop.eup %3729 }
 0x79a   :  { %v1240_v50 = vsub.f32 1.0, %v3730_v5  ;;  %v1242_v19 = vmul.f32 %v3730_v5, %v4691_v46  ;;  %v4840_v46 = vld [vmem:[#allocation7 + $0x30] ss:$12 sps:$4 sm:$0xff]  }
 0x79b   :  { %v1238_v36 = vadd.f32 %v1237_v43, %v4377_v17  ;;  %v3597_v17 = vld [vmem:[%s5335_s5 + $0x1c] ss:$12 sps:$4 sm:$0xff]   ;;  %v5356_v5 = vld [vmem:[#allocation15_spill] sm:$0xff] }
 0x79d   :  { %3731 = vtanh.f32 %v1238_v36 }
 0x7a7   :  { %v3732_v61 = vpop.eup %3731 }
 0x7a8   :  { %v1241_v44 = vmul.f32 %v3732_v61, %v1240_v50 }
 0x7aa   :  { %v4745_v21 = vadd.f32 %v1242_v19, %v1241_v44 }
 0x7ac   :  { %v1246_v3 = vpack.c.bf16 %v4745_v21, %v4745_v21 }
 0x7ae   :  { %1280 = vmatmul.mubr.bf16.vlgmr.msra.gmra.mrb[28].mxu0 %v1246_v3  ;;  %3324 = vmatmul.mubr.bf16.vlgmr.msra.gmra.mrb[52].mxu1 %v1246_v3 }
 0x7af   :  { %1575 = vmatpush1.bf16.msra.mxu0 %v3591_v22  ;;  %3328 = vmatpush3.bf16.msra.mxu1 %v3594_v32  ;;  %v4850_v32 = vld [vmem:[#allocation7 + $0x64] ss:$12 sps:$4 sm:$0xff]  }
 0x7b0   :  { %3343 = vmatprep.mubr.bf16.mxu1 %v1360_v25  ;;  %1576 = vmatprep.subr.bf16.mxu0 %v3597_v17 }
 0x7b1   :  { %3329 = vmatprep.subr.bf16.mxu1 %v3598_v24  ;;  %1606 = vmatprep.mubr.bf16.mxu0 %v5355_v40 }
 0x7b3   :  { %1577 = vmatpush1.bf16.msra.mxu0 %v3595_v8  ;;  %3330 = vmatpush3.bf16.msra.mxu1 %v3598_v24 }
 0x7b4   :  { %1578 = vmatprep.subr.bf16.mxu0 %v3601_v26  ;;  %3331 = vmatprep.subr.bf16.mxu1 %v3602_v11 }
 0x7b7   :  { %1579 = vmatpush1.bf16.msra.mxu0 %v3599_v39  ;;  %3332 = vmatpush3.bf16.msra.mxu1 %v3602_v11 }
 0x7b8   :  { %1580 = vmatprep.subr.bf16.mxu0 %v3605_v42  ;;  %3333 = vmatprep.subr.bf16.mxu1 %v3606_v12 }
 0x7bb   :  { %1581 = vmatpush1.bf16.msra.mxu0 %v3603_v13  ;;  %3334 = vmatpush3.bf16.msra.mxu1 %v3606_v12  ;;  %v5357_v12 = vld [vmem:[#allocation16_spill] sm:$0xff] }
 0x7bc   :  { %1582 = vmatprep.subr.bf16.mxu0 %v3609_v14  ;;  %3335 = vmatprep.subr.bf16.mxu1 %v3610_v18 }
 0x7bf   :  { %1583 = vmatpush1.bf16.msra.mxu0 %v3607_v15  ;;  %3336 = vmatpush3.bf16.msra.mxu1 %v3610_v18 }
 0x7c0   :  { %1584 = vmatprep.subr.bf16.mxu0 %v3613_v59  ;;  %3337 = vmatprep.subr.bf16.mxu1 %v3614_v9 }
 0x7c3   :  { %1585 = vmatpush1.bf16.msra.mxu0 %v3611_v62  ;;  %3338 = vmatpush3.bf16.msra.mxu1 %v3614_v9 }
 0x7c4   :  { %1586 = vmatprep.subr.bf16.mxu0 %v3617_v16  ;;  %3339 = vmatprep.subr.bf16.mxu1 %v3618_v1 }
 0x7c7   :  { %1587 = vmatpush1.bf16.msra.mxu0 %v3615_v57  ;;  %3340 = vmatpush3.bf16.msra.mxu1 %v3618_v1 }
 0x7c8   :  { %1588 = vmatprep.subr.bf16.mxu0 %v3621_v63  ;;  %3341 = vmatprep.subr.bf16.mxu1 %v3622_v58 }
 0x7cb   :  { %1589 = vmatpush1.bf16.msra.mxu0 %v3619_v2  ;;  %3342 = vmatpush3.bf16.msra.mxu1 %v3622_v58 }
 0x7cc   :  { %3351 = vmatprep.subr.bf16.mxu1 %v5354_v38  ;;  %1846 = vmatprep.subr.bf16.mxu0 %v4826_v53 }
 0x7ce   :  { %1607 = vmatmul.mubr.bf16.vlgmr.msra.gmra.mrb[32].mxu0 %v1360_v25  ;;  %3344 = vmatmul.mubr.bf16.vlgmr.msra.gmra.mrb[56].mxu1 %v1361_v60 }
 0x7cf   :  { %3347 = vmatprep.mubr.bf16.mxu1 %v1362_v0  ;;  %1616 = vmatprep.mubr.bf16.mxu0 %v5355_v40 }
 0x7d0   :  { %1847 = vmatpush1.bf16.msra.mxu0 %v4828_v41  ;;  %3352 = vmatpush3.bf16.msra.mxu1 %v4864_v49 }
 0x7d1   :  { %1848 = vmatprep.subr.bf16.mxu0 %v4832_v45  ;;  %3353 = vmatprep.subr.bf16.mxu1 %v5354_v38 }
 0x7d4   :  { %1849 = vmatpush1.bf16.msra.mxu0 %v4834_v52  ;;  %3354 = vmatpush3.bf16.msra.mxu1 %v4876_v6 }
 0x7d5   :  { %1850 = vmatprep.subr.bf16.mxu0 %v4838_v56  ;;  %3355 = vmatprep.subr.bf16.mxu1 %v5354_v38 }
 0x7d6   :  { %1617 = vmatmul.mubr.bf16.gmra.mrb[36].mxu0 %v1361_v60 }
 0x7d7   :  { %1626 = vmatprep.mubr.bf16.mxu0 %v5355_v40 }
 0x7d8   :  { %1851 = vmatpush1.bf16.msra.mxu0 %v4840_v46  ;;  %3356 = vmatpush3.bf16.msra.mxu1 %v4882_v48 }
 0x7d9   :  { %1852 = vmatprep.subr.bf16.mxu0 %v4844_v7  ;;  %3357 = vmatprep.subr.bf16.mxu1 %v5354_v38 }
 0x7dc   :  { %1853 = vmatpush1.bf16.msra.mxu0 %v4847_v31  ;;  %3358 = vmatpush3.bf16.msra.mxu1 %v4886_v54 }
 0x7dd   :  { %1854 = vmatprep.subr.bf16.mxu0 %v4850_v32  ;;  %3359 = vmatprep.subr.bf16.mxu1 %v5354_v38 }
 0x7de   :  { %1627 = vmatmul.mubr.bf16.gmra.mrb[40].mxu0 %v1362_v0 }
 0x7df   :  { %1636 = vmatprep.mubr.bf16.mxu0 %v5355_v40 }
 0x7e0   :  { %1855 = vmatpush1.bf16.msra.mxu0 %v4852_v33  ;;  %3360 = vmatpush3.bf16.msra.mxu1 %v4890_v27 }
 0x7e1   :  { %1856 = vmatprep.subr.bf16.mxu0 %v4856_v34  ;;  %3361 = vmatprep.subr.bf16.mxu1 %v5354_v38 }
 0x7e4   :  { %1857 = vmatpush1.bf16.msra.mxu0 %v4859_v20  ;;  %3362 = vmatpush3.bf16.msra.mxu1 %v4894_v37 }
 0x7e5   :  { %1858 = vmatprep.subr.bf16.mxu0 %v4862_v47  ;;  %3363 = vmatprep.subr.bf16.mxu1 %v5354_v38 }
 0x7e8   :  { %1859 = vmatpush1.bf16.msra.mxu0 %v4866_v55  ;;  %3364 = vmatpush3.bf16.msra.mxu1 %v4898_v28 }
 0x7e9   :  { %1860 = vmatprep.subr.bf16.mxu0 %v4871_v4  ;;  %3365 = vmatprep.subr.bf16.mxu1 %v5354_v38 }
 0x7ec   :  { %1861 = vmatpush1.bf16.msra.mxu0 %v4874_v35  ;;  %3366 = vmatpush3.bf16.msra.mxu1 %v4902_v29 }
 0x7ed   :  { %1951 = vmatprep.subr.bf16.mxu0 %v4826_v53  ;;  %3371 = vmatprep.subr.bf16.mxu1 %v5354_v38 }
 0x881   :  { %v1281_v30 = vpop.f32.mrb[28].mxu0  ;;  %v1322_v23 = vpop.f32.mrb[52].mxu1 }
 0x882   :  { %v1328_v10 = vadd.f32 %v1281_v30, %v4365_v51  ;;  %v1283_v43 = vpop.f32.mrb[29].mxu0  ;;  %v3325_v36 = vpop.f32.mrb[53].mxu1  ;;  %v3842_v51 = vld [vmem:[%s5334_s4] ss:$0 sm:$0xff] }
 0x883   :  { %v1335_v50 = vadd.f32 %v1283_v43, %v5356_v5  ;;  %v1285_v61 = vpop.f32.mrb[30].mxu0  ;;  %v1325_v44 = vpop.f32.mrb[54].mxu1  ;;  %v1342_v11 = vadd.f32 %v3842_v51, %v1322_v23 }
 0x884   :  { %v2905_v19 = vmul.f32 -1.442695, %v1328_v10  ;;  %v1286_v22 = vpop.f32.mrb[31].mxu0  ;;  %v3326_v3 = vpop.f32.mrb[55].mxu1 }
 0x885   :  { %v2906_v17 = vmul.f32 -1.442695, %v1335_v50 }
 0x886   :  { %3733 = vpow2.f32 %v2905_v19 }
 0x887   :  { %3735 = vpow2.f32 %v2906_v17 }
 0x890   :  { %v3734_v24 = vpop.eup %3733 }
 0x891   :  { %v1332_v25 = vadd.f32 1.0, %v3734_v24  ;;  %v3736_v8 = vpop.eup %3735 }
 0x892   :  { %v1339_v26 = vadd.f32 1.0, %v3736_v8  ;;  %v5363_v8 = vld [vmem:[#allocation14_spill] sm:$0xff] }
 0x893   :  { %3737 = vrcp.f32 %v1332_v25 }
 0x894   :  { %3739 = vrcp.f32 %v1339_v26  ;;  %v5364_v26 = vsub.s32 0, %v5363_v8 }
 0x89d   :  { %v3738_v39 = vpop.eup %3737 }
 0x89e   :  { %v1343_v42 = vmul.f32 %v3738_v39, %v1342_v11  ;;  %v3740_v57 = vpop.eup %3739 }
 0x89f   :  { %v1346_v60 = vsub.f32 1.0, %v3740_v57  ;;  %v1348_v10 = vmul.f32 %v3740_v57, %v4745_v21 }
 0x8a0   :  { %v1344_v13 = vadd.f32 %v1343_v42, %v5357_v12  ;;  %v5366_v42 = vsub.s32 1, %v5363_v8 }
 0x8a1   :  { %v4913_v14 = vpop.f32.mrb[32].mxu0  ;;  %v4915_v18 = vpop.f32.mrb[56].mxu1 }
 0x8a2   :  { %3741 = vtanh.f32 %v1344_v13  ;;  %v4917_v15 = vpop.f32.mrb[33].mxu0  ;;  %v4919_v59 = vpop.f32.mrb[57].mxu1 }
 0x8a3   :  { %v4921_v9 = vpop.f32.mrb[34].mxu0  ;;  %v4923_v62 = vpop.f32.mrb[58].mxu1 }
 0x8a4   :  { %v4925_v16 = vpop.f32.mrb[35].mxu0  ;;  %v4927_v1 = vpop.f32.mrb[59].mxu1 }
 0x8a9   :  { %v4929_v63 = vpop.f32.mrb[36].mxu0 }
 0x8aa   :  { %v4931_v58 = vpop.f32.mrb[37].mxu0 }
 0x8ab   :  { %v4933_v2 = vpop.f32.mrb[38].mxu0 }
 0x8ac   :  { %v3742_v0 = vpop.eup %3741  ;;  %v4935_v30 = vpop.f32.mrb[39].mxu0 }
 0x8ad   :  { %v1347_v23 = vmul.f32 %v3742_v0, %v1346_v60 }
 0x8af   :  { %v1349_v43 = vadd.f32 %v1348_v10, %v1347_v23 }
 0x8b1   :  { %v4938_v36 = vpop.f32.mrb[40].mxu0  ;;  %v1363_v5 = vpack.c.bf16 %v1349_v43, %v4745_v21  ;;  %v1428_v21 = vld [vmem:[#allocation8] sm:$0x7] }
 0x8b2   :  { %v4941_v50 = vpop.f32.mrb[41].mxu0  ;;  %v5001_v51 = vrot.slane %v1428_v21, %v5364_v26  ;;  %v5009_v12 = vrot.slane %v1428_v21, %v5366_v42 }
 0x8b3   :  { %v4943_v61 = vpop.f32.mrb[42].mxu0  ;;  %1637 = vmatmul.mubr.bf16.gmra.mrb[44].mxu0 %v1363_v5  ;;  %3348 = vmatmul.mubr.bf16.gmra.mrb[60].mxu1 %v1363_v5 }
 0x8b4   :  { %v4945_v44 = vpop.f32.mrb[43].mxu0  ;;  %1878 = vmatprep.mubr.bf16.mxu0 %v5355_v40  ;;  %3367 = vmatprep.mubr.msk.bf16.mxu1 %vm3993_vm1, %v5354_v38  ;;  %v1609_v13 = vadd.f32 %v4913_v14, %v5001_v51  ;;  %v1611_v57 = vadd.f32 %v4917_v15, %v5009_v12  ;;  %v5018_v15 = vld [vmem:[%s5338_s8] ss:$0 sm:$0xff] }
 0x8bb   :  { %1879 = vmatmul.mubr.bf16.vlgmr.msra.gmra.mrb[48].mxu0 %v5355_v40  ;;  %3368 = vmatmul.mubr.bf16.vlgmr.msra.gmra.mrb[64].mxu1 %v5355_v40 }
 0x8bc   :  { %1952 = vmatpush1.bf16.msra.mxu0 %v4828_v41  ;;  %3372 = vmatpush3.bf16.msra.mxu1 %v4864_v49 }
 0x8bd   :  { %1953 = vmatprep.subr.bf16.mxu0 %v4832_v45  ;;  %3373 = vmatprep.subr.bf16.mxu1 %v5354_v38 }
 0x8be   :  { %1983 = vmatprep.mubr.bf16.mxu0 %v5355_v40  ;;  %3387 = vmatprep.mubr.msk.bf16.mxu1 %vm3993_vm1, %v5354_v38 }
 0x8c0   :  { %1954 = vmatpush1.bf16.msra.mxu0 %v4834_v52  ;;  %3374 = vmatpush3.bf16.msra.mxu1 %v4876_v6 }
 0x8c1   :  { %1955 = vmatprep.subr.bf16.mxu0 %v4838_v56  ;;  %3375 = vmatprep.subr.bf16.mxu1 %v5354_v38 }
 0x8c4   :  { %1956 = vmatpush1.bf16.msra.mxu0 %v4840_v46  ;;  %3376 = vmatpush3.bf16.msra.mxu1 %v4882_v48 }
 0x8c5   :  { %1957 = vmatprep.subr.bf16.mxu0 %v4844_v7  ;;  %3377 = vmatprep.subr.bf16.mxu1 %v5354_v38 }
 0x8c8   :  { %1958 = vmatpush1.bf16.msra.mxu0 %v4847_v31  ;;  %3378 = vmatpush3.bf16.msra.mxu1 %v4886_v54 }
 0x8c9   :  { %1959 = vmatprep.subr.bf16.mxu0 %v4850_v32  ;;  %3379 = vmatprep.subr.bf16.mxu1 %v5354_v38 }
 0x8cc   :  { %1960 = vmatpush1.bf16.msra.mxu0 %v4852_v33  ;;  %3380 = vmatpush3.bf16.msra.mxu1 %v4890_v27 }
 0x8cd   :  { %1961 = vmatprep.subr.bf16.mxu0 %v4856_v34  ;;  %3381 = vmatprep.subr.bf16.mxu1 %v5354_v38 }
 0x8d0   :  { %1962 = vmatpush1.bf16.msra.mxu0 %v4859_v20  ;;  %3382 = vmatpush3.bf16.msra.mxu1 %v4894_v37 }
 0x8d1   :  { %1963 = vmatprep.subr.bf16.mxu0 %v4862_v47  ;;  %3383 = vmatprep.subr.bf16.mxu1 %v5354_v38 }
 0x8d4   :  { %1964 = vmatpush1.bf16.msra.mxu0 %v4866_v55  ;;  %3384 = vmatpush3.bf16.msra.mxu1 %v4898_v28 }
 0x8d5   :  { %1965 = vmatprep.subr.bf16.mxu0 %v4871_v4  ;;  %3385 = vmatprep.subr.bf16.mxu1 %v5354_v38 }
 0x8d8   :  { %1966 = vmatpush1.bf16.msra.mxu0 %v4874_v35  ;;  %3386 = vmatpush3.bf16.msra.mxu1 %v4902_v29 }
 0x8d9   :  { %2056 = vmatprep.subr.bf16.mxu0 %v4826_v53  ;;  %3391 = vmatprep.subr.bf16.mxu1 %v5354_v38 }
 0x986   :  { %v4987_v19 = vpop.f32.mrb[44].mxu0  ;;  %v4989_v22 = vpop.f32.mrb[60].mxu1 }
 0x987   :  { %5358 = vst [vmem:[#allocation15_spill] sm:$0xff] %v4987_v19  ;;  %5359 = vst [vmem:[#allocation16_spill] sm:$0xff] %v4989_v22  ;;  %v4991_v3 = vpop.f32.mrb[45].mxu0  ;;  %v4993_v17 = vpop.f32.mrb[61].mxu1 }
 0x988   :  { %5360 = vst [vmem:[#allocation17_spill] sm:$0xff] %v4991_v3  ;;  %v4995_v24 = vpop.f32.mrb[46].mxu0  ;;  %v4997_v25 = vpop.f32.mrb[62].mxu1 }
 0x989   :  { %5361 = vst [vmem:[#allocation18_spill] sm:$0xff] %v4995_v24  ;;  %5362 = vst [vmem:[#allocation19_spill] sm:$0xff] %v4997_v25  ;;  %v5003_v11 = vpop.f32.mrb[47].mxu0  ;;  %v5005_v39 = vpop.f32.mrb[63].mxu1 }
 0x98a   :  { %5365 = vst [vmem:[#allocation14_spill] sm:$0xff] %v5003_v11 }
 0x98e   :  { %v1880_v60 = vpop.f32.mrb[48].mxu0  ;;  %v1921_v0 = vpop.f32.mrb[64].mxu1 }
 0x98f   :  { %v1927_v23 = vadd.f32 %v1880_v60, %v1609_v13  ;;  %v1882_v10 = vpop.f32.mrb[49].mxu0  ;;  %v3369_v43 = vpop.f32.mrb[65].mxu1  ;;  %v5367_v13 = vsub.s32 2, %v5363_v8  ;;  %v1615_v8 = vadd.f32 %v4925_v16, %v5009_v12 }
 0x990   :  { %v1934_v5 = vadd.f32 %v1882_v10, %v1611_v57  ;;  %v1884_v26 = vpop.f32.mrb[50].mxu0  ;;  %v1924_v25 = vpop.f32.mrb[66].mxu1 }
 0x991   :  { %v2956_v11 = vmul.f32 -1.442695, %v1927_v23  ;;  %v1885_v24 = vpop.f32.mrb[51].mxu0  ;;  %v3370_v22 = vpop.f32.mrb[67].mxu1  ;;  %v5022_v57 = vrot.slane %v1428_v21, %v5367_v13 }
 0x992   :  { %v2957_v42 = vmul.f32 -1.442695, %v1934_v5  ;;  %v1941_v24 = vadd.f32 %v5018_v15, %v1921_v0 }
 0x993   :  { %3743 = vpow2.f32 %v2956_v11  ;;  %v1682_v11 = vadd.f32 %v4919_v59, %v5022_v57  ;;  %v1613_v59 = vadd.f32 %v4921_v9, %v5001_v51 }
 0x994   :  { %3745 = vpow2.f32 %v2957_v42 }
 0x99d   :  { %v3744_v3 = vpop.eup %3743 }
 0x99e   :  { %v1931_v19 = vadd.f32 1.0, %v3744_v3  ;;  %v3746_v14 = vpop.eup %3745 }
 0x99f   :  { %v1938_v25 = vadd.f32 1.0, %v3746_v14 }
 0x9a0   :  { %3747 = vrcp.f32 %v1931_v19 }
 0x9a1   :  { %3749 = vrcp.f32 %v1938_v25 }
 0x9aa   :  { %v3748_v22 = vpop.eup %3747 }
 0x9ab   :  { %v1942_v3 = vmul.f32 %v3748_v22, %v1941_v24  ;;  %v3750_v60 = vpop.eup %3749 }
 0x9ac   :  { %v1945_v23 = vsub.f32 1.0, %v3750_v60  ;;  %v1947_v5 = vmul.f32 0.0, %v3750_v60 }
 0x9ad   :  { %v1943_v19 = vadd.f32 %v1942_v3, %v1682_v11 }
 0x9af   :  { %3751 = vtanh.f32 %v1943_v19 }
 0x9b9   :  { %v3752_v10 = vpop.eup %3751 }
 0x9ba   :  { %v1946_v43 = vmul.f32 %v3752_v10, %v1945_v23 }
 0x9bc   :  { %v5027_v26 = vadd.f32 %v1947_v5, %v1946_v43 }
 0x9be   :  { %v1950_v21 = vpack.c.bf16 %v5027_v26, %v5027_v26 }
 0x9c0   :  { %1984 = vmatmul.mubr.bf16.vlgmr.msra.gmra.mrb[52].mxu0 %v1950_v21  ;;  %3388 = vmatmul.mubr.bf16.vlgmr.msra.gmra.mrb[68].mxu1 %v1950_v21 }
 0x9c1   :  { %2057 = vmatpush1.bf16.msra.mxu0 %v4828_v41  ;;  %3392 = vmatpush3.bf16.msra.mxu1 %v4864_v49 }
 0x9c2   :  { %2058 = vmatprep.subr.bf16.mxu0 %v4832_v45  ;;  %3393 = vmatprep.subr.bf16.mxu1 %v5354_v38 }
 0x9c3   :  { %2088 = vmatprep.mubr.bf16.mxu0 %v5355_v40  ;;  %3407 = vmatprep.mubr.msk.bf16.mxu1 %vm3993_vm1, %v5354_v38 }
 0x9c5   :  { %2059 = vmatpush1.bf16.msra.mxu0 %v4834_v52  ;;  %3394 = vmatpush3.bf16.msra.mxu1 %v4876_v6 }
 0x9c6   :  { %2060 = vmatprep.subr.bf16.mxu0 %v4838_v56  ;;  %3395 = vmatprep.subr.bf16.mxu1 %v5354_v38 }
 0x9c9   :  { %2061 = vmatpush1.bf16.msra.mxu0 %v4840_v46  ;;  %3396 = vmatpush3.bf16.msra.mxu1 %v4882_v48 }
 0x9ca   :  { %2062 = vmatprep.subr.bf16.mxu0 %v4844_v7  ;;  %3397 = vmatprep.subr.bf16.mxu1 %v5354_v38 }
 0x9cd   :  { %2063 = vmatpush1.bf16.msra.mxu0 %v4847_v31  ;;  %3398 = vmatpush3.bf16.msra.mxu1 %v4886_v54 }
 0x9ce   :  { %2064 = vmatprep.subr.bf16.mxu0 %v4850_v32  ;;  %3399 = vmatprep.subr.bf16.mxu1 %v5354_v38 }
 0x9d1   :  { %2065 = vmatpush1.bf16.msra.mxu0 %v4852_v33  ;;  %3400 = vmatpush3.bf16.msra.mxu1 %v4890_v27 }
 0x9d2   :  { %2066 = vmatprep.subr.bf16.mxu0 %v4856_v34  ;;  %3401 = vmatprep.subr.bf16.mxu1 %v5354_v38 }
 0x9d5   :  { %2067 = vmatpush1.bf16.msra.mxu0 %v4859_v20  ;;  %3402 = vmatpush3.bf16.msra.mxu1 %v4894_v37 }
 0x9d6   :  { %2068 = vmatprep.subr.bf16.mxu0 %v4862_v47  ;;  %3403 = vmatprep.subr.bf16.mxu1 %v5354_v38 }
 0x9d9   :  { %2069 = vmatpush1.bf16.msra.mxu0 %v4866_v55  ;;  %3404 = vmatpush3.bf16.msra.mxu1 %v4898_v28 }
 0x9da   :  { %2070 = vmatprep.subr.bf16.mxu0 %v4871_v4  ;;  %3405 = vmatprep.subr.bf16.mxu1 %v5354_v38 }
 0x9dd   :  { %2071 = vmatpush1.bf16.msra.mxu0 %v4874_v35  ;;  %3406 = vmatpush3.bf16.msra.mxu1 %v4902_v29 }
 0x9de   :  { %2161 = vmatprep.subr.bf16.mxu0 %v4826_v53  ;;  %3411 = vmatprep.subr.bf16.mxu1 %v5354_v38 }
 0xa93   :  { %v1985_v0 = vpop.f32.mrb[52].mxu0  ;;  %v2026_v42 = vpop.f32.mrb[68].mxu1 }
 0xa94   :  { %v2032_v14 = vadd.f32 %v1985_v0, %v1613_v59  ;;  %v1987_v13 = vpop.f32.mrb[53].mxu0  ;;  %v3389_v25 = vpop.f32.mrb[69].mxu1  ;;  %v2046_v16 = vadd.f32 %v5018_v15, %v2026_v42  ;;  %v1685_v59 = vadd.f32 %v4927_v1, %v5022_v57  ;;  %v1619_v1 = vadd.f32 %v4929_v63, %v5001_v51 }
 0xa95   :  { %v2039_v24 = vadd.f32 %v1987_v13, %v1615_v8  ;;  %v1989_v22 = vpop.f32.mrb[54].mxu0  ;;  %v2029_v11 = vpop.f32.mrb[70].mxu1  ;;  %v1621_v42 = vadd.f32 %v4931_v58, %v5009_v12 }
 0xa96   :  { %v2958_v3 = vmul.f32 -1.442695, %v2032_v14  ;;  %v1990_v19 = vpop.f32.mrb[55].mxu0  ;;  %v3390_v60 = vpop.f32.mrb[71].mxu1 }
 0xa97   :  { %v2959_v23 = vmul.f32 -1.442695, %v2039_v24 }
 0xa98   :  { %3753 = vpow2.f32 %v2958_v3 }
 0xa99   :  { %3755 = vpow2.f32 %v2959_v23 }
 0xaa2   :  { %v3754_v10 = vpop.eup %3753 }
 0xaa3   :  { %v2036_v43 = vadd.f32 1.0, %v3754_v10  ;;  %v3756_v9 = vpop.eup %3755 }
 0xaa4   :  { %v2043_v5 = vadd.f32 1.0, %v3756_v9 }
 0xaa5   :  { %3757 = vrcp.f32 %v2036_v43 }
 0xaa6   :  { %3759 = vrcp.f32 %v2043_v5 }
 0xaaf   :  { %v3758_v21 = vpop.eup %3757 }
 0xab0   :  { %v2047_v8 = vmul.f32 %v3758_v21, %v2046_v16  ;;  %v3760_v14 = vpop.eup %3759 }
 0xab1   :  { %v2050_v13 = vsub.f32 1.0, %v3760_v14  ;;  %v2052_v22 = vmul.f32 %v3760_v14, %v5027_v26 }
 0xab2   :  { %v2048_v0 = vadd.f32 %v2047_v8, %v1685_v59 }
 0xab4   :  { %3761 = vtanh.f32 %v2048_v0 }
 0xabe   :  { %v3762_v25 = vpop.eup %3761 }
 0xabf   :  { %v2051_v24 = vmul.f32 %v3762_v25, %v2050_v13 }
 0xac1   :  { %v5074_v11 = vadd.f32 %v2052_v22, %v2051_v24  ;;  %v1690_v22 = vadd.f32 %v4915_v18, %v5022_v57  ;;  %v1623_v18 = vadd.f32 %v4933_v2, %v5001_v51 }
 0xac3   :  { %v2055_v3 = vpack.c.bf16 %v5074_v11, %v5074_v11 }
 0xac5   :  { %2089 = vmatmul.mubr.bf16.vlgmr.msra.gmra.mrb[56].mxu0 %v2055_v3  ;;  %3408 = vmatmul.mubr.bf16.vlgmr.msra.gmra.mrb[72].mxu1 %v2055_v3 }
 0xac6   :  { %2162 = vmatpush1.bf16.msra.mxu0 %v4828_v41  ;;  %3412 = vmatpush3.bf16.msra.mxu1 %v4864_v49 }
 0xac7   :  { %2163 = vmatprep.subr.bf16.mxu0 %v4832_v45  ;;  %3413 = vmatprep.subr.bf16.mxu1 %v5354_v38 }
 0xac8   :  { %2193 = vmatprep.mubr.bf16.mxu0 %v5355_v40  ;;  %3427 = vmatprep.mubr.msk.bf16.mxu1 %vm3993_vm1, %v5354_v38 }
 0xaca   :  { %2164 = vmatpush1.bf16.msra.mxu0 %v4834_v52  ;;  %3414 = vmatpush3.bf16.msra.mxu1 %v4876_v6 }
 0xacb   :  { %2165 = vmatprep.subr.bf16.mxu0 %v4838_v56  ;;  %3415 = vmatprep.subr.bf16.mxu1 %v5354_v38 }
 0xace   :  { %2166 = vmatpush1.bf16.msra.mxu0 %v4840_v46  ;;  %3416 = vmatpush3.bf16.msra.mxu1 %v4882_v48 }
 0xacf   :  { %2167 = vmatprep.subr.bf16.mxu0 %v4844_v7  ;;  %3417 = vmatprep.subr.bf16.mxu1 %v5354_v38 }
 0xad2   :  { %2168 = vmatpush1.bf16.msra.mxu0 %v4847_v31  ;;  %3418 = vmatpush3.bf16.msra.mxu1 %v4886_v54 }
 0xad3   :  { %2169 = vmatprep.subr.bf16.mxu0 %v4850_v32  ;;  %3419 = vmatprep.subr.bf16.mxu1 %v5354_v38 }
 0xad6   :  { %2170 = vmatpush1.bf16.msra.mxu0 %v4852_v33  ;;  %3420 = vmatpush3.bf16.msra.mxu1 %v4890_v27 }
 0xad7   :  { %2171 = vmatprep.subr.bf16.mxu0 %v4856_v34  ;;  %3421 = vmatprep.subr.bf16.mxu1 %v5354_v38 }
 0xada   :  { %2172 = vmatpush1.bf16.msra.mxu0 %v4859_v20  ;;  %3422 = vmatpush3.bf16.msra.mxu1 %v4894_v37 }
 0xadb   :  { %2173 = vmatprep.subr.bf16.mxu0 %v4862_v47  ;;  %3423 = vmatprep.subr.bf16.mxu1 %v5354_v38 }
 0xade   :  { %2174 = vmatpush1.bf16.msra.mxu0 %v4866_v55  ;;  %3424 = vmatpush3.bf16.msra.mxu1 %v4898_v28 }
 0xadf   :  { %2175 = vmatprep.subr.bf16.mxu0 %v4871_v4  ;;  %3425 = vmatprep.subr.bf16.mxu1 %v5354_v38 }
 0xae2   :  { %2176 = vmatpush1.bf16.msra.mxu0 %v4874_v35  ;;  %3426 = vmatpush3.bf16.msra.mxu1 %v4902_v29 }
 0xae3   :  { %2266 = vmatprep.subr.bf16.mxu0 %v4826_v53  ;;  %3431 = vmatprep.subr.bf16.mxu1 %v5354_v38 }
 0xb98   :  { %v2090_v19 = vpop.f32.mrb[56].mxu0  ;;  %v2131_v60 = vpop.f32.mrb[72].mxu1 }
 0xb99   :  { %v2137_v23 = vadd.f32 %v2090_v19, %v1619_v1  ;;  %v2092_v10 = vpop.f32.mrb[57].mxu0  ;;  %v3409_v43 = vpop.f32.mrb[73].mxu1  ;;  %v2151_v58 = vadd.f32 %v5018_v15, %v2131_v60  ;;  %v1625_v60 = vadd.f32 %v4935_v30, %v5009_v12 }
 0xb9a   :  { %v2144_v9 = vadd.f32 %v2092_v10, %v1621_v42  ;;  %v2094_v5 = vpop.f32.mrb[58].mxu0  ;;  %v2134_v16 = vpop.f32.mrb[74].mxu1 }
 0xb9b   :  { %v2960_v21 = vmul.f32 -1.442695, %v2137_v23  ;;  %v2095_v59 = vpop.f32.mrb[59].mxu0  ;;  %v3410_v8 = vpop.f32.mrb[75].mxu1 }
 0xb9c   :  { %v2961_v0 = vmul.f32 -1.442695, %v2144_v9 }
 0xb9d   :  { %3763 = vpow2.f32 %v2960_v21 }
 0xb9e   :  { %3765 = vpow2.f32 %v2961_v0 }
 0xba7   :  { %v3764_v14 = vpop.eup %3763 }
 0xba8   :  { %v2141_v13 = vadd.f32 1.0, %v3764_v14  ;;  %v3766_v63 = vpop.eup %3765 }
 0xba9   :  { %v2148_v25 = vadd.f32 1.0, %v3766_v63 }
 0xbaa   :  { %3767 = vrcp.f32 %v2141_v13 }
 0xbab   :  { %3769 = vrcp.f32 %v2148_v25 }
 0xbb4   :  { %v3768_v24 = vpop.eup %3767 }
 0xbb5   :  { %v2152_v3 = vmul.f32 %v3768_v24, %v2151_v58  ;;  %v3770_v42 = vpop.eup %3769 }
 0xbb6   :  { %v2155_v19 = vsub.f32 1.0, %v3770_v42  ;;  %v2157_v43 = vmul.f32 %v3770_v42, %v5074_v11 }
 0xbb7   :  { %v2153_v1 = vadd.f32 %v2152_v3, %v1690_v22 }
 0xbb9   :  { %3771 = vtanh.f32 %v2153_v1 }
 0xbc3   :  { %v3772_v23 = vpop.eup %3771 }
 0xbc4   :  { %v2156_v10 = vmul.f32 %v3772_v23, %v2155_v19  ;;  %v1693_v23 = vadd.f32 %v4923_v62, %v5022_v57  ;;  %v1629_v62 = vadd.f32 %v4938_v36, %v5001_v51 }
 0xbc6   :  { %v5121_v9 = vadd.f32 %v2157_v43, %v2156_v10 }
 0xbc8   :  { %v2160_v5 = vpack.c.bf16 %v5121_v9, %v5121_v9 }
 0xbca   :  { %2194 = vmatmul.mubr.bf16.vlgmr.msra.gmra.mrb[60].mxu0 %v2160_v5  ;;  %3428 = vmatmul.mubr.bf16.vlgmr.msra.gmra.mrb[76].mxu1 %v2160_v5 }
 0xbcb   :  { %2267 = vmatpush1.bf16.msra.mxu0 %v4828_v41  ;;  %3432 = vmatpush3.bf16.msra.mxu1 %v4864_v49 }
 0xbcc   :  { %2268 = vmatprep.subr.bf16.mxu0 %v4832_v45  ;;  %3433 = vmatprep.subr.bf16.mxu1 %v5354_v38 }
 0xbcd   :  { %2298 = vmatprep.mubr.bf16.mxu0 %v5355_v40  ;;  %3447 = vmatprep.mubr.msk.bf16.mxu1 %vm3993_vm1, %v5354_v38 }
 0xbcf   :  { %2269 = vmatpush1.bf16.msra.mxu0 %v4834_v52  ;;  %3434 = vmatpush3.bf16.msra.mxu1 %v4876_v6 }
 0xbd0   :  { %2270 = vmatprep.subr.bf16.mxu0 %v4838_v56  ;;  %3435 = vmatprep.subr.bf16.mxu1 %v5354_v38 }
 0xbd3   :  { %2271 = vmatpush1.bf16.msra.mxu0 %v4840_v46  ;;  %3436 = vmatpush3.bf16.msra.mxu1 %v4882_v48 }
 0xbd4   :  { %2272 = vmatprep.subr.bf16.mxu0 %v4844_v7  ;;  %3437 = vmatprep.subr.bf16.mxu1 %v5354_v38 }
 0xbd7   :  { %2273 = vmatpush1.bf16.msra.mxu0 %v4847_v31  ;;  %3438 = vmatpush3.bf16.msra.mxu1 %v4886_v54 }
 0xbd8   :  { %2274 = vmatprep.subr.bf16.mxu0 %v4850_v32  ;;  %3439 = vmatprep.subr.bf16.mxu1 %v5354_v38 }
 0xbdb   :  { %2275 = vmatpush1.bf16.msra.mxu0 %v4852_v33  ;;  %3440 = vmatpush3.bf16.msra.mxu1 %v4890_v27 }
 0xbdc   :  { %2276 = vmatprep.subr.bf16.mxu0 %v4856_v34  ;;  %3441 = vmatprep.subr.bf16.mxu1 %v5354_v38 }
 0xbdf   :  { %2277 = vmatpush1.bf16.msra.mxu0 %v4859_v20  ;;  %3442 = vmatpush3.bf16.msra.mxu1 %v4894_v37 }
 0xbe0   :  { %2278 = vmatprep.subr.bf16.mxu0 %v4862_v47  ;;  %3443 = vmatprep.subr.bf16.mxu1 %v5354_v38 }
 0xbe3   :  { %2279 = vmatpush1.bf16.msra.mxu0 %v4866_v55  ;;  %3444 = vmatpush3.bf16.msra.mxu1 %v4898_v28 }
 0xbe4   :  { %2280 = vmatprep.subr.bf16.mxu0 %v4871_v4  ;;  %3445 = vmatprep.subr.bf16.mxu1 %v5354_v38 }
 0xbe7   :  { %2281 = vmatpush1.bf16.msra.mxu0 %v4874_v35  ;;  %3446 = vmatpush3.bf16.msra.mxu1 %v4902_v29 }
 0xbe8   :  { %2371 = vmatprep.subr.bf16.mxu0 %v4826_v53  ;;  %3451 = vmatprep.subr.bf16.mxu1 %v5354_v38 }
 0xc9d   :  { %v2195_v16 = vpop.f32.mrb[60].mxu0  ;;  %v2236_v21 = vpop.f32.mrb[76].mxu1 }
 0xc9e   :  { %v2242_v59 = vadd.f32 %v2195_v16, %v1623_v18  ;;  %v2197_v8 = vpop.f32.mrb[61].mxu0  ;;  %v3429_v0 = vpop.f32.mrb[77].mxu1  ;;  %v2256_v30 = vadd.f32 %v5018_v15, %v2236_v21  ;;  %v1631_v21 = vadd.f32 %v4941_v50, %v5009_v12 }
 0xc9f   :  { %v2249_v14 = vadd.f32 %v2197_v8, %v1625_v60  ;;  %v2199_v13 = vpop.f32.mrb[62].mxu0  ;;  %v2239_v63 = vpop.f32.mrb[78].mxu1 }
 0xca0   :  { %v2962_v25 = vmul.f32 -1.442695, %v2242_v59  ;;  %v2200_v58 = vpop.f32.mrb[63].mxu0  ;;  %v3430_v24 = vpop.f32.mrb[79].mxu1 }
 0xca1   :  { %v2963_v22 = vmul.f32 -1.442695, %v2249_v14 }
 0xca2   :  { %3773 = vpow2.f32 %v2962_v25 }
 0xca3   :  { %3775 = vpow2.f32 %v2963_v22 }
 0xcac   :  { %v3774_v3 = vpop.eup %3773 }
 0xcad   :  { %v2246_v1 = vadd.f32 1.0, %v3774_v3  ;;  %v3776_v2 = vpop.eup %3775 }
 0xcae   :  { %v2253_v42 = vadd.f32 1.0, %v3776_v2 }
 0xcaf   :  { %3777 = vrcp.f32 %v2246_v1 }
 0xcb0   :  { %3779 = vrcp.f32 %v2253_v42 }
 0xcb9   :  { %v3778_v19 = vpop.eup %3777 }
 0xcba   :  { %v2257_v10 = vmul.f32 %v3778_v19, %v2256_v30  ;;  %v3780_v5 = vpop.eup %3779 }
 0xcbb   :  { %v2260_v18 = vsub.f32 1.0, %v3780_v5  ;;  %v2262_v59 = vmul.f32 %v3780_v5, %v5121_v9  ;;  %v1698_v5 = vadd.f32 %v4993_v17, %v5022_v57 }
 0xcbc   :  { %v2258_v43 = vadd.f32 %v2257_v10, %v1693_v23 }
 0xcbe   :  { %3781 = vtanh.f32 %v2258_v43 }
 0xcc8   :  { %v3782_v60 = vpop.eup %3781 }
 0xcc9   :  { %v2261_v16 = vmul.f32 %v3782_v60, %v2260_v18 }
 0xccb   :  { %v5168_v8 = vadd.f32 %v2262_v59, %v2261_v16 }
 0xccd   :  { %v2265_v0 = vpack.c.bf16 %v5168_v8, %v5168_v8 }
 0xccf   :  { %2299 = vmatmul.mubr.bf16.vlgmr.msra.gmra.mrb[64].mxu0 %v2265_v0  ;;  %3448 = vmatmul.mubr.bf16.vlgmr.msra.gmra.mrb[80].mxu1 %v2265_v0 }
 0xcd0   :  { %2372 = vmatpush1.bf16.msra.mxu0 %v4828_v41  ;;  %3452 = vmatpush3.bf16.msra.mxu1 %v4864_v49 }
 0xcd1   :  { %2373 = vmatprep.subr.bf16.mxu0 %v4832_v45  ;;  %3453 = vmatprep.subr.bf16.mxu1 %v5354_v38 }
 0xcd2   :  { %2403 = vmatprep.mubr.bf16.mxu0 %v5355_v40  ;;  %3467 = vmatprep.mubr.msk.bf16.mxu1 %vm3993_vm1, %v5354_v38 }
 0xcd4   :  { %2374 = vmatpush1.bf16.msra.mxu0 %v4834_v52  ;;  %3454 = vmatpush3.bf16.msra.mxu1 %v4876_v6 }
 0xcd5   :  { %2375 = vmatprep.subr.bf16.mxu0 %v4838_v56  ;;  %3455 = vmatprep.subr.bf16.mxu1 %v5354_v38 }
 0xcd8   :  { %2376 = vmatpush1.bf16.msra.mxu0 %v4840_v46  ;;  %3456 = vmatpush3.bf16.msra.mxu1 %v4882_v48 }
 0xcd9   :  { %2377 = vmatprep.subr.bf16.mxu0 %v4844_v7  ;;  %3457 = vmatprep.subr.bf16.mxu1 %v5354_v38 }
 0xcdc   :  { %2378 = vmatpush1.bf16.msra.mxu0 %v4847_v31  ;;  %3458 = vmatpush3.bf16.msra.mxu1 %v4886_v54 }
 0xcdd   :  { %2379 = vmatprep.subr.bf16.mxu0 %v4850_v32  ;;  %3459 = vmatprep.subr.bf16.mxu1 %v5354_v38 }
 0xce0   :  { %2380 = vmatpush1.bf16.msra.mxu0 %v4852_v33  ;;  %3460 = vmatpush3.bf16.msra.mxu1 %v4890_v27 }
 0xce1   :  { %2381 = vmatprep.subr.bf16.mxu0 %v4856_v34  ;;  %3461 = vmatprep.subr.bf16.mxu1 %v5354_v38 }
 0xce4   :  { %2382 = vmatpush1.bf16.msra.mxu0 %v4859_v20  ;;  %3462 = vmatpush3.bf16.msra.mxu1 %v4894_v37 }
 0xce5   :  { %2383 = vmatprep.subr.bf16.mxu0 %v4862_v47  ;;  %3463 = vmatprep.subr.bf16.mxu1 %v5354_v38 }
 0xce8   :  { %2384 = vmatpush1.bf16.msra.mxu0 %v4866_v55  ;;  %3464 = vmatpush3.bf16.msra.mxu1 %v4898_v28 }
 0xce9   :  { %2385 = vmatprep.subr.bf16.mxu0 %v4871_v4  ;;  %3465 = vmatprep.subr.bf16.mxu1 %v5354_v38 }
 0xcec   :  { %2386 = vmatpush1.bf16.msra.mxu0 %v4874_v35  ;;  %3466 = vmatpush3.bf16.msra.mxu1 %v4902_v29 }
 0xced   :  { %2476 = vmatprep.subr.bf16.mxu0 %v4826_v53  ;;  %3471 = vmatprep.subr.bf16.mxu1 %v5354_v38 }
 0xda2   :  { %v2300_v14 = vpop.f32.mrb[64].mxu0  ;;  %v2341_v13 = vpop.f32.mrb[80].mxu1 }
 0xda3   :  { %v2347_v63 = vadd.f32 %v2300_v14, %v1629_v62  ;;  %v2302_v25 = vpop.f32.mrb[65].mxu0  ;;  %v3449_v58 = vpop.f32.mrb[81].mxu1  ;;  %v2361_v50 = vadd.f32 %v5018_v15, %v2341_v13 }
 0xda4   :  { %v2354_v24 = vadd.f32 %v2302_v25, %v1631_v21  ;;  %v2304_v22 = vpop.f32.mrb[66].mxu0  ;;  %v2344_v3 = vpop.f32.mrb[82].mxu1 }
 0xda5   :  { %v2964_v1 = vmul.f32 -1.442695, %v2347_v63  ;;  %v2305_v2 = vpop.f32.mrb[67].mxu0  ;;  %v3450_v42 = vpop.f32.mrb[83].mxu1  ;;  %v3845_v22 = vld [vmem:[#allocation7 + $0x1c] ss:$12 sps:$4 sm:$0xff]  }
 0xda6   :  { %v2965_v30 = vmul.f32 -1.442695, %v2354_v24  ;;  %v3843_v24 = vld [vmem:[#allocation7] ss:$12 sps:$4 sm:$0xff]   ;;  %v3846_v3 = vld [vmem:[#allocation7 + $0x18] ss:$12 sps:$4 sm:$0xff]  }
 0xda7   :  { %3783 = vpow2.f32 %v2964_v1  ;;  %v3847_v1 = vld [vmem:[#allocation7 + $0x20] ss:$12 sps:$4 sm:$0xff]   ;;  %v3849_v42 = vld [vmem:[#allocation7 + $0x30] ss:$12 sps:$4 sm:$0xff]  }
 0xda8   :  { %3785 = vpow2.f32 %v2965_v30  ;;  %v3848_v2 = vld [vmem:[#allocation7 + $0x34] ss:$12 sps:$4 sm:$0xff]   ;;  %v3850_v30 = vld [vmem:[#allocation7 + $0x38] ss:$12 sps:$4 sm:$0xff]  }
 0xdb1   :  { %v3784_v19 = vpop.eup %3783 }
 0xdb2   :  { %v2351_v23 = vadd.f32 1.0, %v3784_v19  ;;  %v3786_v36 = vpop.eup %3785  ;;  %v3851_v19 = vld [vmem:[#allocation7 + $0x4c] ss:$12 sps:$4 sm:$0xff]  }
 0xdb3   :  { %v2358_v10 = vadd.f32 1.0, %v3786_v36  ;;  %v3854_v36 = vld [vmem:[#allocation7 + $0x64] ss:$12 sps:$4 sm:$0xff]  }
 0xdb4   :  { %3787 = vrcp.f32 %v2351_v23  ;;  %v3853_v23 = vld [vmem:[#allocation7 + $0x50] ss:$12 sps:$4 sm:$0xff]  }
 0xdb5   :  { %3789 = vrcp.f32 %v2358_v10  ;;  %v3855_v10 = vld [vmem:[#allocation7 + $0x60] ss:$12 sps:$4 sm:$0xff]  }
 0xdbe   :  { %v3788_v43 = vpop.eup %3787 }
 0xdbf   :  { %v2362_v18 = vmul.f32 %v3788_v43, %v2361_v50  ;;  %v3790_v16 = vpop.eup %3789  ;;  %v3856_v50 = vld [vmem:[#allocation7 + $0x68] ss:$12 sps:$4 sm:$0xff]  }
 0xdc0   :  { %v2365_v59 = vsub.f32 1.0, %v3790_v16  ;;  %v2367_v21 = vmul.f32 %v3790_v16, %v5168_v8  ;;  %v3857_v43 = vld [vmem:[#allocation7 + $0x7c] ss:$12 sps:$4 sm:$0xff]  }
 0xdc1   :  { %v2363_v60 = vadd.f32 %v2362_v18, %v1698_v5  ;;  %v3858_v5 = vld [vmem:[#allocation7 + $0x78] ss:$12 sps:$4 sm:$0xff]   ;;  %v3859_v18 = vld [vmem:[#allocation7 + $0x80] ss:$12 sps:$4 sm:$0xff]   ;;  %v3861_v16 = vld [vmem:[#allocation7 + $0x90] ss:$12 sps:$4 sm:$0xff]  }
 0xdc3   :  { %3791 = vtanh.f32 %v2363_v60  ;;  %v3860_v60 = vld [vmem:[#allocation7 + $0x94] ss:$12 sps:$4 sm:$0xff]  }
 0xdcd   :  { %v3792_v0 = vpop.eup %3791 }
 0xdce   :  { %v2366_v62 = vmul.f32 %v3792_v0, %v2365_v59  ;;  %v3862_v59 = vld [vmem:[#allocation7 + $0x98] ss:$12 sps:$4 sm:$0xff]  }
 0xdcf   :  { %v3863_v0 = vld [vmem:[#allocation7 + $0xac] ss:$12 sps:$4 sm:$0xff]  }
 0xdd0   :  { %v5215_v14 = vadd.f32 %v2367_v21, %v2366_v62  ;;  %v3864_v62 = vld [vmem:[#allocation7 + $0xa8] ss:$12 sps:$4 sm:$0xff]   ;;  %v3865_v21 = vld [vmem:[#allocation7 + $0xb0] ss:$12 sps:$4 sm:$0xff]  }
 0xdd2   :  { %v2370_v63 = vpack.c.bf16 %v5215_v14, %v5215_v14 }
 0xdd4   :  { %2404 = vmatmul.mubr.bf16.vlgmr.msra.gmra.mrb[68].mxu0 %v2370_v63  ;;  %3468 = vmatmul.mubr.bf16.vlgmr.msra.gmra.mrb[84].mxu1 %v2370_v63  ;;  %v3655_v63 = vld [vmem:[#allocation10] sm:$0xff]  }
 0xdd5   :  { %2477 = vmatpush1.bf16.msra.mxu0 %v4828_v41  ;;  %3472 = vmatpush3.bf16.msra.mxu1 %v4864_v49  ;;  %v1633_v41 = vadd.f32 %v4943_v61, %v5001_v51 }
 0xdd6   :  { %2478 = vmatprep.subr.bf16.mxu0 %v4832_v45  ;;  %3473 = vmatprep.subr.bf16.mxu1 %v5354_v38  ;;  %v1635_v45 = vadd.f32 %v4945_v44, %v5009_v12 }
 0xdd7   :  { %2508 = vmatprep.mubr.bf16.mxu0 %v5355_v40  ;;  %3487 = vmatprep.mubr.msk.bf16.mxu1 %vm3993_vm1, %v5354_v38 }
 0xdd9   :  { %2479 = vmatpush1.bf16.msra.mxu0 %v4834_v52  ;;  %3474 = vmatpush3.bf16.msra.mxu1 %v4876_v6 }
 0xdda   :  { %2480 = vmatprep.subr.bf16.mxu0 %v4838_v56  ;;  %3475 = vmatprep.subr.bf16.mxu1 %v5354_v38 }
 0xddd   :  { %2481 = vmatpush1.bf16.msra.mxu0 %v4840_v46  ;;  %3476 = vmatpush3.bf16.msra.mxu1 %v4882_v48 }
 0xdde   :  { %2482 = vmatprep.subr.bf16.mxu0 %v4844_v7  ;;  %3477 = vmatprep.subr.bf16.mxu1 %v5354_v38 }
 0xde1   :  { %2483 = vmatpush1.bf16.msra.mxu0 %v4847_v31  ;;  %3478 = vmatpush3.bf16.msra.mxu1 %v4886_v54 }
 0xde2   :  { %2484 = vmatprep.subr.bf16.mxu0 %v4850_v32  ;;  %3479 = vmatprep.subr.bf16.mxu1 %v5354_v38 }
 0xde5   :  { %2485 = vmatpush1.bf16.msra.mxu0 %v4852_v33  ;;  %3480 = vmatpush3.bf16.msra.mxu1 %v4890_v27  ;;  %v1701_v27 = vadd.f32 %v5005_v39, %v5022_v57  ;;  %v3844_v39 = vld [vmem:[#allocation7 + $0x8] ss:$12 sps:$4 sm:$0xff]  }
 0xde6   :  { %2486 = vmatprep.subr.bf16.mxu0 %v4856_v34  ;;  %3481 = vmatprep.subr.bf16.mxu1 %v5354_v38 }
 0xde9   :  { %2487 = vmatpush1.bf16.msra.mxu0 %v4859_v20  ;;  %3482 = vmatpush3.bf16.msra.mxu1 %v4894_v37 }
 0xdea   :  { %2488 = vmatprep.subr.bf16.mxu0 %v4862_v47  ;;  %3483 = vmatprep.subr.bf16.mxu1 %v5354_v38 }
 0xded   :  { %2489 = vmatpush1.bf16.msra.mxu0 %v4866_v55  ;;  %3484 = vmatpush3.bf16.msra.mxu1 %v4898_v28 }
 0xdee   :  { %2490 = vmatprep.subr.bf16.mxu0 %v4871_v4  ;;  %3485 = vmatprep.subr.bf16.mxu1 %v5354_v38 }
 0xdf1   :  { %2491 = vmatpush1.bf16.msra.mxu0 %v4874_v35  ;;  %3486 = vmatpush3.bf16.msra.mxu1 %v4902_v29 }
 0xdf2   :  { %2581 = vmatprep.subr.bf16.mxu0 %v4826_v53  ;;  %3491 = vmatprep.subr.bf16.mxu1 %v5354_v38 }
 0xea7   :  { %v2405_v52 = vpop.f32.mrb[68].mxu0  ;;  %v2446_v56 = vpop.f32.mrb[84].mxu1 }
 0xea8   :  { %v2452_v46 = vadd.f32 %v2405_v52, %v1633_v41  ;;  %v2407_v7 = vpop.f32.mrb[69].mxu0  ;;  %v3469_v31 = vpop.f32.mrb[85].mxu1  ;;  %v2466_v48 = vadd.f32 %v5018_v15, %v2446_v56  ;;  %v5368_v41 = vld [vmem:[#allocation15_spill] sm:$0xff]  ;;  %v5369_v52 = vld [vmem:[#allocation17_spill] sm:$0xff] }
 0xea9   :  { %v2459_v32 = vadd.f32 %v2407_v7, %v1635_v45  ;;  %v2409_v33 = vpop.f32.mrb[70].mxu0  ;;  %v2449_v34 = vpop.f32.mrb[86].mxu1  ;;  %v1639_v45 = vadd.f32 %v5368_v41, %v5001_v51  ;;  %v1641_v56 = vadd.f32 %v5369_v52, %v5009_v12 }
 0xeaa   :  { %v2966_v20 = vmul.f32 -1.442695, %v2452_v46  ;;  %v2410_v47 = vpop.f32.mrb[71].mxu0  ;;  %v3470_v49 = vpop.f32.mrb[87].mxu1 }
 0xeab   :  { %v2967_v53 = vmul.f32 -1.442695, %v2459_v32 }
 0xeac   :  { %3793 = vpow2.f32 %v2966_v20 }
 0xead   :  { %3795 = vpow2.f32 %v2967_v53 }
 0xeb6   :  { %v3794_v55 = vpop.eup %3793 }
 0xeb7   :  { %v2456_v4 = vadd.f32 1.0, %v3794_v55  ;;  %v3796_v35 = vpop.eup %3795 }
 0xeb8   :  { %v2463_v6 = vadd.f32 1.0, %v3796_v35 }
 0xeb9   :  { %3797 = vrcp.f32 %v2456_v4 }
 0xeba   :  { %3799 = vrcp.f32 %v2463_v6 }
 0xec3   :  { %v3798_v54 = vpop.eup %3797 }
 0xec4   :  { %v2467_v37 = vmul.f32 %v3798_v54, %v2466_v48  ;;  %v3800_v29 = vpop.eup %3799 }
 0xec5   :  { %v2470_v61 = vsub.f32 1.0, %v3800_v29  ;;  %v2472_v13 = vmul.f32 %v3800_v29, %v5215_v14 }
 0xec6   :  { %v2468_v28 = vadd.f32 %v2467_v37, %v1701_v27  ;;  %v5370_v37 = vld [vmem:[#allocation16_spill] sm:$0xff] }
 0xec8   :  { %3801 = vtanh.f32 %v2468_v28  ;;  %v1706_v28 = vadd.f32 %v5370_v37, %v5022_v57 }
 0xed2   :  { %v3802_v44 = vpop.eup %3801 }
 0xed3   :  { %v2471_v17 = vmul.f32 %v3802_v44, %v2470_v61 }
 0xed5   :  { %v5262_v25 = vadd.f32 %v2472_v13, %v2471_v17 }
 0xed7   :  { %v2475_v58 = vpack.c.bf16 %v5262_v25, %v5262_v25 }
 0xed9   :  { %2509 = vmatmul.mubr.bf16.vlgmr.msra.gmra.mrb[72].mxu0 %v2475_v58  ;;  %3488 = vmatmul.mubr.bf16.vlgmr.msra.gmra.mrb[88].mxu1 %v2475_v58 }
 0xeda   :  { %2582 = vmatpush1.bf16.msra.mxu0 %v3843_v24  ;;  %3492 = vmatpush3.bf16.msra.mxu1 %v3844_v39 }
 0xedb   :  { %2583 = vmatprep.subr.bf16.mxu0 %v3845_v22  ;;  %3493 = vmatprep.subr.bf16.mxu1 %v5354_v38 }
 0xedc   :  { %2613 = vmatprep.mubr.bf16.mxu0 %v5355_v40  ;;  %3507 = vmatprep.mubr.msk.bf16.mxu1 %vm3993_vm1, %v5354_v38  ;;  %v3852_v40 = vld [vmem:[#allocation7 + $0x48] ss:$12 sps:$4 sm:$0xff]  }
 0xede   :  { %2584 = vmatpush1.bf16.msra.mxu0 %v3846_v3  ;;  %3494 = vmatpush3.bf16.msra.mxu1 %v3847_v1  ;;  %v3656_v3 = vld [vmem:[#allocation10 + $0x8] sm:$0xff]   ;;  %v2693_v1 = vpack.c.bf16 %v5074_v11, %v5027_v26  ;;  %v3662_v26 = vld [vmem:[#allocation10 + $0x38] sm:$0xff]   ;;  %v2694_v11 = vpack.c.bf16 %v5168_v8, %v5121_v9 }
 0xedf   :  { %2585 = vmatprep.subr.bf16.mxu0 %v3848_v2  ;;  %3495 = vmatprep.subr.bf16.mxu1 %v5354_v38  ;;  %v3657_v2 = vld [vmem:[#allocation10 + $0x10] sm:$0xff]  }
 0xee2   :  { %2586 = vmatpush1.bf16.msra.mxu0 %v3849_v42  ;;  %3496 = vmatpush3.bf16.msra.mxu1 %v3850_v30  ;;  %v3658_v42 = vld [vmem:[#allocation10 + $0x18] sm:$0xff]   ;;  %v3659_v30 = vld [vmem:[#allocation10 + $0x20] sm:$0xff]  }
 0xee3   :  { %2587 = vmatprep.subr.bf16.mxu0 %v3851_v19  ;;  %3497 = vmatprep.subr.bf16.mxu1 %v5354_v38  ;;  %v3660_v19 = vld [vmem:[#allocation10 + $0x28] sm:$0xff]  }
 0xee6   :  { %2588 = vmatpush1.bf16.msra.mxu0 %v3852_v40  ;;  %3498 = vmatpush3.bf16.msra.mxu1 %v3853_v23  ;;  %v3661_v40 = vld [vmem:[#allocation10 + $0x30] sm:$0xff]   ;;  %v2695_v23 = vpack.c.bf16 %v5262_v25, %v5215_v14 }
 0xee7   :  { %2589 = vmatprep.subr.bf16.mxu0 %v3854_v36  ;;  %3499 = vmatprep.subr.bf16.mxu1 %v5354_v38  ;;  %v5371_v36 = vld [vmem:[#allocation18_spill] sm:$0xff] }
 0xeea   :  { %2590 = vmatpush1.bf16.msra.mxu0 %v3855_v10  ;;  %3500 = vmatpush3.bf16.msra.mxu1 %v3856_v50  ;;  %v1643_v10 = vadd.f32 %v5371_v36, %v5001_v51  ;;  %v5372_v50 = vld [vmem:[#allocation14_spill] sm:$0xff] }
 0xeeb   :  { %2591 = vmatprep.subr.bf16.mxu0 %v3857_v43  ;;  %3501 = vmatprep.subr.bf16.mxu1 %v5354_v38  ;;  %v1645_v43 = vadd.f32 %v5372_v50, %v5009_v12 }
 0xeee   :  { %2592 = vmatpush1.bf16.msra.mxu0 %v3858_v5  ;;  %3502 = vmatpush3.bf16.msra.mxu1 %v3859_v18 }
 0xeef   :  { %2593 = vmatprep.subr.bf16.mxu0 %v3860_v60  ;;  %3503 = vmatprep.subr.bf16.mxu1 %v5354_v38 }
 0xef2   :  { %2594 = vmatpush1.bf16.msra.mxu0 %v3861_v16  ;;  %3504 = vmatpush3.bf16.msra.mxu1 %v3862_v59 }
 0xef3   :  { %2595 = vmatprep.subr.bf16.mxu0 %v3863_v0  ;;  %3505 = vmatprep.subr.bf16.mxu1 %v5354_v38 }
 0xef6   :  { %2596 = vmatpush1.bf16.msra.mxu0 %v3864_v62  ;;  %3506 = vmatpush3.bf16.msra.mxu1 %v3865_v21 }
 0xef7   :  { %3511 = vmatprep.subr.bf16.mxu0 %v3655_v63 }
 0xfac   :  { %v2510_v46 = vpop.f32.mrb[72].mxu0  ;;  %v2551_v7 = vpop.f32.mrb[88].mxu1 }
 0xfad   :  { %v2557_v31 = vadd.f32 %v2510_v46, %v1639_v45  ;;  %v2512_v32 = vpop.f32.mrb[73].mxu0  ;;  %v3489_v33 = vpop.f32.mrb[89].mxu1  ;;  %v2571_v54 = vadd.f32 %v5018_v15, %v2551_v7 }
 0xfae   :  { %v2564_v34 = vadd.f32 %v2512_v32, %v1641_v56  ;;  %v2514_v20 = vpop.f32.mrb[74].mxu0  ;;  %v2554_v38 = vpop.f32.mrb[90].mxu1  ;;  %v5373_v56 = vld [vmem:[#allocation19_spill] sm:$0xff] }
 0xfaf   :  { %v2968_v47 = vmul.f32 -1.442695, %v2557_v31  ;;  %v2515_v49 = vpop.f32.mrb[75].mxu0  ;;  %v3490_v53 = vpop.f32.mrb[91].mxu1  ;;  %v1709_v46 = vadd.f32 %v5373_v56, %v5022_v57  ;;  %v2972_v31 = vld [vmem:[%s5340_s10] ss:$0 sm:$0xff] }
 0xfb0   :  { %v2969_v55 = vmul.f32 -1.442695, %v2564_v34 }
 0xfb1   :  { %3803 = vpow2.f32 %v2968_v47 }
 0xfb2   :  { %3805 = vpow2.f32 %v2969_v55 }
 0xfbb   :  { %v3804_v4 = vpop.eup %3803 }
 0xfbc   :  { %v2561_v35 = vadd.f32 1.0, %v3804_v4  ;;  %v3806_v6 = vpop.eup %3805 }
 0xfbd   :  { %v2568_v48 = vadd.f32 1.0, %v3806_v6 }
 0xfbe   :  { %3807 = vrcp.f32 %v2561_v35 }
 0xfbf   :  { %3809 = vrcp.f32 %v2568_v48 }
 0xfc8   :  { %v3808_v27 = vpop.eup %3807 }
 0xfc9   :  { %v2572_v29 = vmul.f32 %v3808_v27, %v2571_v54  ;;  %v3810_v44 = vpop.eup %3809 }
 0xfca   :  { %v2575_v17 = vsub.f32 1.0, %v3810_v44  ;;  %v2577_v24 = vmul.f32 %v3810_v44, %v5262_v25 }
 0xfcb   :  { %v2573_v61 = vadd.f32 %v2572_v29, %v1706_v28 }
 0xfcd   :  { %3811 = vtanh.f32 %v2573_v61 }
 0xfd7   :  { %v3812_v13 = vpop.eup %3811 }
 0xfd8   :  { %v2576_v58 = vmul.f32 %v3812_v13, %v2575_v17 }
 0xfda   :  { %v5284_v39 = vadd.f32 %v2577_v24, %v2576_v58 }
 0xfdc   :  { %v2580_v22 = vpack.c.bf16 %v5284_v39, %v5284_v39 }
 0xfde   :  { %2614 = vmatmul.mubr.bf16.vlgmr.msra.gmra.mrb[76].mxu0 %v2580_v22  ;;  %3508 = vmatmul.mubr.bf16.vlgmr.msra.gmra.mrb[92].mxu1 %v2580_v22 }
 0xfdf   :  { %3512 = vmatpush3.bf16.msra.mxu0 %v3655_v63  ;;  %3527 = vmatprep.mubr.bf16.mxu0 %v2693_v1 }
 0xfe0   :  { %3513 = vmatprep.subr.bf16.mxu0 %v3656_v3 }
 0xfe3   :  { %3514 = vmatpush3.bf16.msra.mxu0 %v3656_v3 }
 0xfe4   :  { %3515 = vmatprep.subr.bf16.mxu0 %v3657_v2 }
 0xfe7   :  { %3516 = vmatpush3.bf16.msra.mxu0 %v3657_v2 }
 0xfe8   :  { %3517 = vmatprep.subr.bf16.mxu0 %v3658_v42 }
 0xfeb   :  { %3518 = vmatpush3.bf16.msra.mxu0 %v3658_v42 }
 0xfec   :  { %3519 = vmatprep.subr.bf16.mxu0 %v3659_v30 }
 0xfef   :  { %3520 = vmatpush3.bf16.msra.mxu0 %v3659_v30 }
 0xff0   :  { %3521 = vmatprep.subr.bf16.mxu0 %v3660_v19 }
 0xff3   :  { %3522 = vmatpush3.bf16.msra.mxu0 %v3660_v19 }
 0xff4   :  { %3523 = vmatprep.subr.bf16.mxu0 %v3661_v40 }
 0xff7   :  { %3524 = vmatpush3.bf16.msra.mxu0 %v3661_v40 }
 0xff8   :  { %3525 = vmatprep.subr.bf16.mxu0 %v3662_v26 }
 0xffb   :  { %3526 = vmatpush3.bf16.msra.mxu0 %v3662_v26 }
 0xffe   :  { %3528 = vmatmul.mubr.bf16.vlgmr.msra.gmra.mrb[80].mxu0 %v2694_v11 }
 0xfff   :  { %3531 = vmatprep.mubr.bf16.mxu0 %v2695_v23 }
0x10b1   :  { %v2615_v5 = vpop.f32.mrb[76].mxu0  ;;  %v2656_v18 = vpop.f32.mrb[92].mxu1 }
0x10b2   :  { %v2662_v60 = vadd.f32 %v2615_v5, %v1643_v10  ;;  %v2617_v16 = vpop.f32.mrb[77].mxu0  ;;  %v3509_v59 = vpop.f32.mrb[93].mxu1  ;;  %v2676_v12 = vadd.f32 %v5018_v15, %v2656_v18 }
0x10b3   :  { %v2669_v0 = vadd.f32 %v2617_v16, %v1645_v43  ;;  %v2619_v62 = vpop.f32.mrb[78].mxu0  ;;  %v2659_v21 = vpop.f32.mrb[94].mxu1 }
0x10b4   :  { %v2970_v9 = vmul.f32 -1.442695, %v2662_v60  ;;  %v2620_v8 = vpop.f32.mrb[79].mxu0  ;;  %v3510_v63 = vpop.f32.mrb[95].mxu1 }
0x10b5   :  { %v2971_v14 = vmul.f32 -1.442695, %v2669_v0 }
0x10b6   :  { %3813 = vpow2.f32 %v2970_v9 }
0x10b7   :  { %3815 = vpow2.f32 %v2971_v14 }
0x10c0   :  { %v3814_v25 = vpop.eup %3813 }
0x10c1   :  { %v2666_v41 = vadd.f32 1.0, %v3814_v25  ;;  %v3816_v51 = vpop.eup %3815 }
0x10c2   :  { %v2673_v45 = vadd.f32 1.0, %v3816_v51 }
0x10c3   :  { %3817 = vrcp.f32 %v2666_v41 }
0x10c4   :  { %3819 = vrcp.f32 %v2673_v45 }
0x10cd   :  { %v3818_v52 = vpop.eup %3817 }
0x10ce   :  { %v2677_v7 = vmul.f32 %v3818_v52, %v2676_v12  ;;  %v3820_v53 = vpop.eup %3819 }
0x10cf   :  { %v2680_v55 = vsub.f32 1.0, %v3820_v53  ;;  %v2682_v6 = vmul.f32 %v3820_v53, %v5284_v39 }
0x10d0   :  { %v2678_v32 = vadd.f32 %v2677_v7, %v1709_v46 }
0x10d1   :  { %v3529_v33 = vpop.f32.mrb[80].mxu0 }
0x10d2   :  { %3821 = vtanh.f32 %v2678_v32  ;;  %v2811_v34 = vadd.f32 %v3529_v33, %v2972_v31  ;;  %v2802_v20 = vpop.f32.mrb[81].mxu0 }
0x10d3   :  { %v2803_v38 = vadd.f32 %v2972_v31, %v2802_v20  ;;  %v3530_v47 = vpop.f32.mrb[82].mxu0 }
0x10d4   :  { %2835 = vst [vmem:[%s5341_s11 + $0x10] sm:$0xff] %v2811_v34  ;;  %v2814_v15 = vadd.f32 %v3530_v47, %v2972_v31  ;;  %v2805_v49 = vpop.f32.mrb[83].mxu0 }
0x10d5   :  { %2833 = vst [vmem:[%s5341_s11] sm:$0xff] %v2803_v38  ;;  %v2806_v57 = vadd.f32 %v2972_v31, %v2805_v49 }
0x10d6   :  { %2836 = vst [vmem:[%s5341_s11 + $0x18] sm:$0xff] %v2814_v15 }
0x10d7   :  { %2834 = vst [vmem:[%s5341_s11 + $0x8] sm:$0xff] %v2806_v57 }
0x10dc   :  { %v3822_v4 = vpop.eup %3821 }
0x10dd   :  { %v2681_v35 = vmul.f32 %v3822_v4, %v2680_v55 }
0x10df   :  { %v2683_v48 = vadd.f32 %v2682_v6, %v2681_v35 }
0x10e1   :  { %v2696_v54 = vpack.c.bf16 %v2683_v48, %v5284_v39 }
0x10e3   :  { %3532 = vmatmul.mubr.bf16.gmra.mrb[84].mxu0 %v2696_v54 }
0x11b6   :  { %v3533_v27 = vpop.f32.mrb[84].mxu0 }
0x11b7   :  { %v2827_v37 = vadd.f32 %v3533_v27, %v2972_v31  ;;  %v2818_v28 = vpop.f32.mrb[85].mxu0 }
0x11b8   :  { %v2819_v29 = vadd.f32 %v2972_v31, %v2818_v28  ;;  %v3534_v61 = vpop.f32.mrb[86].mxu0 }
0x11b9   :  { %2839 = vst [vmem:[%s5341_s11 + $0x30] sm:$0xff] %v2827_v37  ;;  %v2830_v44 = vadd.f32 %v3534_v61, %v2972_v31  ;;  %v2821_v17 = vpop.f32.mrb[87].mxu0 }
0x11ba   :  { %2837 = vst [vmem:[%s5341_s11 + $0x20] sm:$0xff] %v2819_v29  ;;  %v2822_v13 = vadd.f32 %v2972_v31, %v2821_v17 }
0x11bb   :  { %2840 = vst [vmem:[%s5341_s11 + $0x38] sm:$0xff] %v2830_v44 }
0x11bc   :  { %2838 = vst [vmem:[%s5341_s11 + $0x28] sm:$0xff] %v2822_v13 }
0x11bd   :  { %2845 = vsyncpa [#allocation4], 1 }
0x11be   :  { %2846 = vsyncpa [#allocation6], 1 }
0x11bf   :  { %2847 = vsyncpa [#allocation9], 1 }

</bundles_post_ra>
